<compile_context>
chip_gen: v7x
topology: tpu7x:2x2x1
jax: 0.10.0
libtpu: 0.0.40
codegen_flags: <defaults>
</compile_context>

<pallas_src>
import jax
import jax.numpy as jnp
from jax import lax
from jax.experimental import pallas as pl
from jax.experimental.pallas import tpu as pltpu

EMBEDDING_SIZE = 32
N_MOVIE = 1000
N_USER = 500

_LANES = 128
_SUBLANES = 8


def _round_up(x, m):
    return (x + m - 1) // m * m


def recommender_kernel(gb_ref, uidx_ref, midx_ref, thi_ref, tmid_ref, tlo_ref, o_ref):
    """One batch tile.

    Shapes (per grid step):
      gb_ref   : (1, 1)                 f32  SMEM scalar (global bias)
      uidx_ref : (1, tb)                i32  VMEM (lane-dense user indices)
      midx_ref : (1, tb)                i32  VMEM (movie indices, pre-shifted by NU_pad)
      thi_ref  : (2*E_aug, N_total)     bf16 VMEM (block-diag table, high limb)
      tmid_ref : (2*E_aug, N_total)     bf16 VMEM (mid limb)
      tlo_ref  : (2*E_aug, N_total)     bf16 VMEM (low limb)
      o_ref    : (1, tb)                f32  VMEM (lane-dense output)
    """
    two_e_aug, n_total = thi_ref.shape
    e_aug = two_e_aug // 2
    tb = o_ref.shape[1]

    uidx = uidx_ref[...]  # (1, tb) int32
    midx = midx_ref[...]  # (1, tb) int32, already offset by NU_pad

    # Stacked one-hot: two 1s per column (user row in the top block, movie row
    # in the bottom block).  0/1 are exact in bf16.
    row = lax.broadcasted_iota(jnp.int32, (n_total, tb), 0)
    sel = ((row == uidx) | (row == midx)).astype(jnp.bfloat16)

    # Exact f32 gather: three native bf16 MXU passes over the block-diagonal
    # table limbs, summed in f32.  Each pass selects the limb value exactly
    # (one-hot column, f32 accumulate), and hi+mid+lo reproduces the original
    # f32 table entry bit-exactly.
    g = jnp.dot(thi_ref[...], sel, preferred_element_type=jnp.float32)
    g = g + jnp.dot(tmid_ref[...], sel, preferred_element_type=jnp.float32)
    g = g + jnp.dot(tlo_ref[...], sel, preferred_element_type=jnp.float32)

    u = g[:e_aug, :]   # (E_aug, tb) gathered [user_emb, u_bias, 1, 0...]
    m = g[e_aug:, :]   # (E_aug, tb) gathered [movie_emb, 1, m_bias, 0...]

    # Dot product over the augmented embedding axis (sublanes) -> (1, tb).
    # The augmented columns contribute u_bias + m_bias automatically.
    o_ref[...] = jnp.sum(u * m, axis=0, keepdims=True) + gb_ref[0, 0]


def pack_tables(params):
    """One-time layout prep (hoist out of the hot path in real use).

    Builds an augmented, transposed, block-diagonal table split into three
    bf16 limbs:
      U_aug row = [user_emb (E), user_bias, 1, 0...]
      M_aug row = [movie_emb (E), 1, movie_bias, 0...]
      T = [[U_aug.T, 0], [0, M_aug.T]]            # (2*E_aug, NU_pad + NM_pad)
      T == T_hi + T_mid + T_lo  (bf16 limbs, exact)
    so that dot(U_aug[u], M_aug[m]) = sum(u*m) + u_bias + m_bias and both
    gathers run as one MXU stream.
    """
    ue = params["user_embedding"].astype(jnp.float32)        # (NU, E)
    me = params["movie_embedding"].astype(jnp.float32)       # (NM, E)
    ub = params["user_bias_embedding"].astype(jnp.float32)   # (NU, 1)
    mb = params["movie_bias_embedding"].astype(jnp.float32)  # (NM, 1)

    nu, e = ue.shape
    nm = me.shape[0]
    e_aug = _round_up(e + 2, _SUBLANES)
    nu_pad = _round_up(nu, _LANES)
    nm_pad = _round_up(nm, _LANES)
    n_total = nu_pad + nm_pad

    u_aug = jnp.zeros((nu_pad, e_aug), jnp.float32)
    u_aug = u_aug.at[:nu, :e].set(ue)
    u_aug = u_aug.at[:nu, e].set(ub[:, 0])
    u_aug = u_aug.at[:nu, e + 1].set(1.0)

    m_aug = jnp.zeros((nm_pad, e_aug), jnp.float32)
    m_aug = m_aug.at[:nm, :e].set(me)
    m_aug = m_aug.at[:nm, e].set(1.0)
    m_aug = m_aug.at[:nm, e + 1].set(mb[:, 0])

    # Block-diagonal fused table, transposed so entity rows sit on lanes.
    tab = jnp.zeros((2 * e_aug, n_total), jnp.float32)
    tab = tab.at[:e_aug, :nu_pad].set(u_aug.T)
    tab = tab.at[e_aug:, nu_pad:].set(m_aug.T)

    # Exact 3-limb bf16 split (24 mantissa bits total): hi + mid + lo == tab.
    hi = tab.astype(jnp.bfloat16)
    r1 = tab - hi.astype(jnp.float32)
    mid = r1.astype(jnp.bfloat16)
    r2 = r1 - mid.astype(jnp.float32)
    lo = r2.astype(jnp.bfloat16)

    return {
        "table_hi": hi,        # (2*E_aug, N_total) bf16
        "table_mid": mid,
        "table_lo": lo,
        "nu_pad": nu_pad,      # static int: movie-index offset
        "global_bias": params["global_bias"].reshape(1, 1).astype(jnp.float32),
    }


def recommender_forward(packed, user, movie, *, max_tile=512):
    # max_tile=512 fits comfortably in v5e's 16 MiB default scoped VMEM with
    # the bf16 one-hot; v6e/v7x users can raise to 1024 to amortize per-step
    # overhead further.
    t_hi = packed["table_hi"]
    t_mid = packed["table_mid"]
    t_lo = packed["table_lo"]
    gb = packed["global_bias"]
    nu_pad = packed["nu_pad"]
    two_e_aug, n_total = t_hi.shape

    b = user.shape[0]
    # Lane-dense batch tiling (tile width = multiple of 128):
    #  * B <= 128           -> one 128-wide tile (splitting would only add work)
    #  * 128 < B <= 2*tile  -> two tiles so the "parallel" grid axis shards
    #                          across both v7x TensorCores
    #  * larger             -> max_tile-wide tiles
    if b <= _LANES:
        tb = _LANES
    elif b <= 2 * max_tile:
        tb = _round_up((b + 1) // 2, _LANES)
    else:
        tb = max_tile
    b_pad = _round_up(b, tb)
    num_tiles = b_pad // tb

    uidx = jnp.pad(user.astype(jnp.int32), (0, b_pad - b)).reshape(1, b_pad)
    # Shift movie indices into the movie block of the fused table; padded
    # lanes reuse index 0 / nu_pad and are sliced off below.
    midx = jnp.pad(movie.astype(jnp.int32), (0, b_pad - b)).reshape(1, b_pad) + nu_pad

    out = pl.pallas_call(
        recommender_kernel,
        out_shape=jax.ShapeDtypeStruct((1, b_pad), jnp.float32),
        grid_spec=pltpu.PrefetchScalarGridSpec(
            num_scalar_prefetch=0,
            grid=(num_tiles,),
            in_specs=[
                # global bias: single scalar in SMEM (no VMEM tile).
                pl.BlockSpec(memory_space=pltpu.MemorySpace.SMEM),
                # lane-dense index tiles.
                pl.BlockSpec((1, tb), lambda i: (0, i)),
                pl.BlockSpec((1, tb), lambda i: (0, i)),
                # full fused-table limbs, constant block index -> resident.
                pl.BlockSpec((two_e_aug, n_total), lambda i: (0, 0)),
                pl.BlockSpec((two_e_aug, n_total), lambda i: (0, 0)),
                pl.BlockSpec((two_e_aug, n_total), lambda i: (0, 0)),
            ],
            out_specs=pl.BlockSpec((1, tb), lambda i: (0, i)),  # lane-dense output
        ),
        compiler_params=pltpu.CompilerParams(
            dimension_semantics=("parallel",)),
    )(gb, uidx, midx, t_hi, t_mid, t_lo)

    return out[0, :b]  # (B,)


def init_params(key, n_user=N_USER, n_movie=N_MOVIE, embedding_size=EMBEDDING_SIZE):
    k1, k2, k3, k4 = jax.random.split(key, 4)
    # nn.Embedding default init: N(0, 1); nn.Parameter(torch.zeros(1)) -> zeros.
    return {
        "user_embedding": jax.random.normal(k1, (n_user, embedding_size), jnp.float32),
        "movie_embedding": jax.random.normal(k2, (n_movie, embedding_size), jnp.float32),
        "user_bias_embedding": jax.random.normal(k3, (n_user, 1), jnp.float32),
        "movie_bias_embedding": jax.random.normal(k4, (n_movie, 1), jnp.float32),
        "global_bias": jnp.zeros((1,), jnp.float32),
    }


def reference_forward(params, user, movie):
    u = params["user_embedding"][user]
    m = params["movie_embedding"][movie]
    ub = params["user_bias_embedding"][user]
    mb = params["movie_bias_embedding"][movie]
    dot = jnp.sum(u * m, axis=1)
    return dot + ub.squeeze() + mb.squeeze() + params["global_bias"]


if __name__ == "__main__":
    key = jax.random.PRNGKey(0)
    pkey, ukey, mkey = jax.random.split(key, 3)

    params = init_params(pkey)
    packed = pack_tables(params)   # one-time layout prep

    B = 16
    user = jax.random.randint(ukey, (B,), 0, N_USER, dtype=jnp.int32)
    movie = jax.random.randint(mkey, (B,), 0, N_MOVIE, dtype=jnp.int32)

    out = recommender_forward(packed, user, movie)
    out = jax.block_until_ready(out)

    ref = reference_forward(params, user, movie)
    assert out.shape == (B,)
    assert jnp.allclose(out, ref, atol=1e-5, rtol=1e-5)

    print("KERNEL_OK")
</pallas_src>

<mosaic_0001>
module attributes {stable_mosaic.version = 11 : i64} {
  func.func @recommender_kernel(%arg0: i32, %arg1: memref<1x1xf32, #tpu.memory_space<smem>>, %arg2: memref<1x128xi32, #tpu.memory_space<vmem>>, %arg3: memref<1x128xi32, #tpu.memory_space<vmem>>, %arg4: memref<80x1536xbf16, #tpu.memory_space<vmem>>, %arg5: memref<80x1536xbf16, #tpu.memory_space<vmem>>, %arg6: memref<80x1536xbf16, #tpu.memory_space<vmem>>, %arg7: memref<1x128xf32, #tpu.memory_space<vmem>>) attributes {dimension_semantics = [#tpu.dimension_semantics<parallel>], iteration_bounds = array<i64: 1>, scalar_prefetch = 0 : i64, scratch_operands = 0 : i64, tpu.core_type = #tpu.core_type<tc>, window_params = [{transform_indices = @transform_0, window_bounds = array<i64: 1, 1>}, {transform_indices = @transform_1, window_bounds = array<i64: 1, 128>}, {transform_indices = @transform_2, window_bounds = array<i64: 1, 128>}, {pipeline_mode = #tpu.pipeline_mode<synchronous>, transform_indices = @transform_3, window_bounds = array<i64: 80, 1536>}, {pipeline_mode = #tpu.pipeline_mode<synchronous>, transform_indices = @transform_4, window_bounds = array<i64: 80, 1536>}, {pipeline_mode = #tpu.pipeline_mode<synchronous>, transform_indices = @transform_5, window_bounds = array<i64: 80, 1536>}, {transform_indices = @transform_6, window_bounds = array<i64: 1, 128>}]} {
    %c0 = arith.constant 0 : index
    %c0_0 = arith.constant 0 : index
    %0 = vector.load %arg2[%c0, %c0_0] : memref<1x128xi32, #tpu.memory_space<vmem>>, vector<1x128xi32>
    %c0_1 = arith.constant 0 : index
    %c0_2 = arith.constant 0 : index
    %1 = vector.load %arg3[%c0_1, %c0_2] : memref<1x128xi32, #tpu.memory_space<vmem>>, vector<1x128xi32>
    %2 = tpu.iota {dimensions = array<i32: 0>} : vector<1536x128xi32>
    %3 = vector.broadcast %0 : vector<1x128xi32> to vector<1536x128xi32>
    %4 = arith.cmpi eq, %2, %3 : vector<1536x128xi32>
    %5 = vector.broadcast %1 : vector<1x128xi32> to vector<1536x128xi32>
    %6 = arith.cmpi eq, %2, %5 : vector<1536x128xi32>
    %7 = arith.ori %4, %6 : vector<1536x128xi1>
    %8 = arith.extui %7 : vector<1536x128xi1> to vector<1536x128xi32>
    %9 = arith.sitofp %8 : vector<1536x128xi32> to vector<1536x128xf32>
    %10 = arith.truncf %9 : vector<1536x128xf32> to vector<1536x128xbf16>
    %c0_3 = arith.constant 0 : index
    %c0_4 = arith.constant 0 : index
    %11 = vector.load %arg4[%c0_3, %c0_4] : memref<80x1536xbf16, #tpu.memory_space<vmem>>, vector<80x1536xbf16>
    %cst = arith.constant dense<0.000000e+00> : vector<80x128xf32>
    %12 = tpu.matmul %11, %10, %cst {dimension_numbers = #tpu.dot_dimension_numbers<[1], [0], [0], [1], [0, 0, 1, 1], [], []>} : vector<80x1536xbf16>, vector<1536x128xbf16>, vector<80x128xf32> -> vector<80x128xf32>
    %c0_5 = arith.constant 0 : index
    %c0_6 = arith.constant 0 : index
    %13 = vector.load %arg5[%c0_5, %c0_6] : memref<80x1536xbf16, #tpu.memory_space<vmem>>, vector<80x1536xbf16>
    %cst_7 = arith.constant dense<0.000000e+00> : vector<80x128xf32>
    %14 = tpu.matmul %13, %10, %cst_7 {dimension_numbers = #tpu.dot_dimension_numbers<[1], [0], [0], [1], [0, 0, 1, 1], [], []>} : vector<80x1536xbf16>, vector<1536x128xbf16>, vector<80x128xf32> -> vector<80x128xf32>
    %15 = arith.addf %12, %14 : vector<80x128xf32>
    %c0_8 = arith.constant 0 : index
    %c0_9 = arith.constant 0 : index
    %16 = vector.load %arg6[%c0_8, %c0_9] : memref<80x1536xbf16, #tpu.memory_space<vmem>>, vector<80x1536xbf16>
    %cst_10 = arith.constant dense<0.000000e+00> : vector<80x128xf32>
    %17 = tpu.matmul %16, %10, %cst_10 {dimension_numbers = #tpu.dot_dimension_numbers<[1], [0], [0], [1], [0, 0, 1, 1], [], []>} : vector<80x1536xbf16>, vector<1536x128xbf16>, vector<80x128xf32> -> vector<80x128xf32>
    %18 = arith.addf %15, %17 : vector<80x128xf32>
    %19 = vector.extract_strided_slice %18 {offsets = [0, 0], sizes = [40, 128], strides = [1, 1]} : vector<80x128xf32> to vector<40x128xf32>
    %20 = vector.extract_strided_slice %18 {offsets = [40, 0], sizes = [40, 128], strides = [1, 1]} : vector<80x128xf32> to vector<40x128xf32>
    %21 = arith.mulf %19, %20 : vector<40x128xf32>
    %cst_11 = arith.constant dense<0.000000e+00> : vector<128xf32>
    %22 = vector.multi_reduction <add>, %21, %cst_11 [0] : vector<40x128xf32> to vector<128xf32>
    %23 = vector.shape_cast %22 : vector<128xf32> to vector<1x128xf32>
    %c0_12 = arith.constant 0 : index
    %c0_13 = arith.constant 0 : index
    %24 = memref.load %arg1[%c0_12, %c0_13] : memref<1x1xf32, #tpu.memory_space<smem>>
    %25 = vector.broadcast %24 : f32 to vector<1x128xf32>
    %26 = arith.addf %23, %25 : vector<1x128xf32>
    %c0_14 = arith.constant 0 : index
    %c0_15 = arith.constant 0 : index
    %27 = vector.load %arg7[%c0_14, %c0_15] : memref<1x128xf32, #tpu.memory_space<vmem>>, vector<1x128xf32>
    tpu.vector_store %arg7[%c0_14, %c0_15], %26 {strides = array<i32>} : memref<1x128xf32, #tpu.memory_space<vmem>>, vector<1x128xf32>,
    return
  }
  func.func @transform_0(%arg0: i32) -> (i32, i32) {
    %c0_i32 = arith.constant 0 : i32
    %c0_i32_0 = arith.constant 0 : i32
    %c0_i32_1 = arith.constant 0 : i32
    return %c0_i32, %c0_i32_0 : i32, i32
  }
  func.func @transform_1(%arg0: i32) -> (i32, i32) {
    %c0_i32 = arith.constant 0 : i32
    %c0_i32_0 = arith.constant 0 : i32
    return %c0_i32, %arg0 : i32, i32
  }
  func.func @transform_2(%arg0: i32) -> (i32, i32) {
    %c0_i32 = arith.constant 0 : i32
    %c0_i32_0 = arith.constant 0 : i32
    return %c0_i32, %arg0 : i32, i32
  }
  func.func @transform_3(%arg0: i32) -> (i32, i32) {
    %c0_i32 = arith.constant 0 : i32
    %c0_i32_0 = arith.constant 0 : i32
    %c0_i32_1 = arith.constant 0 : i32
    return %c0_i32, %c0_i32_0 : i32, i32
  }
  func.func @transform_4(%arg0: i32) -> (i32, i32) {
    %c0_i32 = arith.constant 0 : i32
    %c0_i32_0 = arith.constant 0 : i32
    %c0_i32_1 = arith.constant 0 : i32
    return %c0_i32, %c0_i32_0 : i32, i32
  }
  func.func @transform_5(%arg0: i32) -> (i32, i32) {
    %c0_i32 = arith.constant 0 : i32
    %c0_i32_0 = arith.constant 0 : i32
    %c0_i32_1 = arith.constant 0 : i32
    return %c0_i32, %c0_i32_0 : i32, i32
  }
  func.func @transform_6(%arg0: i32) -> (i32, i32) {
    %c0_i32 = arith.constant 0 : i32
    %c0_i32_0 = arith.constant 0 : i32
    return %c0_i32, %arg0 : i32, i32
  }
}

</mosaic_0001>

<bundles_post_ra>
// kernel: tpu_custom_call.1
= control target key start
LH: loop header
LB: loop body
LE: loop exit
PB: predicated region body
PF: predicated region fallthrough
CT: control target
= control target key end

     0   :  { %12 = vsyncpa [#allocation4], 0  ;;  %s8117_s0 = inlined_call_operand.<no memory space> [shape: f32[1,1], index: 0, kind: input, shape index: {}]   ;;  %s8118_s1 = inlined_call_operand.vmem [shape: s32[1,128], index: 1, kind: input, shape index: {}]   ;;  %s8119_s2 = inlined_call_operand.vmem [shape: s32[1,128], index: 2, kind: input, shape index: {}]   ;;  %s8120_s3 = inlined_call_operand.hbm [shape: bf16[80,1536], index: 3, kind: input, shape index: {}]   ;;  %s8121_s4 = inlined_call_operand.hbm [shape: bf16[80,1536], index: 4, kind: input, shape index: {}]   ;;  %s8122_s5 = inlined_call_operand.hbm [shape: bf16[80,1536], index: 5, kind: input, shape index: {}]   ;;  %s8123_s6 = inlined_call_operand.hbm [shape: f32[1,128], index: 6, kind: output, shape index: {}]  }
   0x1   :  { %13 = vsyncpa [#allocation7], 0 }
   0x2   :  { %14 = vsyncpa [#allocation5], 0  ;;  %s5918_s21 = smov [#allocation6]   ;;  %s5919_s23 = smov [#allocation3]  }
   0x3   :  { %s38_s22 = sshll.u32 %s5918_s21, 4  ;;  %s26_s24 = sshll.u32 %s5919_s23, 4  ;;  %s39_s22 = int_to_ptr.vmem [resolvable:$true] %s38_s22  ;;  %s5960_s24 = int_to_ptr.vmem [resolvable:$true] %s26_s24 }
   0x4   :  { %s5824_s27 = scalar_lea.hbm %s8121_s4, 7680 }
   0x5   :  { %p5825_p0 = scmp.ne.s32.totalorder %s8121_s4, %s5824_s27  ;;  %p5828_p1 = scmp.lt.u32.totalorder %s5824_s27, %s8121_s4 }
   0x7   :  { %p5830_p2 = pnand %p5828_p1, %p5825_p0 }
   0x9   :  { %5833 = shalt.err (!%p5830_p2)
}
   0xa   :  { %s5834_s8 = scalar_lea.vmem %s39_s22, 7680  ;;  %p5839_p4 = scmp.lt.s32.totalorder %s39_s22, %s39_s22 }
   0xb   :  { %p5835_p3 = scmp.ne.s32.totalorder %s39_s22, %s5834_s8  ;;  %p5840_p5 = scmp.lt.s32.totalorder %s5834_s8, %s5834_s8 }
   0xd   :  { %p5841_p6 = por %p5840_p5, %p5839_p4 }
   0xf   :  { %p5842_p7 = pnand %p5841_p6, %p5835_p3 }
  0x11   :  { %5845 = shalt.err (!%p5842_p7)
}
  0x12   :  { %s5920_s9 = smov 768   ;;  %s5921_s10 = smov 48  }
  0x13   :  { %44 = dma.hbm_to_vmem [thread:$0]  %s8121_s4, 7680, %s39_s22, [#allocation7], %s5920_s9, %s5920_s9, %s5921_s10  }
  0x14   :  { %s5846_s15 = scalar_lea.hbm %s8120_s3, 7680 }
  0x15   :  { %p5847_p8 = scmp.ne.s32.totalorder %s8120_s3, %s5846_s15  ;;  %p5850_p9 = scmp.lt.u32.totalorder %s5846_s15, %s8120_s3 }
  0x17   :  { %p5852_p10 = pnand %p5850_p9, %p5847_p8 }
  0x19   :  { %5855 = shalt.err (!%p5852_p10)
}
  0x1a   :  { %s5856_s20 = scalar_lea.vmem %s5960_s24, 7680  ;;  %p5861_p12 = scmp.lt.s32.totalorder %s5960_s24, %s5960_s24 }
  0x1b   :  { %p5857_p11 = scmp.ne.s32.totalorder %s5960_s24, %s5856_s20  ;;  %p5862_p13 = scmp.lt.s32.totalorder %s5856_s20, %s5856_s20 }
  0x1d   :  { %p5863_p0 = por %p5862_p13, %p5861_p12 }
  0x1f   :  { %p5864_p1 = pnand %p5863_p0, %p5857_p11 }
  0x21   :  { %5867 = shalt.err (!%p5864_p1)
}
  0x22   :  { %32 = dma.hbm_to_vmem [thread:$0]  %s8120_s3, 7680, %s5960_s24, [#allocation4], %s5920_s9, %s5920_s9, %s5921_s10  }
  0x23   :  { %s5922_s22 = smov [#allocation8]   ;;  %s5868_s27 = scalar_lea.hbm %s8122_s5, 7680 }
  0x24   :  { %s50_s23 = sshll.u32 %s5922_s22, 4  ;;  %p5869_p2 = scmp.ne.s32.totalorder %s8122_s5, %s5868_s27  ;;  %s51_s23 = int_to_ptr.vmem [resolvable:$true] %s50_s23 }
  0x25   :  { %p5872_p3 = scmp.lt.u32.totalorder %s5868_s27, %s8122_s5 }
  0x27   :  { %p5874_p4 = pnand %p5872_p3, %p5869_p2 }
  0x29   :  { %5877 = shalt.err (!%p5874_p4)
}
  0x2a   :  { %s5878_s8 = scalar_lea.vmem %s51_s23, 7680  ;;  %p5883_p6 = scmp.lt.s32.totalorder %s51_s23, %s51_s23 }
  0x2b   :  { %p5879_p5 = scmp.ne.s32.totalorder %s51_s23, %s5878_s8  ;;  %p5884_p7 = scmp.lt.s32.totalorder %s5878_s8, %s5878_s8 }
  0x2d   :  { %p5885_p8 = por %p5884_p7, %p5883_p6 }
  0x2f   :  { %p5886_p9 = pnand %p5885_p8, %p5879_p5 }
  0x31   :  { %5889 = shalt.err (!%p5886_p9)
}
  0x32   :  { %56 = dma.hbm_to_vmem [thread:$0]  %s8122_s5, 7680, %s51_s23, [#allocation7], %s5920_s9, %s5920_s9, %s5921_s10  }
  0x33   :  { %5912 = dma.done.wait [#allocation4], 7680  }
  0x34   :  { %5913 = vsyncadd [#allocation4], 4294959616 }
  0x35   :  { %5914 = dma.done.wait [#allocation7], 15360  }
  0x36   :  { %5915 = vsyncadd [#allocation7], 4294951936  ;;  %v69_v0 = vlaneseq  ;;  %v6021_v6 = vld [vmem:[%s8118_s1] ss:$0 sm:$0xff]  ;;  %v5552_v9 = vld [vmem:[#allocation6 + $0x4] ss:$48 sps:$4 sm:$0xff]  }
  0x37   :  { %v6026_v7 = vld [vmem:[%s8119_s2] ss:$0 sm:$0xff]  ;;  %1778 = vmatprep.mubr.bf16.mxu0 %v5552_v9  ;;  %v5555_v12 = vld [vmem:[#allocation6 + $0xc] ss:$48 sps:$4 sm:$0xff]   ;;  %v8262_v13 = vmov 1.0|1.0  }
  0x38   :  { %v6012_v1 = vshrl.u32 %v69_v0, 7  ;;  %1851 = vmatprep.mubr.bf16.mxu1 %v5555_v12  ;;  %v8412_v15 = vmov 0  ;;  %v8416_v21 = vmov 0  ;;  %v8420_v27 = vmov 0  ;;  %v5700_v10 = vld [vmem:[#allocation3 + $0x20] ss:$48 sps:$4 sm:$0xff]  }
  0x39   :  { %v8422_v30 = vmov 0  ;;  %v8424_v33 = vmov 0  ;;  %v8426_v36 = vmov 0  ;;  %v8428_v39 = vmov 0  ;;  %v5712_v18 = vld [vmem:[#allocation3 + $0xe4] ss:$48 sps:$4 sm:$0xff]  }
  0x3a   :  { %v86_v2 = vadd.s32 128, %v6012_v1  ;;  %v87_v3 = vadd.s32 136, %v6012_v1  ;;  %v118_v4 = vadd.s32 384, %v6012_v1  ;;  %v119_v5 = vadd.s32 392, %v6012_v1  ;;  %s5924_s20 = smov [#allocation9]  }
  0x3b   :  { %v71_v8 = vadd.s32 8, %v6012_v1  ;;  %v102_v11 = vadd.s32 256, %v6012_v1  ;;  %vm266_vm12 = vcmp.eq.s32.totalorder %v6012_v1, %v6021_v6  ;;  %vm462_vm13 = vcmp.eq.s32.totalorder %v6012_v1, %v6026_v7  ;;  %s3755_s4 = sshll.u32 %s5924_s20, 4  ;;  %s3756_s4 = int_to_ptr.vmem [resolvable:$true] %s3755_s4 }
  0x3c   :  { %vm282_vm0 = vcmp.eq.s32.totalorder %v86_v2, %v6021_v6  ;;  %vm283_vm1 = vcmp.eq.s32.totalorder %v87_v3, %v6021_v6  ;;  %vm478_vm2 = vcmp.eq.s32.totalorder %v86_v2, %v6026_v7  ;;  %vm479_vm3 = vcmp.eq.s32.totalorder %v87_v3, %v6026_v7  ;;  %s5890_s21 = scalar_lea.vmem %s3756_s4, 16  ;;  %s5894_s22 = scalar_lea.vmem %s3756_s4, 32 }
  0x3d   :  { %vm670_vm4 = vmor %vm282_vm0, %vm478_vm2  ;;  %vm314_vm5 = vcmp.eq.s32.totalorder %v118_v4, %v6021_v6  ;;  %vm510_vm6 = vcmp.eq.s32.totalorder %v118_v4, %v6026_v7  ;;  %vm315_vm8 = vcmp.eq.s32.totalorder %v119_v5, %v6021_v6  ;;  %vm511_vm9 = vcmp.eq.s32.totalorder %v119_v5, %v6026_v7  ;;  %p5891_p10 = scmp.ne.s32.totalorder %s3756_s4, %s5890_s21  ;;  %p5895_p11 = scmp.lt.s32.totalorder %s3756_s4, %s3756_s4 }
  0x3e   :  { %vm671_vm7 = vmor %vm283_vm1, %vm479_vm3  ;;  %v103_v14 = vadd.s32 264, %v6012_v1  ;;  %vm267_vm15 = vcmp.eq.s32.totalorder %v71_v8, %v6021_v6  ;;  %vm463_vm0 = vcmp.eq.s32.totalorder %v71_v8, %v6026_v7  ;;  %v88_v16 = vadd.s32 144, %v6012_v1  ;;  %p5896_p12 = scmp.lt.s32.totalorder %s5894_s22, %s5890_s21 }
  0x3f   :  { %vm6037_vm10 = vmpackc.low %vm671_vm7, %vm670_vm4  ;;  %vm298_vm3 = vcmp.eq.s32.totalorder %v102_v11, %v6021_v6  ;;  %vm494_vm4 = vcmp.eq.s32.totalorder %v102_v11, %v6026_v7  ;;  %v89_v17 = vadd.s32 152, %v6012_v1  ;;  %v120_v19 = vadd.s32 400, %v6012_v1 }
  0x40   :  { %4715 = vmatprep.subr.msk.bf16.mxu0 %vm6037_vm10, %v8262_v13  ;;  %vm702_vm11 = vmor %vm314_vm5, %vm510_vm6  ;;  %vm299_vm6 = vcmp.eq.s32.totalorder %v103_v14, %v6021_v6  ;;  %vm495_vm7 = vcmp.eq.s32.totalorder %v103_v14, %v6026_v7  ;;  %v121_v20 = vadd.s32 408, %v6012_v1  ;;  %v72_v22 = vadd.s32 16, %v6012_v1  ;;  %p5897_p13 = por %p5896_p12, %p5895_p11 }
  0x41   :  { %vm703_vm14 = vmor %vm315_vm8, %vm511_vm9  ;;  %v73_v23 = vadd.s32 24, %v6012_v1  ;;  %v104_v25 = vadd.s32 272, %v6012_v1  ;;  %v105_v26 = vadd.s32 280, %v6012_v1  ;;  %v90_v28 = vadd.s32 160, %v6012_v1 }
  0x42   :  { %vm6052_vm1 = vmpackc.low %vm703_vm14, %vm702_vm11  ;;  %vm284_vm11 = vcmp.eq.s32.totalorder %v88_v16, %v6021_v6  ;;  %vm285_vm14 = vcmp.eq.s32.totalorder %v89_v17, %v6021_v6  ;;  %v91_v29 = vadd.s32 168, %v6012_v1  ;;  %v122_v31 = vadd.s32 416, %v6012_v1  ;;  %p5898_p0 = pnand %p5897_p13, %p5891_p10 }
  0x43   :  { %v8413_v15 = vsel %vm6052_vm1, 4294967295, %v8412_v15  ;;  %4761 = vmatprep.subr.msk.bf16.mxu1 %vm6052_vm1, %v8262_v13  ;;  %vm654_vm2 = vmor %vm266_vm12, %vm462_vm13  ;;  %vm480_vm12 = vcmp.eq.s32.totalorder %v88_v16, %v6026_v7  ;;  %v123_v32 = vadd.s32 424, %v6012_v1  ;;  %v74_v34 = vadd.s32 32, %v6012_v1 }
  0x44   :  { %vm655_vm5 = vmor %vm267_vm15, %vm463_vm0  ;;  %vm481_vm15 = vcmp.eq.s32.totalorder %v89_v17, %v6026_v7  ;;  %v75_v35 = vadd.s32 40, %v6012_v1  ;;  %v106_v37 = vadd.s32 288, %v6012_v1  ;;  %v107_v38 = vadd.s32 296, %v6012_v1 }
  0x45   :  { %vm6065_vm8 = vmpackc.low %vm655_vm5, %vm654_vm2  ;;  %v92_v40 = vadd.s32 176, %v6012_v1  ;;  %v93_v41 = vadd.s32 184, %v6012_v1  ;;  %v8430_v42 = vmov 0  ;;  %v124_v43 = vadd.s32 432, %v6012_v1 }
  0x46   :  { %4716 = vmatpush3.bf16.msk.msra.mxu0 %vm6065_vm8, %v8262_v13  ;;  %vm686_vm9 = vmor %vm298_vm3, %vm494_vm4  ;;  %vm316_vm3 = vcmp.eq.s32.totalorder %v120_v19, %v6021_v6  ;;  %vm512_vm4 = vcmp.eq.s32.totalorder %v120_v19, %v6026_v7  ;;  %v125_v44 = vadd.s32 440, %v6012_v1  ;;  %v8432_v45 = vmov 0 }
  0x47   :  { %vm687_vm13 = vmor %vm299_vm6, %vm495_vm7  ;;  %vm317_vm6 = vcmp.eq.s32.totalorder %v121_v20, %v6021_v6  ;;  %vm513_vm7 = vcmp.eq.s32.totalorder %v121_v20, %v6026_v7  ;;  %v76_v46 = vadd.s32 48, %v6012_v1  ;;  %v77_v47 = vadd.s32 56, %v6012_v1 }
  0x48   :  { %vm6078_vm0 = vmpackc.low %vm687_vm13, %vm686_vm9  ;;  %vm464_vm13 = vcmp.eq.s32.totalorder %v72_v22, %v6026_v7  ;;  %v8434_v48 = vmov 0  ;;  %v108_v49 = vadd.s32 304, %v6012_v1  ;;  %v109_v50 = vadd.s32 312, %v6012_v1 }
  0x49   :  { %v8417_v21 = vsel %vm6078_vm0, 4294967295, %v8416_v21  ;;  %4762 = vmatpush3.bf16.msk.msra.mxu1 %vm6078_vm0, %v8262_v13  ;;  %vm672_vm2 = vmor %vm284_vm11, %vm480_vm12  ;;  %vm268_vm12 = vcmp.eq.s32.totalorder %v72_v22, %v6021_v6  ;;  %vm496_vm0 = vcmp.eq.s32.totalorder %v104_v25, %v6026_v7  ;;  %v8436_v51 = vmov 0 }
  0x4a   :  { %vm673_vm5 = vmor %vm285_vm14, %vm481_vm15  ;;  %vm269_vm15 = vcmp.eq.s32.totalorder %v73_v23, %v6021_v6  ;;  %v94_v52 = vadd.s32 192, %v6012_v1  ;;  %v95_v53 = vadd.s32 200, %v6012_v1  ;;  %v8438_v54 = vmov 0 }
  0x4b   :  { %vm6091_vm9 = vmpackc.low %vm673_vm5, %vm672_vm2  ;;  %vm465_vm2 = vcmp.eq.s32.totalorder %v73_v23, %v6026_v7  ;;  %v126_v55 = vadd.s32 448, %v6012_v1  ;;  %v127_v56 = vadd.s32 456, %v6012_v1  ;;  %v8440_v57 = vmov 0 }
  0x4c   :  { %4717 = vmatprep.subr.msk.bf16.mxu0 %vm6091_vm9, %v8262_v13  ;;  %vm704_vm11 = vmor %vm316_vm3, %vm512_vm4  ;;  %vm300_vm4 = vcmp.eq.s32.totalorder %v104_v25, %v6021_v6  ;;  %v78_v58 = vadd.s32 64, %v6012_v1  ;;  %v79_v59 = vadd.s32 72, %v6012_v1  ;;  %v8443_v60 = vmov 0 }
  0x4d   :  { %vm705_vm14 = vmor %vm317_vm6, %vm513_vm7  ;;  %vm301_vm7 = vcmp.eq.s32.totalorder %v105_v26, %v6021_v6  ;;  %v110_v61 = vadd.s32 320, %v6012_v1  ;;  %v111_v62 = vadd.s32 328, %v6012_v1  ;;  %v8445_v63 = vmov 0 }
  0x4e   :  { %vm6104_vm5 = vmpackc.low %vm705_vm14, %vm704_vm11  ;;  %vm497_vm11 = vcmp.eq.s32.totalorder %v105_v26, %v6026_v7  ;;  %v96_v0 = vadd.s32 208, %v6012_v1  ;;  %v97_v2 = vadd.s32 216, %v6012_v1  ;;  %v8448_v3 = vmov 0 }
  0x4f   :  { %v8421_v27 = vsel %vm6104_vm5, 4294967295, %v8420_v27  ;;  %4763 = vmatprep.subr.msk.bf16.mxu1 %vm6104_vm5, %v8262_v13  ;;  %vm656_vm3 = vmor %vm268_vm12, %vm464_vm13  ;;  %vm286_vm13 = vcmp.eq.s32.totalorder %v90_v28, %v6021_v6  ;;  %vm482_vm5 = vcmp.eq.s32.totalorder %v90_v28, %v6026_v7  ;;  %v128_v4 = vadd.s32 464, %v6012_v1 }
  0x50   :  { %vm657_vm6 = vmor %vm269_vm15, %vm465_vm2  ;;  %vm287_vm2 = vcmp.eq.s32.totalorder %v91_v29, %v6021_v6  ;;  %v129_v5 = vadd.s32 472, %v6012_v1  ;;  %v8450_v8 = vmov 0  ;;  %v80_v9 = vadd.s32 80, %v6012_v1 }
  0x51   :  { %vm6117_vm14 = vmpackc.low %vm657_vm6, %vm656_vm3  ;;  %vm483_vm3 = vcmp.eq.s32.totalorder %v91_v29, %v6026_v7  ;;  %v81_v11 = vadd.s32 88, %v6012_v1  ;;  %v8453_v12 = vmov 0  ;;  %v112_v14 = vadd.s32 336, %v6012_v1 }
  0x52   :  { %v8423_v30 = vsel %vm6117_vm14, 4294967295, %v8422_v30  ;;  %4718 = vmatpush3.bf16.msk.msra.mxu0 %vm6117_vm14, %v8262_v13  ;;  %vm688_vm12 = vmor %vm300_vm4, %vm496_vm0  ;;  %vm318_vm4 = vcmp.eq.s32.totalorder %v122_v31, %v6021_v6  ;;  %vm514_vm14 = vcmp.eq.s32.totalorder %v122_v31, %v6026_v7  ;;  %v113_v16 = vadd.s32 344, %v6012_v1 }
  0x53   :  { %vm689_vm15 = vmor %vm301_vm7, %vm497_vm11  ;;  %vm319_vm11 = vcmp.eq.s32.totalorder %v123_v32, %v6021_v6  ;;  %v8455_v17 = vmov 0  ;;  %v98_v19 = vadd.s32 224, %v6012_v1  ;;  %v99_v20 = vadd.s32 232, %v6012_v1 }
  0x54   :  { %vm6130_vm6 = vmpackc.low %vm689_vm15, %vm688_vm12  ;;  %vm515_vm12 = vcmp.eq.s32.totalorder %v123_v32, %v6026_v7  ;;  %v8458_v22 = vmov 0  ;;  %v130_v23 = vadd.s32 480, %v6012_v1  ;;  %v131_v25 = vadd.s32 488, %v6012_v1 }
  0x55   :  { %v8425_v33 = vsel %vm6130_vm6, 4294967295, %v8424_v33  ;;  %4764 = vmatpush3.bf16.msk.msra.mxu1 %vm6130_vm6, %v8262_v13  ;;  %vm674_vm0 = vmor %vm286_vm13, %vm482_vm5  ;;  %vm270_vm13 = vcmp.eq.s32.totalorder %v74_v34, %v6021_v6  ;;  %vm466_vm6 = vcmp.eq.s32.totalorder %v74_v34, %v6026_v7  ;;  %v8461_v26 = vmov 0 }
  0x56   :  { %vm675_vm7 = vmor %vm287_vm2, %vm483_vm3  ;;  %vm271_vm3 = vcmp.eq.s32.totalorder %v75_v35, %v6021_v6  ;;  %v82_v28 = vadd.s32 96, %v6012_v1  ;;  %v83_v29 = vadd.s32 104, %v6012_v1  ;;  %v8463_v31 = vmov 0 }
  0x57   :  { %vm6143_vm15 = vmpackc.low %vm675_vm7, %vm674_vm0  ;;  %vm467_vm0 = vcmp.eq.s32.totalorder %v75_v35, %v6026_v7  ;;  %v114_v32 = vadd.s32 352, %v6012_v1  ;;  %v115_v34 = vadd.s32 360, %v6012_v1  ;;  %v8466_v35 = vmov 0 }
  0x58   :  { %v8427_v36 = vsel %vm6143_vm15, 4294967295, %v8426_v36  ;;  %4719 = vmatprep.subr.msk.bf16.mxu0 %vm6143_vm15, %v8262_v13  ;;  %vm706_vm5 = vmor %vm318_vm4, %vm514_vm14  ;;  %vm302_vm4 = vcmp.eq.s32.totalorder %v106_v37, %v6021_v6  ;;  %vm498_vm15 = vcmp.eq.s32.totalorder %v106_v37, %v6026_v7  ;;  %v100_v37 = vadd.s32 240, %v6012_v1 }
  0x59   :  { %vm707_vm2 = vmor %vm319_vm11, %vm515_vm12  ;;  %vm303_vm12 = vcmp.eq.s32.totalorder %v107_v38, %v6021_v6 }
  0x5a   :  { %vm6156_vm7 = vmpackc.low %vm707_vm2, %vm706_vm5  ;;  %vm499_vm5 = vcmp.eq.s32.totalorder %v107_v38, %v6026_v7  ;;  %v101_v38 = vadd.s32 248, %v6012_v1 }
  0x5b   :  { %v8429_v39 = vsel %vm6156_vm7, 4294967295, %v8428_v39  ;;  %4765 = vmatprep.subr.msk.bf16.mxu1 %vm6156_vm7, %v8262_v13  ;;  %vm658_vm14 = vmor %vm270_vm13, %vm466_vm6  ;;  %vm288_vm13 = vcmp.eq.s32.totalorder %v92_v40, %v6021_v6  ;;  %vm484_vm7 = vcmp.eq.s32.totalorder %v92_v40, %v6026_v7  ;;  %v8469_v40 = vmov 0 }
  0x5c   :  { %vm659_vm11 = vmor %vm271_vm3, %vm467_vm0  ;;  %vm289_vm0 = vcmp.eq.s32.totalorder %v93_v41, %v6021_v6 }
  0x5d   :  { %vm6169_vm2 = vmpackc.low %vm659_vm11, %vm658_vm14  ;;  %vm485_vm14 = vcmp.eq.s32.totalorder %v93_v41, %v6026_v7  ;;  %v132_v41 = vadd.s32 496, %v6012_v1 }
  0x5e   :  { %v8431_v42 = vsel %vm6169_vm2, 4294967295, %v8430_v42  ;;  %4720 = vmatpush3.bf16.msk.msra.mxu0 %vm6169_vm2, %v8262_v13  ;;  %vm690_vm6 = vmor %vm302_vm4, %vm498_vm15  ;;  %vm320_vm4 = vcmp.eq.s32.totalorder %v124_v43, %v6021_v6  ;;  %vm516_vm2 = vcmp.eq.s32.totalorder %v124_v43, %v6026_v7  ;;  %v133_v43 = vadd.s32 504, %v6012_v1 }
  0x5f   :  { %vm691_vm3 = vmor %vm303_vm12, %vm499_vm5  ;;  %vm321_vm5 = vcmp.eq.s32.totalorder %v125_v44, %v6021_v6 }
  0x60   :  { %vm6182_vm11 = vmpackc.low %vm691_vm3, %vm690_vm6  ;;  %vm517_vm6 = vcmp.eq.s32.totalorder %v125_v44, %v6026_v7  ;;  %v8472_v44 = vmov 0 }
  0x61   :  { %v8433_v45 = vsel %vm6182_vm11, 4294967295, %v8432_v45  ;;  %4766 = vmatpush3.bf16.msk.msra.mxu1 %vm6182_vm11, %v8262_v13  ;;  %vm676_vm15 = vmor %vm288_vm13, %vm484_vm7  ;;  %vm272_vm13 = vcmp.eq.s32.totalorder %v76_v46, %v6021_v6  ;;  %vm468_vm11 = vcmp.eq.s32.totalorder %v76_v46, %v6026_v7  ;;  %v84_v46 = vadd.s32 112, %v6012_v1 }
  0x62   :  { %vm677_vm12 = vmor %vm289_vm0, %vm485_vm14  ;;  %vm273_vm14 = vcmp.eq.s32.totalorder %v77_v47, %v6021_v6 }
  0x63   :  { %vm6195_vm3 = vmpackc.low %vm677_vm12, %vm676_vm15  ;;  %vm469_vm15 = vcmp.eq.s32.totalorder %v77_v47, %v6026_v7  ;;  %v85_v47 = vadd.s32 120, %v6012_v1 }
  0x64   :  { %v8435_v48 = vsel %vm6195_vm3, 4294967295, %v8434_v48  ;;  %4721 = vmatprep.subr.msk.bf16.mxu0 %vm6195_vm3, %v8262_v13  ;;  %vm708_vm7 = vmor %vm320_vm4, %vm516_vm2  ;;  %vm304_vm4 = vcmp.eq.s32.totalorder %v108_v49, %v6021_v6  ;;  %vm500_vm3 = vcmp.eq.s32.totalorder %v108_v49, %v6026_v7  ;;  %v8475_v49 = vmov 0 }
  0x65   :  { %vm709_vm0 = vmor %vm321_vm5, %vm517_vm6  ;;  %vm305_vm6 = vcmp.eq.s32.totalorder %v109_v50, %v6021_v6 }
  0x66   :  { %vm6208_vm12 = vmpackc.low %vm709_vm0, %vm708_vm7  ;;  %vm501_vm7 = vcmp.eq.s32.totalorder %v109_v50, %v6026_v7  ;;  %v116_v50 = vadd.s32 368, %v6012_v1 }
  0x67   :  { %v8437_v51 = vsel %vm6208_vm12, 4294967295, %v8436_v51  ;;  %4767 = vmatprep.subr.msk.bf16.mxu1 %vm6208_vm12, %v8262_v13  ;;  %vm660_vm2 = vmor %vm272_vm13, %vm468_vm11  ;;  %vm290_vm13 = vcmp.eq.s32.totalorder %v94_v52, %v6021_v6  ;;  %vm486_vm12 = vcmp.eq.s32.totalorder %v94_v52, %v6026_v7  ;;  %v117_v52 = vadd.s32 376, %v6012_v1 }
  0x68   :  { %vm661_vm5 = vmor %vm273_vm14, %vm469_vm15  ;;  %vm291_vm15 = vcmp.eq.s32.totalorder %v95_v53, %v6021_v6 }
  0x69   :  { %vm6221_vm0 = vmpackc.low %vm661_vm5, %vm660_vm2  ;;  %vm487_vm2 = vcmp.eq.s32.totalorder %v95_v53, %v6026_v7  ;;  %v8478_v53 = vmov 0 }
  0x6a   :  { %v8439_v54 = vsel %vm6221_vm0, 4294967295, %v8438_v54  ;;  %4722 = vmatpush3.bf16.msk.msra.mxu0 %vm6221_vm0, %v8262_v13  ;;  %vm692_vm11 = vmor %vm304_vm4, %vm500_vm3  ;;  %vm322_vm4 = vcmp.eq.s32.totalorder %v126_v55, %v6021_v6  ;;  %vm518_vm0 = vcmp.eq.s32.totalorder %v126_v55, %v6026_v7  ;;  %v150_v55 = vadd.s32 640, %v6012_v1 }
  0x6b   :  { %vm693_vm14 = vmor %vm305_vm6, %vm501_vm7  ;;  %vm323_vm7 = vcmp.eq.s32.totalorder %v127_v56, %v6021_v6 }
  0x6c   :  { %vm6234_vm5 = vmpackc.low %vm693_vm14, %vm692_vm11  ;;  %vm519_vm11 = vcmp.eq.s32.totalorder %v127_v56, %v6026_v7  ;;  %v5550_v56 = vld [vmem:[#allocation6] ss:$48 sps:$4 sm:$0xff]  }
  0x6d   :  { %v8441_v57 = vsel %vm6234_vm5, 4294967295, %v8440_v57  ;;  %4768 = vmatpush3.bf16.msk.msra.mxu1 %vm6234_vm5, %v8262_v13  ;;  %vm678_vm3 = vmor %vm290_vm13, %vm486_vm12  ;;  %vm274_vm13 = vcmp.eq.s32.totalorder %v78_v58, %v6021_v6  ;;  %vm470_vm5 = vcmp.eq.s32.totalorder %v78_v58, %v6026_v7  ;;  %v151_v58 = vadd.s32 648, %v6012_v1 }
  0x6e   :  { %8442 = vst [vmem:[#allocation13_spill] sm:$0xff] %v8441_v57  ;;  %vm679_vm6 = vmor %vm291_vm15, %vm487_vm2  ;;  %vm275_vm2 = vcmp.eq.s32.totalorder %v79_v59, %v6021_v6 }
  0x6f   :  { %vm6247_vm14 = vmpackc.low %vm679_vm6, %vm678_vm3  ;;  %vm471_vm3 = vcmp.eq.s32.totalorder %v79_v59, %v6026_v7  ;;  %v5556_v59 = vld [vmem:[#allocation6 + $0x64] ss:$48 sps:$4 sm:$0xff]  }
  0x70   :  { %v8444_v60 = vsel %vm6247_vm14, 4294967295, %v8443_v60  ;;  %4723 = vmatprep.subr.msk.bf16.mxu0 %vm6247_vm14, %v8262_v13  ;;  %vm710_vm12 = vmor %vm322_vm4, %vm518_vm0  ;;  %vm306_vm4 = vcmp.eq.s32.totalorder %v110_v61, %v6021_v6  ;;  %vm502_vm14 = vcmp.eq.s32.totalorder %v110_v61, %v6026_v7  ;;  %v8481_v61 = vmov 0 }
  0x71   :  { %vm711_vm15 = vmor %vm323_vm7, %vm519_vm11  ;;  %vm307_vm11 = vcmp.eq.s32.totalorder %v111_v62, %v6021_v6 }
  0x72   :  { %vm6260_vm6 = vmpackc.low %vm711_vm15, %vm710_vm12  ;;  %vm503_vm12 = vcmp.eq.s32.totalorder %v111_v62, %v6026_v7  ;;  %v134_v62 = vadd.s32 512, %v6012_v1 }
  0x73   :  { %v8446_v63 = vsel %vm6260_vm6, 4294967295, %v8445_v63  ;;  %4769 = vmatprep.subr.msk.bf16.mxu1 %vm6260_vm6, %v8262_v13  ;;  %vm662_vm0 = vmor %vm274_vm13, %vm470_vm5  ;;  %vm292_vm13 = vcmp.eq.s32.totalorder %v96_v0, %v6021_v6  ;;  %vm488_vm6 = vcmp.eq.s32.totalorder %v96_v0, %v6026_v7  ;;  %v5553_v0 = vld [vmem:[#allocation6 + $0x8] ss:$48 sps:$4 sm:$0xff]  }
  0x74   :  { %8447 = vst [vmem:[#allocation14_spill] sm:$0xff] %v8446_v63  ;;  %vm663_vm7 = vmor %vm275_vm2, %vm471_vm3  ;;  %vm293_vm3 = vcmp.eq.s32.totalorder %v97_v2, %v6021_v6 }
  0x75   :  { %vm6273_vm15 = vmpackc.low %vm663_vm7, %vm662_vm0  ;;  %vm489_vm0 = vcmp.eq.s32.totalorder %v97_v2, %v6026_v7  ;;  %v135_v2 = vadd.s32 520, %v6012_v1 }
  0x76   :  { %v8449_v3 = vsel %vm6273_vm15, 4294967295, %v8448_v3  ;;  %4724 = vmatpush3.bf16.msk.msra.mxu0 %vm6273_vm15, %v8262_v13  ;;  %vm694_vm5 = vmor %vm306_vm4, %vm502_vm14  ;;  %vm324_vm4 = vcmp.eq.s32.totalorder %v128_v4, %v6021_v6  ;;  %vm520_vm15 = vcmp.eq.s32.totalorder %v128_v4, %v6026_v7  ;;  %v8484_v4 = vmov 0 }
  0x77   :  { %vm695_vm2 = vmor %vm307_vm11, %vm503_vm12  ;;  %vm325_vm12 = vcmp.eq.s32.totalorder %v129_v5, %v6021_v6 }
  0x78   :  { %vm6286_vm7 = vmpackc.low %vm695_vm2, %vm694_vm5  ;;  %vm521_vm5 = vcmp.eq.s32.totalorder %v129_v5, %v6026_v7  ;;  %v182_v5 = vadd.s32 896, %v6012_v1 }
  0x79   :  { %v8451_v8 = vsel %vm6286_vm7, 4294967295, %v8450_v8  ;;  %4770 = vmatpush3.bf16.msk.msra.mxu1 %vm6286_vm7, %v8262_v13  ;;  %vm680_vm14 = vmor %vm292_vm13, %vm488_vm6  ;;  %vm276_vm13 = vcmp.eq.s32.totalorder %v80_v9, %v6021_v6  ;;  %vm472_vm7 = vcmp.eq.s32.totalorder %v80_v9, %v6026_v7  ;;  %v183_v9 = vadd.s32 904, %v6012_v1 }
  0x7a   :  { %8452 = vst [vmem:[#allocation15_spill] sm:$0xff] %v8451_v8  ;;  %vm681_vm11 = vmor %vm293_vm3, %vm489_vm0  ;;  %vm277_vm0 = vcmp.eq.s32.totalorder %v81_v11, %v6021_v6 }
  0x7b   :  { %vm6299_vm2 = vmpackc.low %vm681_vm11, %vm680_vm14  ;;  %vm473_vm14 = vcmp.eq.s32.totalorder %v81_v11, %v6026_v7  ;;  %v5558_v11 = vld [vmem:[#allocation6 + $0x6c] ss:$48 sps:$4 sm:$0xff]  }
  0x7c   :  { %v8454_v12 = vsel %vm6299_vm2, 4294967295, %v8453_v12  ;;  %4725 = vmatprep.subr.msk.bf16.mxu0 %vm6299_vm2, %v8262_v13  ;;  %vm712_vm6 = vmor %vm324_vm4, %vm520_vm15  ;;  %vm308_vm4 = vcmp.eq.s32.totalorder %v112_v14, %v6021_v6  ;;  %vm504_vm2 = vcmp.eq.s32.totalorder %v112_v14, %v6026_v7  ;;  %v8487_v14 = vmov 0 }
  0x7d   :  { %vm713_vm3 = vmor %vm325_vm12, %vm521_vm5  ;;  %vm309_vm5 = vcmp.eq.s32.totalorder %v113_v16, %v6021_v6 }
  0x7e   :  { %vm6312_vm11 = vmpackc.low %vm713_vm3, %vm712_vm6  ;;  %vm505_vm6 = vcmp.eq.s32.totalorder %v113_v16, %v6026_v7  ;;  %v166_v16 = vadd.s32 768, %v6012_v1 }
  0x7f   :  { %v8456_v17 = vsel %vm6312_vm11, 4294967295, %v8455_v17  ;;  %4771 = vmatprep.subr.msk.bf16.mxu1 %vm6312_vm11, %v8262_v13  ;;  %vm664_vm15 = vmor %vm276_vm13, %vm472_vm7  ;;  %vm294_vm13 = vcmp.eq.s32.totalorder %v98_v19, %v6021_v6  ;;  %vm490_vm11 = vcmp.eq.s32.totalorder %v98_v19, %v6026_v7  ;;  %v5560_v19 = vld [vmem:[#allocation6 + $0x60] ss:$48 sps:$4 sm:$0xff]  }
  0x80   :  { %8457 = vst [vmem:[#allocation16_spill] sm:$0xff] %v8456_v17  ;;  %vm665_vm12 = vmor %vm277_vm0, %vm473_vm14  ;;  %vm295_vm14 = vcmp.eq.s32.totalorder %v99_v20, %v6021_v6 }
  0x81   :  { %vm6325_vm3 = vmpackc.low %vm665_vm12, %vm664_vm15  ;;  %vm491_vm15 = vcmp.eq.s32.totalorder %v99_v20, %v6026_v7  ;;  %v6466_v20 = vld [vmem:[%s8118_s1] ss:$0 sm:$0xff] }
  0x82   :  { %v8459_v22 = vsel %vm6325_vm3, 4294967295, %v8458_v22  ;;  %4726 = vmatpush3.bf16.msk.msra.mxu0 %vm6325_vm3, %v8262_v13  ;;  %vm696_vm7 = vmor %vm308_vm4, %vm504_vm2  ;;  %vm326_vm4 = vcmp.eq.s32.totalorder %v130_v23, %v6021_v6  ;;  %vm522_vm3 = vcmp.eq.s32.totalorder %v130_v23, %v6026_v7  ;;  %v167_v23 = vadd.s32 776, %v6012_v1 }
  0x83   :  { %8460 = vst [vmem:[#allocation17_spill] sm:$0xff] %v8459_v22  ;;  %vm697_vm0 = vmor %vm309_vm5, %vm505_vm6  ;;  %vm327_vm6 = vcmp.eq.s32.totalorder %v131_v25, %v6021_v6 }
  0x84   :  { %vm6338_vm12 = vmpackc.low %vm697_vm0, %vm696_vm7  ;;  %vm523_vm7 = vcmp.eq.s32.totalorder %v131_v25, %v6026_v7  ;;  %v5562_v25 = vld [vmem:[#allocation6 + $0xc4] ss:$48 sps:$4 sm:$0xff]  }
  0x85   :  { %v8462_v26 = vsel %vm6338_vm12, 4294967295, %v8461_v26  ;;  %4772 = vmatpush3.bf16.msk.msra.mxu1 %vm6338_vm12, %v8262_v13  ;;  %vm682_vm2 = vmor %vm294_vm13, %vm490_vm11  ;;  %vm278_vm13 = vcmp.eq.s32.totalorder %v82_v28, %v6021_v6  ;;  %vm474_vm12 = vcmp.eq.s32.totalorder %v82_v28, %v6026_v7  ;;  %v8490_v28 = vmov 0 }
  0x86   :  { %vm683_vm5 = vmor %vm295_vm14, %vm491_vm15  ;;  %vm279_vm15 = vcmp.eq.s32.totalorder %v83_v29, %v6021_v6 }
  0x87   :  { %vm6351_vm0 = vmpackc.low %vm683_vm5, %vm682_vm2  ;;  %vm475_vm2 = vcmp.eq.s32.totalorder %v83_v29, %v6026_v7  ;;  %v152_v29 = vadd.s32 656, %v6012_v1 }
  0x88   :  { %v8464_v31 = vsel %vm6351_vm0, 4294967295, %v8463_v31  ;;  %4727 = vmatprep.subr.msk.bf16.mxu0 %vm6351_vm0, %v8262_v13  ;;  %vm714_vm11 = vmor %vm326_vm4, %vm522_vm3  ;;  %vm310_vm4 = vcmp.eq.s32.totalorder %v114_v32, %v6021_v6  ;;  %vm506_vm0 = vcmp.eq.s32.totalorder %v114_v32, %v6026_v7  ;;  %v5561_v32 = vld [vmem:[#allocation6 + $0x68] ss:$48 sps:$4 sm:$0xff]  }
  0x89   :  { %8465 = vst [vmem:[#allocation18_spill] sm:$0xff] %v8464_v31  ;;  %vm715_vm14 = vmor %vm327_vm6, %vm523_vm7  ;;  %vm311_vm7 = vcmp.eq.s32.totalorder %v115_v34, %v6021_v6 }
  0x8a   :  { %vm6364_vm5 = vmpackc.low %vm715_vm14, %vm714_vm11  ;;  %vm507_vm11 = vcmp.eq.s32.totalorder %v115_v34, %v6026_v7  ;;  %v5564_v34 = vld [vmem:[#allocation6 + $0xcc] ss:$48 sps:$4 sm:$0xff]  }
  0x8b   :  { %v8467_v35 = vsel %vm6364_vm5, 4294967295, %v8466_v35  ;;  %4773 = vmatprep.subr.msk.bf16.mxu1 %vm6364_vm5, %v8262_v13  ;;  %vm666_vm3 = vmor %vm278_vm13, %vm474_vm12  ;;  %vm296_vm13 = vcmp.eq.s32.totalorder %v100_v37, %v6021_v6  ;;  %vm492_vm5 = vcmp.eq.s32.totalorder %v100_v37, %v6026_v7  ;;  %v8492_v37 = vmov 0 }
  0x8c   :  { %8468 = vst [vmem:[#allocation19_spill] sm:$0xff] %v8467_v35  ;;  %vm667_vm6 = vmor %vm279_vm15, %vm475_vm2  ;;  %vm297_vm2 = vcmp.eq.s32.totalorder %v101_v38, %v6021_v6 }
  0x8d   :  { %vm6377_vm14 = vmpackc.low %vm667_vm6, %vm666_vm3  ;;  %vm493_vm3 = vcmp.eq.s32.totalorder %v101_v38, %v6026_v7  ;;  %v136_v38 = vadd.s32 528, %v6012_v1 }
  0x8e   :  { %v8470_v40 = vsel %vm6377_vm14, 4294967295, %v8469_v40  ;;  %4728 = vmatpush3.bf16.msk.msra.mxu0 %vm6377_vm14, %v8262_v13  ;;  %vm698_vm12 = vmor %vm310_vm4, %vm506_vm0  ;;  %vm328_vm4 = vcmp.eq.s32.totalorder %v132_v41, %v6021_v6  ;;  %vm524_vm14 = vcmp.eq.s32.totalorder %v132_v41, %v6026_v7  ;;  %v137_v41 = vadd.s32 536, %v6012_v1 }
  0x8f   :  { %8471 = vst [vmem:[#allocation20_spill] sm:$0xff] %v8470_v40  ;;  %vm699_vm15 = vmor %vm311_vm7, %vm507_vm11  ;;  %vm329_vm11 = vcmp.eq.s32.totalorder %v133_v43, %v6021_v6 }
  0x90   :  { %vm6390_vm6 = vmpackc.low %vm699_vm15, %vm698_vm12  ;;  %vm525_vm12 = vcmp.eq.s32.totalorder %v133_v43, %v6026_v7  ;;  %v8495_v43 = vmov 0 }
  0x91   :  { %v8473_v44 = vsel %vm6390_vm6, 4294967295, %v8472_v44  ;;  %4774 = vmatpush3.bf16.msk.msra.mxu1 %vm6390_vm6, %v8262_v13  ;;  %vm684_vm0 = vmor %vm296_vm13, %vm492_vm5  ;;  %vm280_vm13 = vcmp.eq.s32.totalorder %v84_v46, %v6021_v6  ;;  %vm476_vm6 = vcmp.eq.s32.totalorder %v84_v46, %v6026_v7  ;;  %v184_v46 = vadd.s32 912, %v6012_v1 }
  0x92   :  { %8474 = vst [vmem:[#allocation21_spill] sm:$0xff] %v8473_v44  ;;  %vm685_vm7 = vmor %vm297_vm2, %vm493_vm3  ;;  %vm281_vm3 = vcmp.eq.s32.totalorder %v85_v47, %v6021_v6 }
  0x93   :  { %vm6403_vm15 = vmpackc.low %vm685_vm7, %vm684_vm0  ;;  %vm477_vm0 = vcmp.eq.s32.totalorder %v85_v47, %v6026_v7  ;;  %v185_v47 = vadd.s32 920, %v6012_v1 }
  0x94   :  { %v8476_v49 = vsel %vm6403_vm15, 4294967295, %v8475_v49  ;;  %4729 = vmatprep.subr.msk.bf16.mxu0 %vm6403_vm15, %v8262_v13  ;;  %vm716_vm5 = vmor %vm328_vm4, %vm524_vm14  ;;  %vm312_vm4 = vcmp.eq.s32.totalorder %v116_v50, %v6021_v6  ;;  %vm508_vm15 = vcmp.eq.s32.totalorder %v116_v50, %v6026_v7  ;;  %v5566_v50 = vld [vmem:[#allocation6 + $0xc0] ss:$48 sps:$4 sm:$0xff]  }
  0x95   :  { %8477 = vst [vmem:[#allocation22_spill] sm:$0xff] %v8476_v49  ;;  %vm717_vm2 = vmor %vm329_vm11, %vm525_vm12  ;;  %vm313_vm12 = vcmp.eq.s32.totalorder %v117_v52, %v6021_v6 }
  0x96   :  { %vm6416_vm7 = vmpackc.low %vm717_vm2, %vm716_vm5  ;;  %vm509_vm5 = vcmp.eq.s32.totalorder %v117_v52, %v6026_v7  ;;  %v5568_v52 = vld [vmem:[#allocation6 + $0x124] ss:$48 sps:$4 sm:$0xff]  }
  0x97   :  { %v8479_v53 = vsel %vm6416_vm7, 4294967295, %v8478_v53  ;;  %4775 = vmatprep.subr.msk.bf16.mxu1 %vm6416_vm7, %v8262_v13  ;;  %vm668_vm14 = vmor %vm280_vm13, %vm476_vm6  ;;  %vm346_vm13 = vcmp.eq.s32.totalorder %v150_v55, %v6021_v6 }
  0x98   :  { %8480 = vst [vmem:[#allocation23_spill] sm:$0xff] %v8479_v53  ;;  %vm669_vm11 = vmor %vm281_vm3, %vm477_vm0  ;;  %vm542_vm3 = vcmp.eq.s32.totalorder %v150_v55, %v6026_v7  ;;  %v8497_v55 = vmov 0 }
  0x99   :  { %vm6429_vm2 = vmpackc.low %vm669_vm11, %vm668_vm14  ;;  %vm347_vm14 = vcmp.eq.s32.totalorder %v151_v58, %v6021_v6  ;;  %vm543_vm11 = vcmp.eq.s32.totalorder %v151_v58, %v6026_v7  ;;  %v169_v58 = vadd.s32 792, %v6012_v1 }
  0x9a   :  { %v8482_v61 = vsel %vm6429_vm2, 4294967295, %v8481_v61  ;;  %4730 = vmatpush3.bf16.msk.msra.mxu0 %vm6429_vm2, %v8262_v13  ;;  %vm700_vm6 = vmor %vm312_vm4, %vm508_vm15  ;;  %vm330_vm4 = vcmp.eq.s32.totalorder %v134_v62, %v6021_v6 }
  0x9b   :  { %8483 = vst [vmem:[#allocation24_spill] sm:$0xff] %v8482_v61  ;;  %vm701_vm0 = vmor %vm313_vm12, %vm509_vm5  ;;  %vm526_vm12 = vcmp.eq.s32.totalorder %v134_v62, %v6026_v7  ;;  %v5570_v62 = vld [vmem:[#allocation6 + $0x12c] ss:$48 sps:$4 sm:$0xff]  }
  0x9c   :  { %vm6442_vm7 = vmpackc.low %vm701_vm0, %vm700_vm6  ;;  %vm331_vm6 = vcmp.eq.s32.totalorder %v135_v2, %v6021_v6  ;;  %vm527_vm0 = vcmp.eq.s32.totalorder %v135_v2, %v6026_v7  ;;  %v6472_v7 = vld [vmem:[%s8119_s2] ss:$0 sm:$0xff]  ;;  %v153_v6 = vadd.s32 664, %v6012_v1  ;;  %v154_v2 = vadd.s32 672, %v6012_v1 }
  0x9d   :  { %v8485_v4 = vsel %vm6442_vm7, 4294967295, %v8484_v4  ;;  %4776 = vmatpush3.bf16.msk.msra.mxu1 %vm6442_vm7, %v8262_v13  ;;  %1779 = vmatmul.mubr.bf16.vlgmr.msra.gmra.mrb[0].mxu0 %v5550_v56  ;;  %vm734_vm15 = vmor %vm346_vm13, %vm542_vm3  ;;  %vm378_vm3 = vcmp.eq.s32.totalorder %v182_v5, %v6466_v20  ;;  %vm362_vm7 = vcmp.eq.s32.totalorder %v166_v16, %v6466_v20  ;;  %v168_v56 = vadd.s32 784, %v6012_v1 }
  0x9e   :  { %8486 = vst [vmem:[#allocation25_spill] sm:$0xff] %v8485_v4  ;;  %vm735_vm5 = vmor %vm347_vm14, %vm543_vm11  ;;  %1786 = vmatprep.mubr.bf16.mxu0 %v5556_v59  ;;  %vm574_vm14 = vcmp.eq.s32.totalorder %v182_v5, %v6472_v7  ;;  %v5567_v59 = vld [vmem:[#allocation6 + $0xc8] ss:$48 sps:$4 sm:$0xff]   ;;  %v155_v5 = vadd.s32 680, %v6012_v1 }
  0x9f   :  { %vm6455_vm2 = vmpackc.low %vm735_vm5, %vm734_vm15  ;;  %vm379_vm15 = vcmp.eq.s32.totalorder %v183_v9, %v6466_v20 }
  0xa0   :  { %v8488_v14 = vsel %vm6455_vm2, 4294967295, %v8487_v14  ;;  %1852 = vmatmul.mubr.bf16.vlgmr.msra.gmra.mrb[0].mxu1 %v5553_v0  ;;  %4807 = vmatprep.subr.msk.bf16.mxu0 %vm6455_vm2, %v8262_v13  ;;  %vm718_vm13 = vmor %vm330_vm4, %vm526_vm12  ;;  %vm575_vm4 = vcmp.eq.s32.totalorder %v183_v9, %v6472_v7  ;;  %v8499_v0 = vmov 0  ;;  %v8501_v9 = vmov 0 }
  0xa1   :  { %8489 = vst [vmem:[#allocation26_spill] sm:$0xff] %v8488_v14  ;;  %vm719_vm11 = vmor %vm331_vm6, %vm527_vm0  ;;  %1859 = vmatprep.mubr.bf16.mxu1 %v5558_v11  ;;  %vm558_vm6 = vcmp.eq.s32.totalorder %v166_v16, %v6472_v7  ;;  %v138_v11 = vadd.s32 544, %v6012_v1  ;;  %v5572_v16 = vld [vmem:[#allocation6 + $0x120] ss:$48 sps:$4 sm:$0xff]  }
  0xa2   :  { %vm6480_vm12 = vmpackc.low %vm719_vm11, %vm718_vm13  ;;  %vm363_vm13 = vcmp.eq.s32.totalorder %v167_v23, %v6466_v20  ;;  %vm559_vm11 = vcmp.eq.s32.totalorder %v167_v23, %v6472_v7  ;;  %v5574_v23 = vld [vmem:[#allocation6 + $0x184] ss:$48 sps:$4 sm:$0xff]  }
  0xa3   :  { %v8491_v28 = vsel %vm6480_vm12, 4294967295, %v8490_v28  ;;  %4808 = vmatpush3.bf16.msk.msra.mxu0 %vm6480_vm12, %v8262_v13  ;;  %vm766_vm5 = vmor %vm378_vm3, %vm574_vm14  ;;  %vm348_vm14 = vcmp.eq.s32.totalorder %v152_v29, %v6466_v20 }
  0xa4   :  { %vm767_vm0 = vmor %vm379_vm15, %vm575_vm4  ;;  %vm544_vm15 = vcmp.eq.s32.totalorder %v152_v29, %v6472_v7  ;;  %v186_v29 = vadd.s32 928, %v6012_v1 }
  0xa5   :  { %vm6493_vm2 = vmpackc.low %vm767_vm0, %vm766_vm5  ;;  %1787 = vmatmul.mubr.bf16.gmra.mrb[4].mxu0 %v5560_v19  ;;  %vm349_vm5 = vcmp.eq.s32.totalorder %v153_v6, %v6466_v20  ;;  %vm545_vm0 = vcmp.eq.s32.totalorder %v153_v6, %v6472_v7  ;;  %v139_v19 = vadd.s32 552, %v6012_v1  ;;  %v187_v6 = vadd.s32 936, %v6012_v1 }
  0xa6   :  { %v8493_v37 = vsel %vm6493_vm2, 4294967295, %v8492_v37  ;;  %4853 = vmatprep.subr.msk.bf16.mxu1 %vm6493_vm2, %v8262_v13  ;;  %vm750_vm3 = vmor %vm362_vm7, %vm558_vm6  ;;  %1794 = vmatprep.mubr.bf16.mxu0 %v5562_v25  ;;  %vm332_vm6 = vcmp.eq.s32.totalorder %v136_v38, %v6466_v20  ;;  %v8503_v25 = vmov 0 }
  0xa7   :  { %8494 = vst [vmem:[#allocation27_spill] sm:$0xff] %v8493_v37  ;;  %vm751_vm4 = vmor %vm363_vm13, %vm559_vm11  ;;  %vm528_vm13 = vcmp.eq.s32.totalorder %v136_v38, %v6472_v7  ;;  %v8505_v38 = vmov 0 }
  0xa8   :  { %vm6506_vm12 = vmpackc.low %vm751_vm4, %vm750_vm3  ;;  %1860 = vmatmul.mubr.bf16.gmra.mrb[4].mxu1 %v5561_v32  ;;  %vm333_vm3 = vcmp.eq.s32.totalorder %v137_v41, %v6466_v20  ;;  %vm529_vm4 = vcmp.eq.s32.totalorder %v137_v41, %v6472_v7  ;;  %v5573_v32 = vld [vmem:[#allocation6 + $0x128] ss:$48 sps:$4 sm:$0xff]   ;;  %v170_v41 = vadd.s32 800, %v6012_v1 }
  0xa9   :  { %v8496_v43 = vsel %vm6506_vm12, 4294967295, %v8495_v43  ;;  %4854 = vmatpush3.bf16.msk.msra.mxu1 %vm6506_vm12, %v8262_v13  ;;  %vm736_vm7 = vmor %vm348_vm14, %vm544_vm15  ;;  %1867 = vmatprep.mubr.bf16.mxu1 %v5564_v34  ;;  %vm380_vm15 = vcmp.eq.s32.totalorder %v184_v46, %v6466_v20  ;;  %v5576_v34 = vld [vmem:[#allocation6 + $0x18c] ss:$48 sps:$4 sm:$0xff]  }
  0xaa   :  { %vm737_vm11 = vmor %vm349_vm5, %vm545_vm0  ;;  %vm576_vm5 = vcmp.eq.s32.totalorder %v184_v46, %v6472_v7  ;;  %v171_v46 = vadd.s32 808, %v6012_v1 }
  0xab   :  { %vm6519_vm2 = vmpackc.low %vm737_vm11, %vm736_vm7  ;;  %vm381_vm7 = vcmp.eq.s32.totalorder %v185_v47, %v6466_v20  ;;  %vm577_vm11 = vcmp.eq.s32.totalorder %v185_v47, %v6472_v7  ;;  %v5578_v47 = vld [vmem:[#allocation6 + $0x180] ss:$48 sps:$4 sm:$0xff]  }
  0xac   :  { %v8498_v55 = vsel %vm6519_vm2, 4294967295, %v8497_v55  ;;  %4809 = vmatprep.subr.msk.bf16.mxu0 %vm6519_vm2, %v8262_v13  ;;  %vm720_vm14 = vmor %vm332_vm6, %vm528_vm13  ;;  %vm364_vm13 = vcmp.eq.s32.totalorder %v168_v56, %v6466_v20 }
  0xad   :  { %vm721_vm0 = vmor %vm333_vm3, %vm529_vm4  ;;  %1795 = vmatmul.mubr.bf16.gmra.mrb[8].mxu0 %v5566_v50  ;;  %vm560_vm3 = vcmp.eq.s32.totalorder %v168_v56, %v6472_v7  ;;  %v8507_v50 = vmov 0  ;;  %v5582_v56 = vld [vmem:[#allocation6 + $0x14] ss:$48 sps:$4 sm:$0xff]  }
  0xae   :  { %vm6532_vm12 = vmpackc.low %vm721_vm0, %vm720_vm14  ;;  %1802 = vmatprep.mubr.bf16.mxu0 %v5568_v52  ;;  %vm365_vm14 = vcmp.eq.s32.totalorder %v169_v58, %v6466_v20  ;;  %vm561_vm0 = vcmp.eq.s32.totalorder %v169_v58, %v6472_v7  ;;  %v156_v52 = vadd.s32 688, %v6012_v1  ;;  %v157_v58 = vadd.s32 696, %v6012_v1 }
  0xaf   :  { %v8500_v0 = vsel %vm6532_vm12, 4294967295, %v8499_v0  ;;  %4810 = vmatpush3.bf16.msk.msra.mxu0 %vm6532_vm12, %v8262_v13  ;;  %vm768_vm6 = vmor %vm380_vm15, %vm576_vm5  ;;  %vm350_vm5 = vcmp.eq.s32.totalorder %v154_v2, %v6466_v20 }
  0xb0   :  { %vm769_vm4 = vmor %vm381_vm7, %vm577_vm11  ;;  %1868 = vmatmul.mubr.bf16.gmra.mrb[8].mxu1 %v5567_v59  ;;  %vm546_vm7 = vcmp.eq.s32.totalorder %v154_v2, %v6472_v7  ;;  %v5579_v59 = vld [vmem:[#allocation6 + $0x188] ss:$48 sps:$4 sm:$0xff]   ;;  %v140_v2 = vadd.s32 560, %v6012_v1 }
  0xb1   :  { %vm6545_vm2 = vmpackc.low %vm769_vm4, %vm768_vm6  ;;  %1875 = vmatprep.mubr.bf16.mxu1 %v5570_v62  ;;  %vm351_vm6 = vcmp.eq.s32.totalorder %v155_v5, %v6466_v20  ;;  %vm547_vm4 = vcmp.eq.s32.totalorder %v155_v5, %v6472_v7  ;;  %v8509_v62 = vmov 0  ;;  %v5585_v5 = vld [vmem:[#allocation6 + $0x1c] ss:$48 sps:$4 sm:$0xff]  }
  0xb2   :  { %v8502_v9 = vsel %vm6545_vm2, 4294967295, %v8501_v9  ;;  %4855 = vmatprep.subr.msk.bf16.mxu1 %vm6545_vm2, %v8262_v13  ;;  %vm752_vm15 = vmor %vm364_vm13, %vm560_vm3  ;;  %vm334_vm3 = vcmp.eq.s32.totalorder %v138_v11, %v6466_v20 }
  0xb3   :  { %vm753_vm11 = vmor %vm365_vm14, %vm561_vm0  ;;  %vm530_vm14 = vcmp.eq.s32.totalorder %v138_v11, %v6472_v7  ;;  %v141_v11 = vadd.s32 568, %v6012_v1 }
  0xb4   :  { %vm6558_vm12 = vmpackc.low %vm753_vm11, %vm752_vm15  ;;  %vm335_vm15 = vcmp.eq.s32.totalorder %v139_v19, %v6466_v20  ;;  %vm531_vm11 = vcmp.eq.s32.totalorder %v139_v19, %v6472_v7  ;;  %v188_v19 = vadd.s32 944, %v6012_v1 }
  0xb5   :  { %v8504_v25 = vsel %vm6558_vm12, 4294967295, %v8503_v25  ;;  %4856 = vmatpush3.bf16.msk.msra.mxu1 %vm6558_vm12, %v8262_v13  ;;  %vm738_vm13 = vmor %vm350_vm5, %vm546_vm7  ;;  %1803 = vmatmul.mubr.bf16.gmra.mrb[12].mxu0 %v5572_v16  ;;  %vm382_vm7 = vcmp.eq.s32.totalorder %v186_v29, %v6466_v20  ;;  %v8511_v16 = vmov 0 }
  0xb6   :  { %vm739_vm0 = vmor %vm351_vm6, %vm547_vm4  ;;  %1810 = vmatprep.mubr.bf16.mxu0 %v5574_v23  ;;  %vm578_vm6 = vcmp.eq.s32.totalorder %v186_v29, %v6472_v7  ;;  %v189_v23 = vadd.s32 952, %v6012_v1  ;;  %v8514_v29 = vmov 0 }
  0xb7   :  { %vm6571_vm2 = vmpackc.low %vm739_vm0, %vm738_vm13  ;;  %vm383_vm13 = vcmp.eq.s32.totalorder %v187_v6, %v6466_v20  ;;  %vm579_vm0 = vcmp.eq.s32.totalorder %v187_v6, %v6472_v7  ;;  %v173_v6 = vadd.s32 824, %v6012_v1 }
  0xb8   :  { %v8506_v38 = vsel %vm6571_vm2, 4294967295, %v8505_v38  ;;  %4811 = vmatprep.subr.msk.bf16.mxu0 %vm6571_vm2, %v8262_v13  ;;  %vm722_vm5 = vmor %vm334_vm3, %vm530_vm14  ;;  %1876 = vmatmul.mubr.bf16.gmra.mrb[12].mxu1 %v5573_v32  ;;  %vm366_vm14 = vcmp.eq.s32.totalorder %v170_v41, %v6466_v20  ;;  %v172_v32 = vadd.s32 816, %v6012_v1 }
  0xb9   :  { %vm723_vm4 = vmor %vm335_vm15, %vm531_vm11  ;;  %1883 = vmatprep.mubr.bf16.mxu1 %v5576_v34  ;;  %vm562_vm15 = vcmp.eq.s32.totalorder %v170_v41, %v6472_v7  ;;  %v8516_v34 = vmov 0  ;;  %v158_v41 = vadd.s32 704, %v6012_v1 }
  0xba   :  { %vm6584_vm12 = vmpackc.low %vm723_vm4, %vm722_vm5  ;;  %vm367_vm5 = vcmp.eq.s32.totalorder %v171_v46, %v6466_v20  ;;  %vm563_vm4 = vcmp.eq.s32.totalorder %v171_v46, %v6472_v7  ;;  %v159_v46 = vadd.s32 712, %v6012_v1 }
  0xbb   :  { %v8508_v50 = vsel %vm6584_vm12, 4294967295, %v8507_v50  ;;  %4812 = vmatpush3.bf16.msk.msra.mxu0 %vm6584_vm12, %v8262_v13  ;;  %vm770_vm3 = vmor %vm382_vm7, %vm578_vm6  ;;  %vm352_vm6 = vcmp.eq.s32.totalorder %v156_v52, %v6466_v20 }
  0xbc   :  { %vm771_vm11 = vmor %vm383_vm13, %vm579_vm0  ;;  %vm548_vm13 = vcmp.eq.s32.totalorder %v156_v52, %v6472_v7  ;;  %v142_v52 = vadd.s32 576, %v6012_v1 }
  0xbd   :  { %vm6597_vm2 = vmpackc.low %vm771_vm11, %vm770_vm3  ;;  %1811 = vmatmul.mubr.bf16.gmra.mrb[16].mxu0 %v5578_v47  ;;  %vm353_vm3 = vcmp.eq.s32.totalorder %v157_v58, %v6466_v20  ;;  %vm549_vm11 = vcmp.eq.s32.totalorder %v157_v58, %v6472_v7  ;;  %v8518_v47 = vmov 0  ;;  %v8521_v58 = vmov 0 }
  0xbe   :  { %v8510_v62 = vsel %vm6597_vm2, 4294967295, %v8509_v62  ;;  %4857 = vmatprep.subr.msk.bf16.mxu1 %vm6597_vm2, %v8262_v13  ;;  %vm754_vm7 = vmor %vm366_vm14, %vm562_vm15  ;;  %1924 = vmatprep.mubr.bf16.mxu0 %v5582_v56  ;;  %vm336_vm15 = vcmp.eq.s32.totalorder %v140_v2, %v6466_v20  ;;  %v143_v56 = vadd.s32 584, %v6012_v1 }
  0xbf   :  { %vm755_vm0 = vmor %vm367_vm5, %vm563_vm4  ;;  %vm532_vm5 = vcmp.eq.s32.totalorder %v140_v2, %v6472_v7  ;;  %v191_v2 = vadd.s32 968, %v6012_v1 }
  0xc0   :  { %vm6610_vm12 = vmpackc.low %vm755_vm0, %vm754_vm7  ;;  %1884 = vmatmul.mubr.bf16.gmra.mrb[16].mxu1 %v5579_v59  ;;  %vm337_vm7 = vcmp.eq.s32.totalorder %v141_v11, %v6466_v20  ;;  %vm533_vm0 = vcmp.eq.s32.totalorder %v141_v11, %v6472_v7  ;;  %v190_v59 = vadd.s32 960, %v6012_v1  ;;  %v174_v11 = vadd.s32 832, %v6012_v1 }
  0xc1   :  { %v8512_v16 = vsel %vm6610_vm12, 4294967295, %v8511_v16  ;;  %4858 = vmatpush3.bf16.msk.msra.mxu1 %vm6610_vm12, %v8262_v13  ;;  %vm740_vm14 = vmor %vm352_vm6, %vm548_vm13  ;;  %1997 = vmatprep.mubr.bf16.mxu1 %v5585_v5  ;;  %vm384_vm13 = vcmp.eq.s32.totalorder %v188_v19, %v6466_v20  ;;  %vm580_vm12 = vcmp.eq.s32.totalorder %v188_v19, %v6472_v7  ;;  %v8524_v5 = vmov 0 }
  0xc2   :  { %8513 = vst [vmem:[#allocation28_spill] sm:$0xff] %v8512_v16  ;;  %vm741_vm4 = vmor %vm353_vm3, %vm549_vm11  ;;  %vm385_vm11 = vcmp.eq.s32.totalorder %v189_v23, %v6466_v20  ;;  %v175_v19 = vadd.s32 840, %v6012_v1 }
  0xc3   :  { %vm6623_vm2 = vmpackc.low %vm741_vm4, %vm740_vm14  ;;  %vm581_vm14 = vcmp.eq.s32.totalorder %v189_v23, %v6472_v7  ;;  %v8526_v23 = vmov 0 }
  0xc4   :  { %v8515_v29 = vsel %vm6623_vm2, 4294967295, %v8514_v29  ;;  %4813 = vmatprep.subr.msk.bf16.mxu0 %vm6623_vm2, %v8262_v13  ;;  %vm724_vm6 = vmor %vm336_vm15, %vm532_vm5  ;;  %vm368_vm5 = vcmp.eq.s32.totalorder %v172_v32, %v6466_v20  ;;  %vm564_vm2 = vcmp.eq.s32.totalorder %v172_v32, %v6472_v7  ;;  %v160_v32 = vadd.s32 720, %v6012_v1 }
  0xc5   :  { %vm725_vm3 = vmor %vm337_vm7, %vm533_vm0  ;;  %vm369_vm0 = vcmp.eq.s32.totalorder %v173_v6, %v6466_v20 }
  0xc6   :  { %vm6636_vm4 = vmpackc.low %vm725_vm3, %vm724_vm6  ;;  %vm565_vm6 = vcmp.eq.s32.totalorder %v173_v6, %v6472_v7  ;;  %v161_v6 = vadd.s32 728, %v6012_v1 }
  0xc7   :  { %v8517_v34 = vsel %vm6636_vm4, 4294967295, %v8516_v34  ;;  %4814 = vmatpush3.bf16.msk.msra.mxu0 %vm6636_vm4, %v8262_v13  ;;  %vm772_vm15 = vmor %vm384_vm13, %vm580_vm12  ;;  %vm354_vm13 = vcmp.eq.s32.totalorder %v158_v41, %v6466_v20  ;;  %vm550_vm4 = vcmp.eq.s32.totalorder %v158_v41, %v6472_v7  ;;  %v8529_v41 = vmov 0 }
  0xc8   :  { %vm773_vm7 = vmor %vm385_vm11, %vm581_vm14  ;;  %vm355_vm14 = vcmp.eq.s32.totalorder %v159_v46, %v6466_v20 }
  0xc9   :  { %vm6649_vm3 = vmpackc.low %vm773_vm7, %vm772_vm15  ;;  %vm551_vm15 = vcmp.eq.s32.totalorder %v159_v46, %v6472_v7  ;;  %v144_v46 = vadd.s32 592, %v6012_v1 }
  0xca   :  { %v8519_v47 = vsel %vm6649_vm3, 4294967295, %v8518_v47  ;;  %4859 = vmatprep.subr.msk.bf16.mxu1 %vm6649_vm3, %v8262_v13  ;;  %vm756_vm12 = vmor %vm368_vm5, %vm564_vm2  ;;  %vm338_vm5 = vcmp.eq.s32.totalorder %v142_v52, %v6466_v20  ;;  %vm534_vm3 = vcmp.eq.s32.totalorder %v142_v52, %v6472_v7  ;;  %v145_v52 = vadd.s32 600, %v6012_v1 }
  0xcb   :  { %8520 = vst [vmem:[#allocation29_spill] sm:$0xff] %v8519_v47  ;;  %vm757_vm11 = vmor %vm369_vm0, %vm565_vm6  ;;  %vm339_vm6 = vcmp.eq.s32.totalorder %v143_v56, %v6466_v20 }
  0xcc   :  { %vm6662_vm7 = vmpackc.low %vm757_vm11, %vm756_vm12  ;;  %vm535_vm12 = vcmp.eq.s32.totalorder %v143_v56, %v6472_v7  ;;  %v8532_v56 = vmov 0 }
  0xcd   :  { %v8522_v58 = vsel %vm6662_vm7, 4294967295, %v8521_v58  ;;  %4860 = vmatpush3.bf16.msk.msra.mxu1 %vm6662_vm7, %v8262_v13  ;;  %vm742_vm2 = vmor %vm354_vm13, %vm550_vm4  ;;  %vm386_vm13 = vcmp.eq.s32.totalorder %v190_v59, %v6466_v20  ;;  %vm582_vm7 = vcmp.eq.s32.totalorder %v190_v59, %v6472_v7  ;;  %v192_v59 = vadd.s32 976, %v6012_v1 }
  0xce   :  { %8523 = vst [vmem:[#allocation30_spill] sm:$0xff] %v8522_v58  ;;  %vm743_vm0 = vmor %vm355_vm14, %vm551_vm15  ;;  %vm387_vm15 = vcmp.eq.s32.totalorder %v191_v2, %v6466_v20  ;;  %v5592_v58 = vld [vmem:[#allocation6 + $0xd4] ss:$48 sps:$4 sm:$0xff]  }
  0xcf   :  { %vm6675_vm11 = vmpackc.low %vm743_vm0, %vm742_vm2  ;;  %vm583_vm2 = vcmp.eq.s32.totalorder %v191_v2, %v6472_v7  ;;  %v193_v2 = vadd.s32 984, %v6012_v1 }
  0xd0   :  { %v8525_v5 = vsel %vm6675_vm11, 4294967295, %v8524_v5  ;;  %4815 = vmatprep.subr.msk.bf16.mxu0 %vm6675_vm11, %v8262_v13  ;;  %vm726_vm4 = vmor %vm338_vm5, %vm534_vm3  ;;  %vm370_vm5 = vcmp.eq.s32.totalorder %v174_v11, %v6466_v20  ;;  %vm566_vm11 = vcmp.eq.s32.totalorder %v174_v11, %v6472_v7  ;;  %v8535_v11 = vmov 0 }
  0xd1   :  { %vm727_vm14 = vmor %vm339_vm6, %vm535_vm12  ;;  %vm371_vm12 = vcmp.eq.s32.totalorder %v175_v19, %v6466_v20 }
  0xd2   :  { %vm6688_vm0 = vmpackc.low %vm727_vm14, %vm726_vm4  ;;  %vm567_vm4 = vcmp.eq.s32.totalorder %v175_v19, %v6472_v7  ;;  %v176_v19 = vadd.s32 848, %v6012_v1 }
  0xd3   :  { %v8527_v23 = vsel %vm6688_vm0, 4294967295, %v8526_v23  ;;  %4816 = vmatpush3.bf16.msk.msra.mxu0 %vm6688_vm0, %v8262_v13  ;;  %vm774_vm3 = vmor %vm386_vm13, %vm582_vm7  ;;  %vm356_vm13 = vcmp.eq.s32.totalorder %v160_v32, %v6466_v20  ;;  %vm552_vm0 = vcmp.eq.s32.totalorder %v160_v32, %v6472_v7  ;;  %v177_v32 = vadd.s32 856, %v6012_v1 }
  0xd4   :  { %8528 = vst [vmem:[#allocation31_spill] sm:$0xff] %v8527_v23  ;;  %vm775_vm6 = vmor %vm387_vm15, %vm583_vm2  ;;  %vm357_vm2 = vcmp.eq.s32.totalorder %v161_v6, %v6466_v20 }
  0xd5   :  { %vm6701_vm14 = vmpackc.low %vm775_vm6, %vm774_vm3  ;;  %vm553_vm3 = vcmp.eq.s32.totalorder %v161_v6, %v6472_v7  ;;  %v8538_v6 = vmov 0 }
  0xd6   :  { %v8530_v41 = vsel %vm6701_vm14, 4294967295, %v8529_v41  ;;  %4861 = vmatprep.subr.msk.bf16.mxu1 %vm6701_vm14, %v8262_v13  ;;  %vm758_vm7 = vmor %vm370_vm5, %vm566_vm11  ;;  %vm340_vm5 = vcmp.eq.s32.totalorder %v144_v46, %v6466_v20  ;;  %vm536_vm14 = vcmp.eq.s32.totalorder %v144_v46, %v6472_v7  ;;  %v162_v46 = vadd.s32 736, %v6012_v1 }
  0xd7   :  { %8531 = vst [vmem:[#allocation32_spill] sm:$0xff] %v8530_v41  ;;  %vm759_vm15 = vmor %vm371_vm12, %vm567_vm4  ;;  %vm341_vm4 = vcmp.eq.s32.totalorder %v145_v52, %v6466_v20  ;;  %v8572_v41 = vmov 0 }
  0xd8   :  { %vm6714_vm6 = vmpackc.low %vm759_vm15, %vm758_vm7  ;;  %vm537_vm7 = vcmp.eq.s32.totalorder %v145_v52, %v6472_v7  ;;  %v163_v52 = vadd.s32 744, %v6012_v1 }
  0xd9   :  { %v8533_v56 = vsel %vm6714_vm6, 4294967295, %v8532_v56  ;;  %4862 = vmatpush3.bf16.msk.msra.mxu1 %vm6714_vm6, %v8262_v13  ;;  %vm744_vm11 = vmor %vm356_vm13, %vm552_vm0  ;;  %vm388_vm13 = vcmp.eq.s32.totalorder %v192_v59, %v6466_v20  ;;  %vm584_vm6 = vcmp.eq.s32.totalorder %v192_v59, %v6472_v7  ;;  %v8541_v59 = vmov 0 }
  0xda   :  { %8534 = vst [vmem:[#allocation33_spill] sm:$0xff] %v8533_v56  ;;  %vm745_vm12 = vmor %vm357_vm2, %vm553_vm3  ;;  %vm389_vm3 = vcmp.eq.s32.totalorder %v193_v2, %v6466_v20  ;;  %v194_v56 = vadd.s32 992, %v6012_v1 }
  0xdb   :  { %vm6727_vm15 = vmpackc.low %vm745_vm12, %vm744_vm11  ;;  %vm585_vm11 = vcmp.eq.s32.totalorder %v193_v2, %v6472_v7  ;;  %v146_v2 = vadd.s32 608, %v6012_v1 }
  0xdc   :  { %v8536_v11 = vsel %vm6727_vm15, 4294967295, %v8535_v11  ;;  %4817 = vmatprep.subr.msk.bf16.mxu0 %vm6727_vm15, %v8262_v13  ;;  %vm728_vm0 = vmor %vm340_vm5, %vm536_vm14  ;;  %vm372_vm5 = vcmp.eq.s32.totalorder %v176_v19, %v6466_v20  ;;  %vm568_vm15 = vcmp.eq.s32.totalorder %v176_v19, %v6472_v7  ;;  %v147_v19 = vadd.s32 616, %v6012_v1 }
  0xdd   :  { %8537 = vst [vmem:[#allocation34_spill] sm:$0xff] %v8536_v11  ;;  %vm729_vm2 = vmor %vm341_vm4, %vm537_vm7  ;;  %vm373_vm7 = vcmp.eq.s32.totalorder %v177_v32, %v6466_v20 }
  0xde   :  { %vm6740_vm12 = vmpackc.low %vm729_vm2, %vm728_vm0  ;;  %vm569_vm0 = vcmp.eq.s32.totalorder %v177_v32, %v6472_v7  ;;  %v8544_v32 = vmov 0 }
  0xdf   :  { %v8539_v6 = vsel %vm6740_vm12, 4294967295, %v8538_v6  ;;  %4818 = vmatpush3.bf16.msk.msra.mxu0 %vm6740_vm12, %v8262_v13  ;;  %vm776_vm14 = vmor %vm388_vm13, %vm584_vm6  ;;  %vm358_vm13 = vcmp.eq.s32.totalorder %v162_v46, %v6466_v20  ;;  %vm554_vm12 = vcmp.eq.s32.totalorder %v162_v46, %v6472_v7  ;;  %v195_v46 = vadd.s32 1000, %v6012_v1 }
  0xe0   :  { %8540 = vst [vmem:[#allocation35_spill] sm:$0xff] %v8539_v6  ;;  %vm777_vm4 = vmor %vm389_vm3, %vm585_vm11  ;;  %vm359_vm11 = vcmp.eq.s32.totalorder %v163_v52, %v6466_v20  ;;  %v5586_v6 = vld [vmem:[#allocation6 + $0x74] ss:$48 sps:$4 sm:$0xff]  }
  0xe1   :  { %vm6753_vm2 = vmpackc.low %vm777_vm4, %vm776_vm14  ;;  %vm555_vm14 = vcmp.eq.s32.totalorder %v163_v52, %v6472_v7  ;;  %v8547_v52 = vmov 0 }
  0xe2   :  { %v8542_v59 = vsel %vm6753_vm2, 4294967295, %v8541_v59  ;;  %4863 = vmatprep.subr.msk.bf16.mxu1 %vm6753_vm2, %v8262_v13  ;;  %vm760_vm6 = vmor %vm372_vm5, %vm568_vm15  ;;  %vm342_vm5 = vcmp.eq.s32.totalorder %v146_v2, %v6466_v20  ;;  %vm538_vm2 = vcmp.eq.s32.totalorder %v146_v2, %v6472_v7  ;;  %v179_v2 = vadd.s32 872, %v6012_v1 }
  0xe3   :  { %8543 = vst [vmem:[#allocation36_spill] sm:$0xff] %v8542_v59  ;;  %vm761_vm3 = vmor %vm373_vm7, %vm569_vm0  ;;  %vm343_vm0 = vcmp.eq.s32.totalorder %v147_v19, %v6466_v20  ;;  %v178_v59 = vadd.s32 864, %v6012_v1 }
  0xe4   :  { %vm6766_vm4 = vmpackc.low %vm761_vm3, %vm760_vm6  ;;  %vm539_vm6 = vcmp.eq.s32.totalorder %v147_v19, %v6472_v7  ;;  %v8550_v19 = vmov 0 }
  0xe5   :  { %v8545_v32 = vsel %vm6766_vm4, 4294967295, %v8544_v32  ;;  %4864 = vmatpush3.bf16.msk.msra.mxu1 %vm6766_vm4, %v8262_v13  ;;  %vm746_vm15 = vmor %vm358_vm13, %vm554_vm12  ;;  %vm390_vm13 = vcmp.eq.s32.totalorder %v194_v56, %v6466_v20  ;;  %vm586_vm4 = vcmp.eq.s32.totalorder %v194_v56, %v6472_v7  ;;  %v165_v56 = vadd.s32 760, %v6012_v1 }
  0xe6   :  { %8546 = vst [vmem:[#allocation37_spill] sm:$0xff] %v8545_v32  ;;  %vm747_vm7 = vmor %vm359_vm11, %vm555_vm14  ;;  %vm391_vm14 = vcmp.eq.s32.totalorder %v195_v46, %v6466_v20  ;;  %v164_v32 = vadd.s32 752, %v6012_v1 }
  0xe7   :  { %vm6779_vm3 = vmpackc.low %vm747_vm7, %vm746_vm15  ;;  %vm587_vm15 = vcmp.eq.s32.totalorder %v195_v46, %v6472_v7  ;;  %v8553_v46 = vmov 0 }
  0xe8   :  { %v8548_v52 = vsel %vm6779_vm3, 4294967295, %v8547_v52  ;;  %4819 = vmatprep.subr.msk.bf16.mxu0 %vm6779_vm3, %v8262_v13  ;;  %vm730_vm12 = vmor %vm342_vm5, %vm538_vm2  ;;  %vm374_vm5 = vcmp.eq.s32.totalorder %v178_v59, %v6466_v20  ;;  %vm570_vm3 = vcmp.eq.s32.totalorder %v178_v59, %v6472_v7  ;;  %v149_v59 = vadd.s32 632, %v6012_v1 }
  0xe9   :  { %8549 = vst [vmem:[#allocation38_spill] sm:$0xff] %v8548_v52  ;;  %vm731_vm11 = vmor %vm343_vm0, %vm539_vm6  ;;  %vm375_vm6 = vcmp.eq.s32.totalorder %v179_v2, %v6466_v20  ;;  %v148_v52 = vadd.s32 624, %v6012_v1 }
  0xea   :  { %vm6792_vm7 = vmpackc.low %vm731_vm11, %vm730_vm12  ;;  %vm571_vm12 = vcmp.eq.s32.totalorder %v179_v2, %v6472_v7  ;;  %v8556_v2 = vmov 0 }
  0xeb   :  { %v8551_v19 = vsel %vm6792_vm7, 4294967295, %v8550_v19  ;;  %4820 = vmatpush3.bf16.msk.msra.mxu0 %vm6792_vm7, %v8262_v13  ;;  %vm778_vm2 = vmor %vm390_vm13, %vm586_vm4  ;;  %vm360_vm13 = vcmp.eq.s32.totalorder %v164_v32, %v6466_v20  ;;  %vm556_vm7 = vcmp.eq.s32.totalorder %v164_v32, %v6472_v7  ;;  %v197_v32 = vadd.s32 1016, %v6012_v1 }
  0xec   :  { %8552 = vst [vmem:[#allocation39_spill] sm:$0xff] %v8551_v19  ;;  %vm779_vm0 = vmor %vm391_vm14, %vm587_vm15  ;;  %vm361_vm15 = vcmp.eq.s32.totalorder %v165_v56, %v6466_v20  ;;  %v196_v19 = vadd.s32 1008, %v6012_v1 }
  0xed   :  { %vm6805_vm11 = vmpackc.low %vm779_vm0, %vm778_vm2  ;;  %vm557_vm2 = vcmp.eq.s32.totalorder %v165_v56, %v6472_v7  ;;  %v8559_v56 = vmov 0 }
  0xee   :  { %v8554_v46 = vsel %vm6805_vm11, 4294967295, %v8553_v46  ;;  %4865 = vmatprep.subr.msk.bf16.mxu1 %vm6805_vm11, %v8262_v13  ;;  %vm762_vm4 = vmor %vm374_vm5, %vm570_vm3  ;;  %vm344_vm5 = vcmp.eq.s32.totalorder %v148_v52, %v6466_v20  ;;  %vm540_vm11 = vcmp.eq.s32.totalorder %v148_v52, %v6472_v7  ;;  %v181_v52 = vadd.s32 888, %v6012_v1 }
  0xef   :  { %8555 = vst [vmem:[#allocation40_spill] sm:$0xff] %v8554_v46  ;;  %vm763_vm14 = vmor %vm375_vm6, %vm571_vm12  ;;  %vm345_vm12 = vcmp.eq.s32.totalorder %v149_v59, %v6466_v20  ;;  %v180_v46 = vadd.s32 880, %v6012_v1 }
  0xf0   :  { %vm6818_vm0 = vmpackc.low %vm763_vm14, %vm762_vm4  ;;  %vm541_vm4 = vcmp.eq.s32.totalorder %v149_v59, %v6472_v7  ;;  %v8562_v59 = vmov 0 }
  0xf1   :  { %v8557_v2 = vsel %vm6818_vm0, 4294967295, %v8556_v2  ;;  %4866 = vmatpush3.bf16.msk.msra.mxu1 %vm6818_vm0, %v8262_v13  ;;  %vm748_vm3 = vmor %vm360_vm13, %vm556_vm7  ;;  %vm392_vm13 = vcmp.eq.s32.totalorder %v196_v19, %v6466_v20  ;;  %vm588_vm0 = vcmp.eq.s32.totalorder %v196_v19, %v6472_v7  ;;  %v215_v19 = vadd.s32 1160, %v6012_v1 }
  0xf2   :  { %8558 = vst [vmem:[#allocation41_spill] sm:$0xff] %v8557_v2  ;;  %vm749_vm6 = vmor %vm361_vm15, %vm557_vm2  ;;  %vm393_vm2 = vcmp.eq.s32.totalorder %v197_v32, %v6466_v20  ;;  %v5580_v2 = vld [vmem:[#allocation6 + $0x10] ss:$48 sps:$4 sm:$0xff]  }
  0xf3   :  { %vm6831_vm14 = vmpackc.low %vm749_vm6, %vm748_vm3  ;;  %vm589_vm3 = vcmp.eq.s32.totalorder %v197_v32, %v6472_v7  ;;  %v8565_v32 = vmov 0 }
  0xf4   :  { %v8560_v56 = vsel %vm6831_vm14, 4294967295, %v8559_v56  ;;  %4821 = vmatprep.subr.msk.bf16.mxu0 %vm6831_vm14, %v8262_v13  ;;  %vm732_vm7 = vmor %vm344_vm5, %vm540_vm11  ;;  %vm376_vm5 = vcmp.eq.s32.totalorder %v180_v46, %v6466_v20 }
  0xf5   :  { %8561 = vst [vmem:[#allocation42_spill] sm:$0xff] %v8560_v56  ;;  %vm733_vm15 = vmor %vm345_vm12, %vm541_vm4  ;;  %v214_v56 = vadd.s32 1152, %v6012_v1  ;;  %vm572_vm12 = vcmp.eq.s32.totalorder %v180_v46, %v6472_v7  ;;  %v199_v46 = vadd.s32 1032, %v6012_v1 }
  0xf6   :  { %vm6844_vm6 = vmpackc.low %vm733_vm15, %vm732_vm7  ;;  %vm377_vm7 = vcmp.eq.s32.totalorder %v181_v52, %v6466_v20  ;;  %vm573_vm15 = vcmp.eq.s32.totalorder %v181_v52, %v6472_v7  ;;  %v8568_v52 = vmov 0 }
  0xf7   :  { %v8563_v59 = vsel %vm6844_vm6, 4294967295, %v8562_v59  ;;  %4822 = vmatpush3.bf16.msk.msra.mxu0 %vm6844_vm6, %v8262_v13  ;;  %vm780_vm11 = vmor %vm392_vm13, %vm588_vm0  ;;  %vm410_vm13 = vcmp.eq.s32.totalorder %v214_v56, %v6466_v20 }
  0xf8   :  { %8564 = vst [vmem:[#allocation43_spill] sm:$0xff] %v8563_v59  ;;  %vm781_vm4 = vmor %vm393_vm2, %vm589_vm3  ;;  %v198_v59 = vadd.s32 1024, %v6012_v1  ;;  %vm606_vm2 = vcmp.eq.s32.totalorder %v214_v56, %v6472_v7  ;;  %v247_v56 = vadd.s32 1416, %v6012_v1 }
  0xf9   :  { %vm6857_vm14 = vmpackc.low %vm781_vm4, %vm780_vm11  ;;  %vm411_vm11 = vcmp.eq.s32.totalorder %v215_v19, %v6466_v20  ;;  %vm607_vm4 = vcmp.eq.s32.totalorder %v215_v19, %v6472_v7  ;;  %v5588_v19 = vld [vmem:[#allocation6 + $0x7c] ss:$48 sps:$4 sm:$0xff]  }
  0xfa   :  { %v8566_v32 = vsel %vm6857_vm14, 4294967295, %v8565_v32  ;;  %4867 = vmatprep.subr.msk.bf16.mxu1 %vm6857_vm14, %v8262_v13  ;;  %vm764_vm0 = vmor %vm376_vm5, %vm572_vm12  ;;  %1925 = vmatmul.mubr.bf16.vlgmr.msra.gmra.mrb[20].mxu0 %v5580_v2  ;;  %v246_v13 = vadd.s32 1408, %v6012_v1  ;;  %v8571_v2 = vmov 1.0|1.0   ;;  %vm394_vm12 = vcmp.eq.s32.totalorder %v198_v59, %v6466_v20 }
  0xfb   :  { %8567 = vst [vmem:[#allocation44_spill] sm:$0xff] %v8566_v32  ;;  %vm765_vm3 = vmor %vm377_vm7, %vm573_vm15  ;;  %1932 = vmatprep.mubr.bf16.mxu0 %v5586_v6  ;;  %v5583_v32 = vld [vmem:[#allocation6 + $0x18] ss:$48 sps:$4 sm:$0xff]   ;;  %vm590_vm7 = vcmp.eq.s32.totalorder %v198_v59, %v6472_v7  ;;  %v5590_v6 = vld [vmem:[#allocation6 + $0x70] ss:$48 sps:$4 sm:$0xff]   ;;  %v231_v59 = vadd.s32 1288, %v6012_v1 }
  0xfc   :  { %vm6870_vm6 = vmpackc.low %vm765_vm3, %vm764_vm0  ;;  %vm395_vm0 = vcmp.eq.s32.totalorder %v199_v46, %v6466_v20  ;;  %vm591_vm3 = vcmp.eq.s32.totalorder %v199_v46, %v6472_v7  ;;  %v8575_v46 = vmov 0 }
  0xfd   :  { %v8569_v52 = vsel %vm6870_vm6, 4294967295, %v8568_v52  ;;  %4868 = vmatpush3.bf16.msk.msra.mxu1 %vm6870_vm6, %v8571_v2  ;;  %vm798_vm5 = vmor %vm410_vm13, %vm606_vm2  ;;  %vm442_vm2 = vcmp.eq.s32.totalorder %v246_v13, %v6466_v20 }
  0xfe   :  { %8570 = vst [vmem:[#allocation45_spill] sm:$0xff] %v8569_v52  ;;  %vm799_vm15 = vmor %vm411_vm11, %vm607_vm4  ;;  %v230_v52 = vadd.s32 1280, %v6012_v1  ;;  %vm638_vm11 = vcmp.eq.s32.totalorder %v246_v13, %v6472_v7  ;;  %v217_v13 = vadd.s32 1176, %v6012_v1 }
  0xff   :  { %vm6883_vm14 = vmpackc.low %vm799_vm15, %vm798_vm5  ;;  %vm443_vm5 = vcmp.eq.s32.totalorder %v247_v56, %v6466_v20  ;;  %vm639_vm15 = vcmp.eq.s32.totalorder %v247_v56, %v6472_v7  ;;  %v5591_v56 = vld [vmem:[#allocation6 + $0x78] ss:$48 sps:$4 sm:$0xff]  }
 0x100   :  { %v8573_v41 = vsel %vm6883_vm14, 4294967295, %v8572_v41  ;;  %1998 = vmatmul.mubr.bf16.vlgmr.msra.gmra.mrb[20].mxu1 %v5583_v32  ;;  %4899 = vmatprep.subr.msk.bf16.mxu0 %vm6883_vm14, %v8571_v2  ;;  %vm782_vm13 = vmor %vm394_vm12, %vm590_vm7  ;;  %v216_v32 = vadd.s32 1168, %v6012_v1  ;;  %vm426_vm7 = vcmp.eq.s32.totalorder %v230_v52, %v6466_v20 }
 0x101   :  { %8574 = vst [vmem:[#allocation46_spill] sm:$0xff] %v8573_v41  ;;  %vm783_vm4 = vmor %vm395_vm0, %vm591_vm3  ;;  %2005 = vmatprep.mubr.bf16.mxu1 %v5588_v19  ;;  %vm622_vm0 = vcmp.eq.s32.totalorder %v230_v52, %v6472_v7  ;;  %v8578_v19 = vmov 0  ;;  %v5596_v52 = vld [vmem:[#allocation6 + $0xd0] ss:$48 sps:$4 sm:$0xff]   ;;  %v8581_v41 = vmov 0 }
 0x102   :  { %vm6896_vm6 = vmpackc.low %vm783_vm4, %vm782_vm13  ;;  %1933 = vmatmul.mubr.bf16.gmra.mrb[24].mxu0 %v5590_v6  ;;  %vm427_vm13 = vcmp.eq.s32.totalorder %v231_v59, %v6466_v20  ;;  %vm623_vm4 = vcmp.eq.s32.totalorder %v231_v59, %v6472_v7  ;;  %v200_v6 = vadd.s32 1040, %v6012_v1  ;;  %v5598_v59 = vld [vmem:[#allocation6 + $0x134] ss:$48 sps:$4 sm:$0xff]  }
 0x103   :  { %v8576_v46 = vsel %vm6896_vm6, 4294967295, %v8575_v46  ;;  %4900 = vmatpush3.bf16.msk.msra.mxu0 %vm6896_vm6, %v8571_v2  ;;  %vm830_vm12 = vmor %vm442_vm2, %vm638_vm11  ;;  %1940 = vmatprep.mubr.bf16.mxu0 %v5592_v58  ;;  %vm412_vm11 = vcmp.eq.s32.totalorder %v216_v32, %v6466_v20  ;;  %v201_v58 = vadd.s32 1048, %v6012_v1 }
 0x104   :  { %8577 = vst [vmem:[#allocation47_spill] sm:$0xff] %v8576_v46  ;;  %vm831_vm3 = vmor %vm443_vm5, %vm639_vm15  ;;  %v5594_v46 = vld [vmem:[#allocation6 + $0xdc] ss:$48 sps:$4 sm:$0xff]   ;;  %vm608_vm5 = vcmp.eq.s32.totalorder %v216_v32, %v6472_v7  ;;  %v249_v32 = vadd.s32 1432, %v6012_v1 }
 0x105   :  { %vm6909_vm14 = vmpackc.low %vm831_vm3, %vm830_vm12  ;;  %vm413_vm12 = vcmp.eq.s32.totalorder %v217_v13, %v6466_v20  ;;  %vm609_vm3 = vcmp.eq.s32.totalorder %v217_v13, %v6472_v7  ;;  %v8584_v13 = vmov 0 }
 0x106   :  { %v8579_v19 = vsel %vm6909_vm14, 4294967295, %v8578_v19  ;;  %4945 = vmatprep.subr.msk.bf16.mxu1 %vm6909_vm14, %v8571_v2  ;;  %vm814_vm2 = vmor %vm426_vm7, %vm622_vm0  ;;  %vm396_vm0 = vcmp.eq.s32.totalorder %v200_v6, %v6466_v20 }
 0x107   :  { %8580 = vst [vmem:[#allocation48_spill] sm:$0xff] %v8579_v19  ;;  %vm815_vm15 = vmor %vm427_vm13, %vm623_vm4  ;;  %v248_v19 = vadd.s32 1424, %v6012_v1  ;;  %vm592_vm13 = vcmp.eq.s32.totalorder %v200_v6, %v6472_v7  ;;  %v5597_v6 = vld [vmem:[#allocation6 + $0xd8] ss:$48 sps:$4 sm:$0xff]  }
 0x108   :  { %vm6922_vm6 = vmpackc.low %vm815_vm15, %vm814_vm2  ;;  %2006 = vmatmul.mubr.bf16.gmra.mrb[24].mxu1 %v5591_v56  ;;  %vm397_vm2 = vcmp.eq.s32.totalorder %v201_v58, %v6466_v20  ;;  %vm593_vm15 = vcmp.eq.s32.totalorder %v201_v58, %v6472_v7  ;;  %v232_v56 = vadd.s32 1296, %v6012_v1  ;;  %v5600_v58 = vld [vmem:[#allocation6 + $0x13c] ss:$48 sps:$4 sm:$0xff]  }
 0x109   :  { %v8582_v41 = vsel %vm6922_vm6, 4294967295, %v8581_v41  ;;  %4946 = vmatpush3.bf16.msk.msra.mxu1 %vm6922_vm6, %v8571_v2  ;;  %vm800_vm7 = vmor %vm412_vm11, %vm608_vm5  ;;  %2013 = vmatprep.mubr.bf16.mxu1 %v5594_v46  ;;  %vm444_vm5 = vcmp.eq.s32.totalorder %v248_v19, %v6466_v20  ;;  %v233_v46 = vadd.s32 1304, %v6012_v1 }
 0x10a   :  { %8583 = vst [vmem:[#allocation49_spill] sm:$0xff] %v8582_v41  ;;  %vm801_vm4 = vmor %vm413_vm12, %vm609_vm3  ;;  %1941 = vmatmul.mubr.bf16.gmra.mrb[28].mxu0 %v5596_v52  ;;  %vm640_vm12 = vcmp.eq.s32.totalorder %v248_v19, %v6472_v7  ;;  %v8587_v52 = vmov 0  ;;  %v5602_v41 = vld [vmem:[#allocation6 + $0x130] ss:$48 sps:$4 sm:$0xff]   ;;  %v219_v19 = vadd.s32 1192, %v6012_v1 }
 0x10b   :  { %vm6935_vm14 = vmpackc.low %vm801_vm4, %vm800_vm7  ;;  %1948 = vmatprep.mubr.bf16.mxu0 %v5598_v59  ;;  %vm445_vm7 = vcmp.eq.s32.totalorder %v249_v32, %v6466_v20  ;;  %vm641_vm4 = vcmp.eq.s32.totalorder %v249_v32, %v6472_v7  ;;  %v218_v59 = vadd.s32 1184, %v6012_v1  ;;  %v5604_v32 = vld [vmem:[#allocation6 + $0x194] ss:$48 sps:$4 sm:$0xff]  }
 0x10c   :  { %v8585_v13 = vsel %vm6935_vm14, 4294967295, %v8584_v13  ;;  %4901 = vmatprep.subr.msk.bf16.mxu0 %vm6935_vm14, %v8571_v2  ;;  %vm784_vm11 = vmor %vm396_vm0, %vm592_vm13  ;;  %vm428_vm13 = vcmp.eq.s32.totalorder %v232_v56, %v6466_v20 }
 0x10d   :  { %8586 = vst [vmem:[#allocation50_spill] sm:$0xff] %v8585_v13  ;;  %vm785_vm3 = vmor %vm397_vm2, %vm593_vm15  ;;  %vm624_vm2 = vcmp.eq.s32.totalorder %v232_v56, %v6472_v7  ;;  %v8590_v13 = vmov 0  ;;  %v203_v56 = vadd.s32 1064, %v6012_v1 }
 0x10e   :  { %vm6948_vm6 = vmpackc.low %vm785_vm3, %vm784_vm11  ;;  %vm429_vm11 = vcmp.eq.s32.totalorder %v233_v46, %v6466_v20  ;;  %vm625_vm3 = vcmp.eq.s32.totalorder %v233_v46, %v6472_v7  ;;  %v8593_v46 = vmov 0 }
 0x10f   :  { %v8588_v52 = vsel %vm6948_vm6, 4294967295, %v8587_v52  ;;  %4902 = vmatpush3.bf16.msk.msra.mxu0 %vm6948_vm6, %v8571_v2  ;;  %vm832_vm0 = vmor %vm444_vm5, %vm640_vm12  ;;  %vm414_vm12 = vcmp.eq.s32.totalorder %v218_v59, %v6466_v20 }
 0x110   :  { %8589 = vst [vmem:[#allocation51_spill] sm:$0xff] %v8588_v52  ;;  %vm833_vm15 = vmor %vm445_vm7, %vm641_vm4  ;;  %2014 = vmatmul.mubr.bf16.gmra.mrb[28].mxu1 %v5597_v6  ;;  %v202_v52 = vadd.s32 1056, %v6012_v1  ;;  %vm610_vm7 = vcmp.eq.s32.totalorder %v218_v59, %v6472_v7  ;;  %v250_v6 = vadd.s32 1440, %v6012_v1  ;;  %v5606_v59 = vld [vmem:[#allocation6 + $0x19c] ss:$48 sps:$4 sm:$0xff]  }
 0x111   :  { %vm6961_vm14 = vmpackc.low %vm833_vm15, %vm832_vm0  ;;  %2021 = vmatprep.mubr.bf16.mxu1 %v5600_v58  ;;  %vm415_vm0 = vcmp.eq.s32.totalorder %v219_v19, %v6466_v20  ;;  %vm611_vm15 = vcmp.eq.s32.totalorder %v219_v19, %v6472_v7  ;;  %v5603_v58 = vld [vmem:[#allocation6 + $0x138] ss:$48 sps:$4 sm:$0xff]   ;;  %v5608_v19 = vld [vmem:[#allocation6 + $0x190] ss:$48 sps:$4 sm:$0xff]  }
 0x112   :  { %v8591_v13 = vsel %vm6961_vm14, 4294967295, %v8590_v13  ;;  %4947 = vmatprep.subr.msk.bf16.mxu1 %vm6961_vm14, %v8571_v2  ;;  %vm816_vm5 = vmor %vm428_vm13, %vm624_vm2  ;;  %1949 = vmatmul.mubr.bf16.gmra.mrb[32].mxu0 %v5602_v41  ;;  %vm398_vm2 = vcmp.eq.s32.totalorder %v202_v52, %v6466_v20  ;;  %v251_v41 = vadd.s32 1448, %v6012_v1 }
 0x113   :  { %8592 = vst [vmem:[#allocation52_spill] sm:$0xff] %v8591_v13  ;;  %vm817_vm4 = vmor %vm429_vm11, %vm625_vm3  ;;  %1956 = vmatprep.mubr.bf16.mxu0 %v5604_v32  ;;  %vm594_vm11 = vcmp.eq.s32.totalorder %v202_v52, %v6472_v7  ;;  %v8596_v32 = vmov 0  ;;  %v5612_v13 = vld [vmem:[#allocation6 + $0x24] ss:$48 sps:$4 sm:$0xff]   ;;  %v235_v52 = vadd.s32 1320, %v6012_v1 }
 0x114   :  { %vm6974_vm6 = vmpackc.low %vm817_vm4, %vm816_vm5  ;;  %vm399_vm5 = vcmp.eq.s32.totalorder %v203_v56, %v6466_v20  ;;  %vm595_vm4 = vcmp.eq.s32.totalorder %v203_v56, %v6472_v7  ;;  %v8599_v56 = vmov 0 }
 0x115   :  { %v8594_v46 = vsel %vm6974_vm6, 4294967295, %v8593_v46  ;;  %4948 = vmatpush3.bf16.msk.msra.mxu1 %vm6974_vm6, %v8571_v2  ;;  %vm802_vm13 = vmor %vm414_vm12, %vm610_vm7  ;;  %vm446_vm7 = vcmp.eq.s32.totalorder %v250_v6, %v6466_v20 }
 0x116   :  { %8595 = vst [vmem:[#allocation53_spill] sm:$0xff] %v8594_v46  ;;  %vm803_vm3 = vmor %vm415_vm0, %vm611_vm15  ;;  %v234_v46 = vadd.s32 1312, %v6012_v1  ;;  %vm642_vm0 = vcmp.eq.s32.totalorder %v250_v6, %v6472_v7  ;;  %v221_v6 = vadd.s32 1208, %v6012_v1 }
 0x117   :  { %vm6987_vm14 = vmpackc.low %vm803_vm3, %vm802_vm13  ;;  %vm447_vm13 = vcmp.eq.s32.totalorder %v251_v41, %v6466_v20  ;;  %vm643_vm3 = vcmp.eq.s32.totalorder %v251_v41, %v6472_v7  ;;  %v8602_v41 = vmov 0 }
 0x118   :  { %v8597_v32 = vsel %vm6987_vm14, 4294967295, %v8596_v32  ;;  %4903 = vmatprep.subr.msk.bf16.mxu0 %vm6987_vm14, %v8571_v2  ;;  %vm786_vm12 = vmor %vm398_vm2, %vm594_vm11  ;;  %2022 = vmatmul.mubr.bf16.gmra.mrb[32].mxu1 %v5603_v58  ;;  %vm430_vm11 = vcmp.eq.s32.totalorder %v234_v46, %v6466_v20  ;;  %v5609_v58 = vld [vmem:[#allocation6 + $0x198] ss:$48 sps:$4 sm:$0xff]  }
 0x119   :  { %8598 = vst [vmem:[#allocation54_spill] sm:$0xff] %v8597_v32  ;;  %vm787_vm15 = vmor %vm399_vm5, %vm595_vm4  ;;  %2029 = vmatprep.mubr.bf16.mxu1 %v5606_v59  ;;  %v220_v32 = vadd.s32 1200, %v6012_v1  ;;  %vm626_vm5 = vcmp.eq.s32.totalorder %v234_v46, %v6472_v7  ;;  %v204_v59 = vadd.s32 1072, %v6012_v1  ;;  %v8605_v46 = vmov 0 }
 0x11a   :  { %vm7000_vm6 = vmpackc.low %vm787_vm15, %vm786_vm12  ;;  %1957 = vmatmul.mubr.bf16.gmra.mrb[36].mxu0 %v5608_v19  ;;  %vm431_vm12 = vcmp.eq.s32.totalorder %v235_v52, %v6466_v20  ;;  %vm627_vm15 = vcmp.eq.s32.totalorder %v235_v52, %v6472_v7  ;;  %v5615_v19 = vld [vmem:[#allocation6 + $0x2c] ss:$48 sps:$4 sm:$0xff]   ;;  %v252_v52 = vadd.s32 1456, %v6012_v1 }
 0x11b   :  { %v8600_v56 = vsel %vm7000_vm6, 4294967295, %v8599_v56  ;;  %4904 = vmatpush3.bf16.msk.msra.mxu0 %vm7000_vm6, %v8571_v2  ;;  %vm834_vm2 = vmor %vm446_vm7, %vm642_vm0  ;;  %2070 = vmatprep.mubr.bf16.mxu0 %v5612_v13  ;;  %vm416_vm0 = vcmp.eq.s32.totalorder %v220_v32, %v6466_v20  ;;  %v205_v13 = vadd.s32 1080, %v6012_v1 }
 0x11c   :  { %8601 = vst [vmem:[#allocation55_spill] sm:$0xff] %v8600_v56  ;;  %vm835_vm4 = vmor %vm447_vm13, %vm643_vm3  ;;  %vm612_vm13 = vcmp.eq.s32.totalorder %v220_v32, %v6472_v7  ;;  %v7037_v32 = vld [vmem:[%s8118_s1] ss:$0 sm:$0xff] }
 0x11d   :  { %vm7013_vm14 = vmpackc.low %vm835_vm4, %vm834_vm2  ;;  %vm417_vm2 = vcmp.eq.s32.totalorder %v221_v6, %v6466_v20  ;;  %vm613_vm4 = vcmp.eq.s32.totalorder %v221_v6, %v6472_v7  ;;  %v7043_v20 = vld [vmem:[%s8119_s2] ss:$0 sm:$0xff]  ;;  %v253_v7 = vadd.s32 1464, %v6012_v1  ;;  %v8608_v6 = vmov 0 }
 0x11e   :  { %v8603_v41 = vsel %vm7013_vm14, 4294967295, %v8602_v41  ;;  %4949 = vmatprep.subr.msk.bf16.mxu1 %vm7013_vm14, %v8571_v2  ;;  %vm818_vm7 = vmor %vm430_vm11, %vm626_vm5  ;;  %vm400_vm5 = vcmp.eq.s32.totalorder %v204_v59, %v7037_v32  ;;  %vm644_vm14 = vcmp.eq.s32.totalorder %v252_v52, %v7043_v20 }
 0x11f   :  { %8604 = vst [vmem:[#allocation56_spill] sm:$0xff] %v8603_v41  ;;  %vm819_vm3 = vmor %vm431_vm12, %vm627_vm15  ;;  %vm596_vm12 = vcmp.eq.s32.totalorder %v204_v59, %v7043_v20  ;;  %v237_v59 = vadd.s32 1336, %v6012_v1 }
 0x120   :  { %vm7026_vm6 = vmpackc.low %vm819_vm3, %vm818_vm7  ;;  %2030 = vmatmul.mubr.bf16.gmra.mrb[36].mxu1 %v5609_v58  ;;  %vm401_vm7 = vcmp.eq.s32.totalorder %v205_v13, %v7037_v32  ;;  %v236_v58 = vadd.s32 1328, %v6012_v1 }
 0x121   :  { %v8606_v46 = vsel %vm7026_vm6, 4294967295, %v8605_v46  ;;  %4950 = vmatpush3.bf16.msk.msra.mxu1 %vm7026_vm6, %v8571_v2  ;;  %vm804_vm11 = vmor %vm416_vm0, %vm612_vm13  ;;  %2143 = vmatprep.mubr.bf16.mxu1 %v5615_v19  ;;  %vm597_vm0 = vcmp.eq.s32.totalorder %v205_v13, %v7043_v20  ;;  %vm448_vm6 = vcmp.eq.s32.totalorder %v252_v52, %v7037_v32  ;;  %v8611_v19 = vmov 0 }
 0x122   :  { %8607 = vst [vmem:[#allocation57_spill] sm:$0xff] %v8606_v46  ;;  %vm805_vm15 = vmor %vm417_vm2, %vm613_vm4  ;;  %vm449_vm4 = vcmp.eq.s32.totalorder %v253_v7, %v7037_v32  ;;  %v222_v13 = vadd.s32 1216, %v6012_v1  ;;  %v223_v52 = vadd.s32 1224, %v6012_v1  ;;  %v206_v46 = vadd.s32 1088, %v6012_v1 }
 0x123   :  { %vm7049_vm13 = vmpackc.low %vm805_vm15, %vm804_vm11  ;;  %vm645_vm11 = vcmp.eq.s32.totalorder %v253_v7, %v7043_v20  ;;  %v8614_v7 = vmov 0 }
 0x124   :  { %v8609_v6 = vsel %vm7049_vm13, 4294967295, %v8608_v6  ;;  %4905 = vmatprep.subr.msk.bf16.mxu0 %vm7049_vm13, %v8571_v2  ;;  %vm788_vm3 = vmor %vm400_vm5, %vm596_vm12  ;;  %vm432_vm12 = vcmp.eq.s32.totalorder %v236_v58, %v7037_v32  ;;  %vm628_vm13 = vcmp.eq.s32.totalorder %v236_v58, %v7043_v20  ;;  %v207_v58 = vadd.s32 1096, %v6012_v1 }
 0x125   :  { %8610 = vst [vmem:[#allocation58_spill] sm:$0xff] %v8609_v6  ;;  %vm789_vm2 = vmor %vm401_vm7, %vm597_vm0  ;;  %vm433_vm0 = vcmp.eq.s32.totalorder %v237_v59, %v7037_v32 }
 0x126   :  { %vm7062_vm15 = vmpackc.low %vm789_vm2, %vm788_vm3  ;;  %vm629_vm3 = vcmp.eq.s32.totalorder %v237_v59, %v7043_v20  ;;  %v8617_v59 = vmov 0 }
 0x127   :  { %v8612_v19 = vsel %vm7062_vm15, 4294967295, %v8611_v19  ;;  %4906 = vmatpush3.bf16.msk.msra.mxu0 %vm7062_vm15, %v8571_v2  ;;  %vm836_vm5 = vmor %vm448_vm6, %vm644_vm14  ;;  %vm418_vm6 = vcmp.eq.s32.totalorder %v222_v13, %v7037_v32  ;;  %vm614_vm15 = vcmp.eq.s32.totalorder %v222_v13, %v7043_v20  ;;  %v255_v13 = vadd.s32 1480, %v6012_v1 }
 0x128   :  { %8613 = vst [vmem:[#allocation59_spill] sm:$0xff] %v8612_v19  ;;  %vm837_vm7 = vmor %vm449_vm4, %vm645_vm11  ;;  %vm419_vm11 = vcmp.eq.s32.totalorder %v223_v52, %v7037_v32  ;;  %v254_v19 = vadd.s32 1472, %v6012_v1 }
 0x129   :  { %vm7075_vm2 = vmpackc.low %vm837_vm7, %vm836_vm5  ;;  %vm615_vm5 = vcmp.eq.s32.totalorder %v223_v52, %v7043_v20  ;;  %v8620_v52 = vmov 0 }
 0x12a   :  { %v8615_v7 = vsel %vm7075_vm2, 4294967295, %v8614_v7  ;;  %4951 = vmatprep.subr.msk.bf16.mxu1 %vm7075_vm2, %v8571_v2  ;;  %vm820_vm14 = vmor %vm432_vm12, %vm628_vm13  ;;  %vm402_vm12 = vcmp.eq.s32.totalorder %v206_v46, %v7037_v32  ;;  %vm598_vm2 = vcmp.eq.s32.totalorder %v206_v46, %v7043_v20  ;;  %v239_v46 = vadd.s32 1352, %v6012_v1 }
 0x12b   :  { %8616 = vst [vmem:[#allocation60_spill] sm:$0xff] %v8615_v7  ;;  %vm821_vm4 = vmor %vm433_vm0, %vm629_vm3  ;;  %vm403_vm3 = vcmp.eq.s32.totalorder %v207_v58, %v7037_v32  ;;  %v238_v7 = vadd.s32 1344, %v6012_v1 }
 0x12c   :  { %vm7088_vm7 = vmpackc.low %vm821_vm4, %vm820_vm14  ;;  %vm599_vm14 = vcmp.eq.s32.totalorder %v207_v58, %v7043_v20  ;;  %v8623_v58 = vmov 0 }
 0x12d   :  { %v8618_v59 = vsel %vm7088_vm7, 4294967295, %v8617_v59  ;;  %4952 = vmatpush3.bf16.msk.msra.mxu1 %vm7088_vm7, %v8571_v2  ;;  %vm806_vm13 = vmor %vm418_vm6, %vm614_vm15  ;;  %vm450_vm6 = vcmp.eq.s32.totalorder %v254_v19, %v7037_v32  ;;  %vm646_vm7 = vcmp.eq.s32.totalorder %v254_v19, %v7043_v20  ;;  %v225_v19 = vadd.s32 1240, %v6012_v1 }
 0x12e   :  { %8619 = vst [vmem:[#allocation61_spill] sm:$0xff] %v8618_v59  ;;  %vm807_vm0 = vmor %vm419_vm11, %vm615_vm5  ;;  %vm451_vm5 = vcmp.eq.s32.totalorder %v255_v13, %v7037_v32  ;;  %v224_v59 = vadd.s32 1232, %v6012_v1 }
 0x12f   :  { %vm7101_vm4 = vmpackc.low %vm807_vm0, %vm806_vm13  ;;  %vm647_vm13 = vcmp.eq.s32.totalorder %v255_v13, %v7043_v20  ;;  %v8626_v13 = vmov 0 }
 0x130   :  { %v8621_v52 = vsel %vm7101_vm4, 4294967295, %v8620_v52  ;;  %4907 = vmatprep.subr.msk.bf16.mxu0 %vm7101_vm4, %v8571_v2  ;;  %vm790_vm15 = vmor %vm402_vm12, %vm598_vm2  ;;  %vm434_vm12 = vcmp.eq.s32.totalorder %v238_v7, %v7037_v32  ;;  %vm630_vm4 = vcmp.eq.s32.totalorder %v238_v7, %v7043_v20  ;;  %v209_v7 = vadd.s32 1112, %v6012_v1 }
 0x131   :  { %8622 = vst [vmem:[#allocation62_spill] sm:$0xff] %v8621_v52  ;;  %vm791_vm11 = vmor %vm403_vm3, %vm599_vm14  ;;  %vm435_vm14 = vcmp.eq.s32.totalorder %v239_v46, %v7037_v32  ;;  %v208_v52 = vadd.s32 1104, %v6012_v1 }
 0x132   :  { %vm7114_vm0 = vmpackc.low %vm791_vm11, %vm790_vm15  ;;  %vm631_vm15 = vcmp.eq.s32.totalorder %v239_v46, %v7043_v20  ;;  %v8629_v46 = vmov 0 }
 0x133   :  { %v8624_v58 = vsel %vm7114_vm0, 4294967295, %v8623_v58  ;;  %4908 = vmatpush3.bf16.msk.msra.mxu0 %vm7114_vm0, %v8571_v2  ;;  %vm838_vm2 = vmor %vm450_vm6, %vm646_vm7  ;;  %vm420_vm6 = vcmp.eq.s32.totalorder %v224_v59, %v7037_v32  ;;  %vm616_vm0 = vcmp.eq.s32.totalorder %v224_v59, %v7043_v20  ;;  %v257_v59 = vadd.s32 1496, %v6012_v1 }
 0x134   :  { %8625 = vst [vmem:[#allocation63_spill] sm:$0xff] %v8624_v58  ;;  %vm839_vm3 = vmor %vm451_vm5, %vm647_vm13  ;;  %vm421_vm13 = vcmp.eq.s32.totalorder %v225_v19, %v7037_v32  ;;  %v256_v58 = vadd.s32 1488, %v6012_v1 }
 0x135   :  { %vm7127_vm11 = vmpackc.low %vm839_vm3, %vm838_vm2  ;;  %vm617_vm2 = vcmp.eq.s32.totalorder %v225_v19, %v7043_v20  ;;  %v8632_v19 = vmov 0 }
 0x136   :  { %v8627_v13 = vsel %vm7127_vm11, 4294967295, %v8626_v13  ;;  %4953 = vmatprep.subr.msk.bf16.mxu1 %vm7127_vm11, %v8571_v2  ;;  %vm822_vm7 = vmor %vm434_vm12, %vm630_vm4  ;;  %vm404_vm12 = vcmp.eq.s32.totalorder %v208_v52, %v7037_v32  ;;  %vm600_vm11 = vcmp.eq.s32.totalorder %v208_v52, %v7043_v20  ;;  %v241_v52 = vadd.s32 1368, %v6012_v1 }
 0x137   :  { %8628 = vst [vmem:[#allocation64_spill] sm:$0xff] %v8627_v13  ;;  %vm823_vm5 = vmor %vm435_vm14, %vm631_vm15  ;;  %vm405_vm15 = vcmp.eq.s32.totalorder %v209_v7, %v7037_v32  ;;  %v240_v13 = vadd.s32 1360, %v6012_v1 }
 0x138   :  { %vm7140_vm3 = vmpackc.low %vm823_vm5, %vm822_vm7  ;;  %vm601_vm7 = vcmp.eq.s32.totalorder %v209_v7, %v7043_v20  ;;  %v8635_v7 = vmov 0 }
 0x139   :  { %v8630_v46 = vsel %vm7140_vm3, 4294967295, %v8629_v46  ;;  %4954 = vmatpush3.bf16.msk.msra.mxu1 %vm7140_vm3, %v8571_v2  ;;  %vm808_vm4 = vmor %vm420_vm6, %vm616_vm0  ;;  %vm452_vm6 = vcmp.eq.s32.totalorder %v256_v58, %v7037_v32  ;;  %vm648_vm3 = vcmp.eq.s32.totalorder %v256_v58, %v7043_v20  ;;  %v227_v58 = vadd.s32 1256, %v6012_v1 }
 0x13a   :  { %8631 = vst [vmem:[#allocation65_spill] sm:$0xff] %v8630_v46  ;;  %vm809_vm14 = vmor %vm421_vm13, %vm617_vm2  ;;  %vm453_vm2 = vcmp.eq.s32.totalorder %v257_v59, %v7037_v32  ;;  %v226_v46 = vadd.s32 1248, %v6012_v1 }
 0x13b   :  { %vm7153_vm5 = vmpackc.low %vm809_vm14, %vm808_vm4  ;;  %vm649_vm4 = vcmp.eq.s32.totalorder %v257_v59, %v7043_v20  ;;  %v8638_v59 = vmov 0 }
 0x13c   :  { %v8633_v19 = vsel %vm7153_vm5, 4294967295, %v8632_v19  ;;  %4909 = vmatprep.subr.msk.bf16.mxu0 %vm7153_vm5, %v8571_v2  ;;  %vm792_vm0 = vmor %vm404_vm12, %vm600_vm11  ;;  %vm436_vm12 = vcmp.eq.s32.totalorder %v240_v13, %v7037_v32  ;;  %vm632_vm5 = vcmp.eq.s32.totalorder %v240_v13, %v7043_v20  ;;  %v211_v13 = vadd.s32 1128, %v6012_v1 }
 0x13d   :  { %8634 = vst [vmem:[#allocation66_spill] sm:$0xff] %v8633_v19  ;;  %vm793_vm13 = vmor %vm405_vm15, %vm601_vm7  ;;  %vm437_vm7 = vcmp.eq.s32.totalorder %v241_v52, %v7037_v32  ;;  %v210_v19 = vadd.s32 1120, %v6012_v1 }
 0x13e   :  { %vm7166_vm14 = vmpackc.low %vm793_vm13, %vm792_vm0  ;;  %vm633_vm0 = vcmp.eq.s32.totalorder %v241_v52, %v7043_v20  ;;  %v8641_v52 = vmov 0 }
 0x13f   :  { %v8636_v7 = vsel %vm7166_vm14, 4294967295, %v8635_v7  ;;  %4910 = vmatpush3.bf16.msk.msra.mxu0 %vm7166_vm14, %v8571_v2  ;;  %vm840_vm11 = vmor %vm452_vm6, %vm648_vm3  ;;  %vm422_vm6 = vcmp.eq.s32.totalorder %v226_v46, %v7037_v32  ;;  %vm618_vm14 = vcmp.eq.s32.totalorder %v226_v46, %v7043_v20  ;;  %v259_v46 = vadd.s32 1512, %v6012_v1 }
 0x140   :  { %8637 = vst [vmem:[#allocation67_spill] sm:$0xff] %v8636_v7  ;;  %vm841_vm15 = vmor %vm453_vm2, %vm649_vm4  ;;  %vm423_vm4 = vcmp.eq.s32.totalorder %v227_v58, %v7037_v32  ;;  %v258_v7 = vadd.s32 1504, %v6012_v1 }
 0x141   :  { %vm7179_vm13 = vmpackc.low %vm841_vm15, %vm840_vm11  ;;  %vm619_vm11 = vcmp.eq.s32.totalorder %v227_v58, %v7043_v20  ;;  %v8644_v58 = vmov 0 }
 0x142   :  { %v8639_v59 = vsel %vm7179_vm13, 4294967295, %v8638_v59  ;;  %4955 = vmatprep.subr.msk.bf16.mxu1 %vm7179_vm13, %v8571_v2  ;;  %vm824_vm3 = vmor %vm436_vm12, %vm632_vm5  ;;  %vm406_vm12 = vcmp.eq.s32.totalorder %v210_v19, %v7037_v32  ;;  %vm602_vm13 = vcmp.eq.s32.totalorder %v210_v19, %v7043_v20  ;;  %v243_v19 = vadd.s32 1384, %v6012_v1 }
 0x143   :  { %8640 = vst [vmem:[#allocation68_spill] sm:$0xff] %v8639_v59  ;;  %vm825_vm2 = vmor %vm437_vm7, %vm633_vm0  ;;  %vm407_vm0 = vcmp.eq.s32.totalorder %v211_v13, %v7037_v32  ;;  %v242_v59 = vadd.s32 1376, %v6012_v1 }
 0x144   :  { %vm7192_vm15 = vmpackc.low %vm825_vm2, %vm824_vm3  ;;  %vm603_vm3 = vcmp.eq.s32.totalorder %v211_v13, %v7043_v20  ;;  %v8647_v13 = vmov 0 }
 0x145   :  { %v8642_v52 = vsel %vm7192_vm15, 4294967295, %v8641_v52  ;;  %4956 = vmatpush3.bf16.msk.msra.mxu1 %vm7192_vm15, %v8571_v2  ;;  %vm810_vm5 = vmor %vm422_vm6, %vm618_vm14  ;;  %vm454_vm6 = vcmp.eq.s32.totalorder %v258_v7, %v7037_v32  ;;  %vm650_vm15 = vcmp.eq.s32.totalorder %v258_v7, %v7043_v20  ;;  %v229_v7 = vadd.s32 1272, %v6012_v1 }
 0x146   :  { %8643 = vst [vmem:[#allocation69_spill] sm:$0xff] %v8642_v52  ;;  %vm811_vm7 = vmor %vm423_vm4, %vm619_vm11  ;;  %vm455_vm11 = vcmp.eq.s32.totalorder %v259_v46, %v7037_v32  ;;  %v228_v52 = vadd.s32 1264, %v6012_v1 }
 0x147   :  { %vm7205_vm2 = vmpackc.low %vm811_vm7, %vm810_vm5  ;;  %vm651_vm5 = vcmp.eq.s32.totalorder %v259_v46, %v7043_v20  ;;  %v8650_v46 = vmov 0 }
 0x148   :  { %v8645_v58 = vsel %vm7205_vm2, 4294967295, %v8644_v58  ;;  %4911 = vmatprep.subr.msk.bf16.mxu0 %vm7205_vm2, %v8571_v2  ;;  %vm794_vm14 = vmor %vm406_vm12, %vm602_vm13  ;;  %vm438_vm12 = vcmp.eq.s32.totalorder %v242_v59, %v7037_v32  ;;  %vm634_vm2 = vcmp.eq.s32.totalorder %v242_v59, %v7043_v20  ;;  %v213_v59 = vadd.s32 1144, %v6012_v1 }
 0x149   :  { %8646 = vst [vmem:[#allocation70_spill] sm:$0xff] %v8645_v58  ;;  %vm795_vm4 = vmor %vm407_vm0, %vm603_vm3  ;;  %vm439_vm3 = vcmp.eq.s32.totalorder %v243_v19, %v7037_v32  ;;  %v212_v58 = vadd.s32 1136, %v6012_v1 }
 0x14a   :  { %vm7218_vm7 = vmpackc.low %vm795_vm4, %vm794_vm14  ;;  %vm635_vm14 = vcmp.eq.s32.totalorder %v243_v19, %v7043_v20  ;;  %v8653_v19 = vmov 0 }
 0x14b   :  { %v8648_v13 = vsel %vm7218_vm7, 4294967295, %v8647_v13  ;;  %4912 = vmatpush3.bf16.msk.msra.mxu0 %vm7218_vm7, %v8571_v2  ;;  %vm842_vm13 = vmor %vm454_vm6, %vm650_vm15  ;;  %vm424_vm6 = vcmp.eq.s32.totalorder %v228_v52, %v7037_v32  ;;  %vm620_vm7 = vcmp.eq.s32.totalorder %v228_v52, %v7043_v20  ;;  %v261_v52 = vadd.s32 1528, %v6012_v1 }
 0x14c   :  { %8649 = vst [vmem:[#allocation71_spill] sm:$0xff] %v8648_v13  ;;  %vm843_vm0 = vmor %vm455_vm11, %vm651_vm5  ;;  %vm425_vm5 = vcmp.eq.s32.totalorder %v229_v7, %v7037_v32  ;;  %v260_v13 = vadd.s32 1520, %v6012_v1 }
 0x14d   :  { %vm7231_vm4 = vmpackc.low %vm843_vm0, %vm842_vm13  ;;  %vm621_vm13 = vcmp.eq.s32.totalorder %v229_v7, %v7043_v20  ;;  %v8656_v7 = vmov 0 }
 0x14e   :  { %v8651_v46 = vsel %vm7231_vm4, 4294967295, %v8650_v46  ;;  %4957 = vmatprep.subr.msk.bf16.mxu1 %vm7231_vm4, %v8571_v2  ;;  %vm826_vm15 = vmor %vm438_vm12, %vm634_vm2  ;;  %vm408_vm12 = vcmp.eq.s32.totalorder %v212_v58, %v7037_v32  ;;  %vm604_vm4 = vcmp.eq.s32.totalorder %v212_v58, %v7043_v20  ;;  %v245_v58 = vadd.s32 1400, %v6012_v1 }
 0x14f   :  { %8652 = vst [vmem:[#allocation72_spill] sm:$0xff] %v8651_v46  ;;  %vm827_vm11 = vmor %vm439_vm3, %vm635_vm14  ;;  %vm409_vm14 = vcmp.eq.s32.totalorder %v213_v59, %v7037_v32  ;;  %v244_v46 = vadd.s32 1392, %v6012_v1  ;;  %v5616_v1 = vld [vmem:[#allocation6 + $0x84] ss:$48 sps:$4 sm:$0xff]  }
 0x150   :  { %vm7244_vm0 = vmpackc.low %vm827_vm11, %vm826_vm15  ;;  %vm605_vm15 = vcmp.eq.s32.totalorder %v213_v59, %v7043_v20  ;;  %v8659_v59 = vmov 0  ;;  %vm637_vm1 = vcmp.eq.s32.totalorder %v245_v58, %v7043_v20 }
 0x151   :  { %v8654_v19 = vsel %vm7244_vm0, 4294967295, %v8653_v19  ;;  %4958 = vmatpush3.bf16.msk.msra.mxu1 %vm7244_vm0, %v8571_v2  ;;  %vm812_vm2 = vmor %vm424_vm6, %vm620_vm7  ;;  %vm456_vm6 = vcmp.eq.s32.totalorder %v260_v13, %v7037_v32  ;;  %vm652_vm0 = vcmp.eq.s32.totalorder %v260_v13, %v7043_v20  ;;  %v8662_v13 = vmov 0 }
 0x152   :  { %8655 = vst [vmem:[#allocation73_spill] sm:$0xff] %v8654_v19  ;;  %vm813_vm3 = vmor %vm425_vm5, %vm621_vm13  ;;  %vm457_vm13 = vcmp.eq.s32.totalorder %v261_v52, %v7037_v32  ;;  %v5610_v19 = vld [vmem:[#allocation6 + $0x20] ss:$48 sps:$4 sm:$0xff]  }
 0x153   :  { %vm7257_vm11 = vmpackc.low %vm813_vm3, %vm812_vm2  ;;  %vm653_vm2 = vcmp.eq.s32.totalorder %v261_v52, %v7043_v20  ;;  %v5622_v52 = vld [vmem:[#allocation6 + $0xe4] ss:$48 sps:$4 sm:$0xff]  }
 0x154   :  { %v8657_v7 = vsel %vm7257_vm11, 4294967295, %v8656_v7  ;;  %4913 = vmatprep.subr.msk.bf16.mxu0 %vm7257_vm11, %v8571_v2  ;;  %vm796_vm7 = vmor %vm408_vm12, %vm604_vm4  ;;  %vm440_vm12 = vcmp.eq.s32.totalorder %v244_v46, %v7037_v32  ;;  %vm636_vm11 = vcmp.eq.s32.totalorder %v244_v46, %v7043_v20  ;;  %v5613_v20 = vld [vmem:[#allocation6 + $0x28] ss:$48 sps:$4 sm:$0xff]   ;;  %v5618_v46 = vld [vmem:[#allocation6 + $0x8c] ss:$48 sps:$4 sm:$0xff]  }
 0x155   :  { %8658 = vst [vmem:[#allocation74_spill] sm:$0xff] %v8657_v7  ;;  %vm797_vm5 = vmor %vm409_vm14, %vm605_vm15  ;;  %vm441_vm15 = vcmp.eq.s32.totalorder %v245_v58, %v7037_v32  ;;  %v8665_v32 = vmov 0  ;;  %v5621_v58 = vld [vmem:[#allocation6 + $0x88] ss:$48 sps:$4 sm:$0xff]  }
 0x156   :  { %vm7270_vm3 = vmpackc.low %vm797_vm5, %vm796_vm7 }
 0x157   :  { %v8660_v59 = vsel %vm7270_vm3, 4294967295, %v8659_v59  ;;  %4914 = vmatpush3.bf16.msk.msra.mxu0 %vm7270_vm3, %v8571_v2  ;;  %vm844_vm4 = vmor %vm456_vm6, %vm652_vm0 }
 0x158   :  { %8661 = vst [vmem:[#allocation75_spill] sm:$0xff] %v8660_v59  ;;  %vm845_vm14 = vmor %vm457_vm13, %vm653_vm2  ;;  %4991 = vmatprep.subr.msk.bf16.mxu0 %vm6037_vm10, %v8571_v2  ;;  %vm8670_vm13 = vnez %v8427_v36  ;;  %vm8671_vm2 = vnez %v8417_v21 }
 0x159   :  { %vm7284_vm7 = vmpackc.low %vm845_vm14, %vm844_vm4  ;;  %vm8672_vm4 = vnez %v8421_v27  ;;  %vm8674_vm14 = vnez %v8435_v48  ;;  %v5714_v27 = vld [vmem:[#allocation3 + $0xec] ss:$48 sps:$4 sm:$0xff]  }
 0x15a   :  { %v8663_v13 = vsel %vm7284_vm7, 4294967295, %v8662_v13  ;;  %4959 = vmatprep.subr.msk.bf16.mxu1 %vm7284_vm7, %v8571_v2  ;;  %vm828_vm0 = vmor %vm440_vm12, %vm636_vm11  ;;  %2071 = vmatmul.mubr.bf16.vlgmr.msra.gmra.mrb[40].mxu0 %v5610_v19  ;;  %v5620_v19 = vld [vmem:[#allocation6 + $0x80] ss:$48 sps:$4 sm:$0xff]   ;;  %vm8669_vm11 = vnez %v8423_v30  ;;  %vm8673_vm12 = vnez %v8431_v42 }
 0x15b   :  { %8664 = vst [vmem:[#allocation76_spill] sm:$0xff] %v8663_v13  ;;  %vm829_vm6 = vmor %vm441_vm15, %vm637_vm1  ;;  %4992 = vmatpush3.bf16.msk.msra.mxu0 %vm6065_vm8, %v8571_v2  ;;  %2078 = vmatprep.mubr.bf16.mxu0 %v5616_v1  ;;  %vm8668_vm1 = vnez %v8413_v15  ;;  %vm8675_vm15 = vnez %v8425_v33  ;;  %v5624_v1 = vld [vmem:[#allocation6 + $0xec] ss:$48 sps:$4 sm:$0xff]  }
 0x15c   :  { %vm7294_vm5 = vmpackc.low %vm829_vm6, %vm828_vm0  ;;  %4993 = vmatprep.subr.msk.bf16.mxu0 %vm6091_vm9, %v8571_v2  ;;  %vm8676_vm0 = vnez %v8429_v39  ;;  %vm8677_vm6 = vnez %v8439_v54 }
 0x15d   :  { %v8666_v32 = vsel %vm7294_vm5, 4294967295, %v8665_v32  ;;  %4960 = vmatpush3.bf16.msk.msra.mxu1 %vm7294_vm5, %v8571_v2 }
 0x15e   :  { %8667 = vst [vmem:[#allocation77_spill] sm:$0xff] %v8666_v32  ;;  %5037 = vmatprep.subr.msk.bf16.mxu1 %vm8668_vm1, %v8571_v2 }
 0x15f   :  { %4994 = vmatpush3.bf16.msk.msra.mxu0 %vm8669_vm11, %v8571_v2 }
 0x160   :  { %2144 = vmatmul.mubr.bf16.vlgmr.msra.gmra.mrb[40].mxu1 %v5613_v20  ;;  %4995 = vmatprep.subr.msk.bf16.mxu0 %vm8670_vm13, %v8571_v2  ;;  %v5626_v20 = vld [vmem:[#allocation6 + $0xe0] ss:$48 sps:$4 sm:$0xff]  }
 0x161   :  { %5038 = vmatpush3.bf16.msk.msra.mxu1 %vm8671_vm2, %v8571_v2  ;;  %2151 = vmatprep.mubr.bf16.mxu1 %v5618_v46  ;;  %v5628_v46 = vld [vmem:[#allocation6 + $0x144] ss:$48 sps:$4 sm:$0xff]  }
 0x162   :  { %5039 = vmatprep.subr.msk.bf16.mxu1 %vm8672_vm4, %v8571_v2  ;;  %2079 = vmatmul.mubr.bf16.gmra.mrb[44].mxu0 %v5620_v19  ;;  %v5627_v19 = vld [vmem:[#allocation6 + $0xe8] ss:$48 sps:$4 sm:$0xff]  }
 0x163   :  { %4996 = vmatpush3.bf16.msk.msra.mxu0 %vm8673_vm12, %v8571_v2  ;;  %2086 = vmatprep.mubr.bf16.mxu0 %v5622_v52  ;;  %vm8678_vm12 = vnez %v8444_v60  ;;  %v5630_v52 = vld [vmem:[#allocation6 + $0x14c] ss:$48 sps:$4 sm:$0xff]  }
 0x164   :  { %4997 = vmatprep.subr.msk.bf16.mxu0 %vm8674_vm14, %v8571_v2  ;;  %vm8679_vm14 = vnez %v8433_v45 }
 0x165   :  { %5040 = vmatpush3.bf16.msk.msra.mxu1 %vm8675_vm15, %v8571_v2  ;;  %vm8681_vm15 = vnez %v8449_v3 }
 0x166   :  { %5041 = vmatprep.subr.msk.bf16.mxu1 %vm8676_vm0, %v8571_v2  ;;  %vm8680_vm0 = vnez %v8437_v51 }
 0x167   :  { %4998 = vmatpush3.bf16.msk.msra.mxu0 %vm8677_vm6, %v8571_v2  ;;  %vm8682_vm6 = vnez %v8454_v12 }
 0x168   :  { %2152 = vmatmul.mubr.bf16.gmra.mrb[44].mxu1 %v5621_v58  ;;  %4999 = vmatprep.subr.msk.bf16.mxu0 %vm8678_vm12, %v8571_v2  ;;  %vm8683_vm12 = vnez %v8441_v57  ;;  %v5632_v58 = vld [vmem:[#allocation6 + $0x140] ss:$48 sps:$4 sm:$0xff]  }
 0x169   :  { %5042 = vmatpush3.bf16.msk.msra.mxu1 %vm8679_vm14, %v8571_v2  ;;  %2159 = vmatprep.mubr.bf16.mxu1 %v5624_v1  ;;  %vm8684_vm14 = vnez %v8446_v63  ;;  %v5634_v1 = vld [vmem:[#allocation6 + $0x1a4] ss:$48 sps:$4 sm:$0xff]  }
 0x16a   :  { %2087 = vmatmul.mubr.bf16.gmra.mrb[48].mxu0 %v5626_v20  ;;  %5043 = vmatprep.subr.msk.bf16.mxu1 %vm8680_vm0, %v8571_v2  ;;  %vm8685_vm0 = vnez %v8459_v22 }
 0x16b   :  { %5000 = vmatpush3.bf16.msk.msra.mxu0 %vm8681_vm15, %v8571_v2  ;;  %2094 = vmatprep.mubr.bf16.mxu0 %v5628_v46  ;;  %vm8686_vm15 = vnez %v8464_v31 }
 0x16c   :  { %5001 = vmatprep.subr.msk.bf16.mxu0 %vm8682_vm6, %v8571_v2 }
 0x16d   :  { %5044 = vmatpush3.bf16.msk.msra.mxu1 %vm8683_vm12, %v8571_v2  ;;  %vm8687_vm12 = vnez %v8451_v8 }
 0x16e   :  { %5045 = vmatprep.subr.msk.bf16.mxu1 %vm8684_vm14, %v8571_v2  ;;  %vm8688_vm14 = vnez %v8456_v17  ;;  %v5638_v17 = vld [vmem:[#allocation6 + $0x1a0] ss:$48 sps:$4 sm:$0xff]  }
 0x16f   :  { %5002 = vmatpush3.bf16.msk.msra.mxu0 %vm8685_vm0, %v8571_v2  ;;  %vm8689_vm0 = vnez %v8470_v40 }
 0x170   :  { %2160 = vmatmul.mubr.bf16.gmra.mrb[48].mxu1 %v5627_v19  ;;  %5003 = vmatprep.subr.msk.bf16.mxu0 %vm8686_vm15, %v8571_v2  ;;  %v4731_v20 = vpop.f32.mrb[0].mxu0  ;;  %vm8690_vm15 = vnez %v8476_v49  ;;  %v5642_v49 = vld [vmem:[#allocation3 + $0x4] ss:$48 sps:$4 sm:$0xff]  }
 0x171   :  { %2167 = vmatprep.mubr.bf16.mxu1 %v5630_v52  ;;  %5046 = vmatpush3.bf16.msk.msra.mxu1 %vm8687_vm12, %v8571_v2  ;;  %v4732_v46 = vpop.f32.mrb[1].mxu0  ;;  %v5633_v52 = vld [vmem:[#allocation6 + $0x148] ss:$48 sps:$4 sm:$0xff]   ;;  %vm8691_vm12 = vnez %v8462_v26 }
 0x172   :  { %2095 = vmatmul.mubr.bf16.gmra.mrb[52].mxu0 %v5632_v58  ;;  %5047 = vmatprep.subr.msk.bf16.mxu1 %vm8688_vm14, %v8571_v2  ;;  %v4733_v22 = vadd.f32 %v4732_v46, %v4731_v20  ;;  %v4734_v63 = vpop.f32.mrb[2].mxu0  ;;  %v5636_v20 = vld [vmem:[#allocation6 + $0x1ac] ss:$48 sps:$4 sm:$0xff]   ;;  %vm8693_vm14 = vnez %v8482_v61 }
 0x173   :  { %2102 = vmatprep.mubr.bf16.mxu0 %v5634_v1  ;;  %5004 = vmatpush3.bf16.msk.msra.mxu0 %vm8689_vm0, %v8571_v2  ;;  %v4777_v19 = vpop.f32.mrb[0].mxu1  ;;  %v4735_v31 = vpop.f32.mrb[3].mxu0  ;;  %vm8692_vm0 = vnez %v8467_v35  ;;  %v5643_v35 = vld [vmem:[#allocation3 + $0x8] ss:$48 sps:$4 sm:$0xff]  }
 0x174   :  { %5005 = vmatprep.subr.msk.bf16.mxu0 %vm8690_vm15, %v8571_v2  ;;  %v4778_v8 = vpop.f32.mrb[1].mxu1  ;;  %v4736_v58 = vadd.f32 %v4735_v31, %v4734_v63  ;;  %vm8695_vm15 = vnez %v8473_v44 }
 0x175   :  { %5048 = vmatpush3.bf16.msk.msra.mxu1 %vm8691_vm12, %v8571_v2  ;;  %v4779_v46 = vadd.f32 %v4778_v8, %v4777_v19  ;;  %v4780_v1 = vpop.f32.mrb[2].mxu1  ;;  %vm8694_vm12 = vnez %v8488_v14 }
 0x176   :  { %5049 = vmatprep.subr.msk.bf16.mxu1 %vm8692_vm0, %v8571_v2  ;;  %v4781_v40 = vpop.f32.mrb[3].mxu1  ;;  %vm8705_vm0 = vnez %v8508_v50 }
 0x177   :  { %5006 = vmatpush3.bf16.msk.msra.mxu0 %vm8693_vm14, %v8571_v2  ;;  %v7382_v57 = vadd.f32 %v4779_v46, %v4733_v22  ;;  %v4782_v63 = vadd.f32 %v4781_v40, %v4780_v1  ;;  %vm8696_vm14 = vnez %v8479_v53  ;;  %v5639_v1 = vld [vmem:[#allocation6 + $0x1a8] ss:$48 sps:$4 sm:$0xff]  }
 0x178   :  { %2168 = vmatmul.mubr.bf16.gmra.mrb[52].mxu1 %v5633_v52  ;;  %5083 = vmatprep.subr.msk.bf16.mxu0 %vm8694_vm12, %v8571_v2  ;;  %v4737_v8 = vpop.f32.mrb[4].mxu0  ;;  %vm8697_vm12 = vnez %v8485_v4 }
 0x179   :  { %2175 = vmatprep.mubr.bf16.mxu1 %v5636_v20  ;;  %5050 = vmatpush3.bf16.msk.msra.mxu1 %vm8695_vm15, %v8571_v2  ;;  %v7390_v31 = vadd.f32 %v4782_v63, %v4736_v58  ;;  %v4738_v19 = vpop.f32.mrb[5].mxu0  ;;  %v5645_v58 = vld [vmem:[#allocation3 + $0xc] ss:$48 sps:$4 sm:$0xff]   ;;  %vm8698_vm15 = vnez %v8493_v37 }
 0x17a   :  { %2103 = vmatmul.mubr.bf16.gmra.mrb[56].mxu0 %v5638_v17  ;;  %5051 = vmatprep.subr.msk.bf16.mxu1 %vm8696_vm14, %v8571_v2  ;;  %v4739_v22 = vadd.f32 %v4738_v19, %v4737_v8  ;;  %v4740_v40 = vpop.f32.mrb[6].mxu0  ;;  %v5640_v17 = vld [vmem:[#allocation3] ss:$48 sps:$4 sm:$0xff]   ;;  %v5646_v19 = vld [vmem:[#allocation3 + $0x64] ss:$48 sps:$4 sm:$0xff]   ;;  %vm8701_vm14 = vnez %v8500_v0 }
 0x17b   :  { %2516 = vmatprep.mubr.bf16.mxu0 %v5642_v49  ;;  %v4783_v52 = vpop.f32.mrb[4].mxu1  ;;  %v4741_v46 = vpop.f32.mrb[7].mxu0 }
 0x17c   :  { %v4784_v14 = vpop.f32.mrb[5].mxu1  ;;  %v4742_v20 = vadd.f32 %v4741_v46, %v4740_v40 }
 0x17d   :  { %5052 = vmatpush3.bf16.msk.msra.mxu1 %vm8697_vm12, %v8571_v2  ;;  %v4785_v63 = vadd.f32 %v4784_v14, %v4783_v52  ;;  %v4786_v44 = vpop.f32.mrb[6].mxu1  ;;  %vm8699_vm12 = vnez %v8491_v28 }
 0x17e   :  { %5129 = vmatprep.subr.msk.bf16.mxu1 %vm8698_vm15, %v8571_v2  ;;  %v4787_v8 = vpop.f32.mrb[7].mxu1  ;;  %vm8700_vm15 = vnez %v8498_v55 }
 0x17f   :  { %v7401_v49 = vadd.f32 %v4785_v63, %v4739_v22  ;;  %v4788_v53 = vadd.f32 %v4787_v8, %v4786_v44  ;;  %v5652_v63 = vld [vmem:[#allocation3 + $0xc4] ss:$48 sps:$4 sm:$0xff]  }
 0x180   :  { %2176 = vmatmul.mubr.bf16.gmra.mrb[56].mxu1 %v5639_v1  ;;  %v4743_v61 = vpop.f32.mrb[8].mxu0 }
 0x181   :  { %2589 = vmatprep.mubr.bf16.mxu1 %v5645_v58  ;;  %v7403_v40 = vadd.f32 %v4788_v53, %v4742_v20  ;;  %v4744_v46 = vpop.f32.mrb[9].mxu0  ;;  %v5648_v53 = vld [vmem:[#allocation3 + $0x6c] ss:$48 sps:$4 sm:$0xff]   ;;  %v5650_v58 = vld [vmem:[#allocation3 + $0x60] ss:$48 sps:$4 sm:$0xff]  }
 0x182   :  { %2517 = vmatmul.mubr.bf16.vlgmr.msra.gmra.mrb[60].mxu0 %v5640_v17  ;;  %v4745_v4 = vadd.f32 %v4744_v46, %v4743_v61  ;;  %v4746_v14 = vpop.f32.mrb[10].mxu0 }
 0x183   :  { %5084 = vmatpush3.bf16.msk.msra.mxu0 %vm8699_vm12, %v8571_v2  ;;  %2524 = vmatprep.mubr.bf16.mxu0 %v5646_v19  ;;  %v4789_v52 = vpop.f32.mrb[8].mxu1  ;;  %v4747_v37 = vpop.f32.mrb[11].mxu0  ;;  %vm8702_vm12 = vnez %v8506_v38 }
 0x184   :  { %5085 = vmatprep.subr.msk.bf16.mxu0 %vm8700_vm15, %v8571_v2  ;;  %v4790_v44 = vpop.f32.mrb[9].mxu1  ;;  %v4748_v22 = vadd.f32 %v4747_v37, %v4746_v14  ;;  %vm8703_vm15 = vnez %v8496_v43 }
 0x185   :  { %v4791_v1 = vadd.f32 %v4790_v44, %v4789_v52  ;;  %v4792_v20 = vpop.f32.mrb[10].mxu1  ;;  %v5651_v44 = vld [vmem:[#allocation3 + $0x68] ss:$48 sps:$4 sm:$0xff]  }
 0x186   :  { %v4793_v61 = vpop.f32.mrb[11].mxu1 }
 0x187   :  { %5086 = vmatpush3.bf16.msk.msra.mxu0 %vm8701_vm14, %v8571_v2  ;;  %v7414_v17 = vadd.f32 %v4791_v1, %v4745_v4  ;;  %v4794_v8 = vadd.f32 %v4793_v61, %v4792_v20  ;;  %vm8704_vm14 = vnez %v8502_v9  ;;  %v5654_v1 = vld [vmem:[#allocation3 + $0xcc] ss:$48 sps:$4 sm:$0xff]   ;;  %v5656_v61 = vld [vmem:[#allocation3 + $0xc0] ss:$48 sps:$4 sm:$0xff]  }
 0x188   :  { %2590 = vmatmul.mubr.bf16.vlgmr.msra.gmra.mrb[60].mxu1 %v5643_v35  ;;  %5087 = vmatprep.subr.msk.bf16.mxu0 %vm8702_vm12, %v8571_v2  ;;  %v4749_v19 = vpop.f32.mrb[12].mxu0  ;;  %vm8709_vm12 = vnez %v8517_v34 }
 0x189   :  { %5130 = vmatpush3.bf16.msk.msra.mxu1 %vm8703_vm15, %v8571_v2  ;;  %2597 = vmatprep.mubr.bf16.mxu1 %v5648_v53  ;;  %v7422_v37 = vadd.f32 %v4794_v8, %v4748_v22  ;;  %v4750_v46 = vpop.f32.mrb[13].mxu0  ;;  %vm8706_vm15 = vnez %v8515_v29  ;;  %v5658_v8 = vld [vmem:[#allocation3 + $0x124] ss:$48 sps:$4 sm:$0xff]  }
 0x18a   :  { %5131 = vmatprep.subr.msk.bf16.mxu1 %vm8704_vm14, %v8571_v2  ;;  %2525 = vmatmul.mubr.bf16.gmra.mrb[64].mxu0 %v5650_v58  ;;  %v4751_v4 = vadd.f32 %v4750_v46, %v4749_v19  ;;  %v4752_v35 = vpop.f32.mrb[14].mxu0  ;;  %vm8707_vm14 = vnez %v8504_v25 }
 0x18b   :  { %5088 = vmatpush3.bf16.msk.msra.mxu0 %vm8705_vm0, %v8571_v2  ;;  %2532 = vmatprep.mubr.bf16.mxu0 %v5652_v63  ;;  %v4795_v14 = vpop.f32.mrb[12].mxu1  ;;  %v4753_v52 = vpop.f32.mrb[15].mxu0  ;;  %vm8708_vm0 = vnez %v8510_v62 }
 0x18c   :  { %5089 = vmatprep.subr.msk.bf16.mxu0 %vm8706_vm15, %v8571_v2  ;;  %v4796_v22 = vpop.f32.mrb[13].mxu1  ;;  %v4754_v53 = vadd.f32 %v4753_v52, %v4752_v35  ;;  %vm8711_vm15 = vnez %v8512_v16 }
 0x18d   :  { %5132 = vmatpush3.bf16.msk.msra.mxu1 %vm8707_vm14, %v8571_v2  ;;  %v4797_v20 = vadd.f32 %v4796_v22, %v4795_v14  ;;  %v4798_v58 = vpop.f32.mrb[14].mxu1  ;;  %vm8710_vm14 = vnez %v8525_v5 }
 0x18e   :  { %5133 = vmatprep.subr.msk.bf16.mxu1 %vm8708_vm0, %v8571_v2  ;;  %v4799_v63 = vpop.f32.mrb[15].mxu1  ;;  %vm8713_vm0 = vnez %v8527_v23 }
 0x18f   :  { %5090 = vmatpush3.bf16.msk.msra.mxu0 %vm8709_vm12, %v8571_v2  ;;  %v7442_v19 = vadd.f32 %v4797_v20, %v4751_v4  ;;  %v4800_v46 = vadd.f32 %v4799_v63, %v4798_v58  ;;  %vm8712_vm12 = vnez %v8519_v47  ;;  %v5657_v58 = vld [vmem:[#allocation3 + $0xc8] ss:$48 sps:$4 sm:$0xff]   ;;  %v5660_v63 = vld [vmem:[#allocation3 + $0x12c] ss:$48 sps:$4 sm:$0xff]  }
 0x190   :  { %2598 = vmatmul.mubr.bf16.gmra.mrb[64].mxu1 %v5651_v44  ;;  %5091 = vmatprep.subr.msk.bf16.mxu0 %vm8710_vm14, %v8571_v2  ;;  %v4755_v35 = vpop.f32.mrb[16].mxu0  ;;  %v8719_v47 = vld [vmem:[#allocation35_spill] sm:$0xff] }
 0x191   :  { %5134 = vmatpush3.bf16.msk.msra.mxu1 %vm8711_vm15, %v8571_v2  ;;  %2605 = vmatprep.mubr.bf16.mxu1 %v5654_v1  ;;  %v7450_v14 = vadd.f32 %v4800_v46, %v4754_v53  ;;  %v4756_v52 = vpop.f32.mrb[17].mxu0  ;;  %vm8714_vm15 = vnez %v8536_v11  ;;  %v5664_v11 = vld [vmem:[#allocation3 + $0x184] ss:$48 sps:$4 sm:$0xff]  }
 0x192   :  { %2533 = vmatmul.mubr.bf16.gmra.mrb[68].mxu0 %v5656_v61  ;;  %5135 = vmatprep.subr.msk.bf16.mxu1 %vm8712_vm12, %v8571_v2  ;;  %v4757_v4 = vadd.f32 %v4756_v52, %v4755_v35  ;;  %v4758_v44 = vpop.f32.mrb[18].mxu0  ;;  %v8715_v61 = vld [vmem:[#allocation30_spill] sm:$0xff]  ;;  %v8717_v52 = vld [vmem:[#allocation32_spill] sm:$0xff]  ;;  %vm8720_vm12 = vnez %v8719_v47 }
 0x193   :  { %5092 = vmatpush3.bf16.msk.msra.mxu0 %vm8713_vm0, %v8571_v2  ;;  %2540 = vmatprep.mubr.bf16.mxu0 %v5658_v8  ;;  %v4801_v22 = vpop.f32.mrb[16].mxu1  ;;  %v4759_v20 = vpop.f32.mrb[19].mxu0  ;;  %vm8716_vm14 = vnez %v8715_v61  ;;  %vm8718_vm0 = vnez %v8717_v52  ;;  %v5662_v8 = vld [vmem:[#allocation3 + $0x120] ss:$48 sps:$4 sm:$0xff]  }
 0x194   :  { %5093 = vmatprep.subr.msk.bf16.mxu0 %vm8714_vm15, %v8571_v2  ;;  %v4802_v53 = vpop.f32.mrb[17].mxu1  ;;  %v4760_v1 = vadd.f32 %v4759_v20, %v4758_v44  ;;  %v8721_v20 = vld [vmem:[#allocation38_spill] sm:$0xff]  ;;  %v8725_v47 = vld [vmem:[#allocation36_spill] sm:$0xff] }
 0x195   :  { %5136 = vmatpush3.bf16.msk.msra.mxu1 %vm8716_vm14, %v8571_v2  ;;  %v4803_v46 = vadd.f32 %v4802_v53, %v4801_v22  ;;  %v4804_v35 = vpop.f32.mrb[18].mxu1  ;;  %vm8722_vm14 = vnez %v8721_v20  ;;  %v8723_v22 = vld [vmem:[#allocation33_spill] sm:$0xff] }
 0x196   :  { %5137 = vmatprep.subr.msk.bf16.mxu1 %vm8718_vm0, %v8571_v2  ;;  %v4805_v23 = vpop.f32.mrb[19].mxu1  ;;  %vm8724_vm15 = vnez %v8723_v22 }
 0x197   :  { %5094 = vmatpush3.bf16.msk.msra.mxu0 %vm8720_vm12, %v8571_v2  ;;  %v7470_v16 = vadd.f32 %v4803_v46, %v4757_v4  ;;  %v4806_v44 = vadd.f32 %v4805_v23, %v4804_v35  ;;  %vm8726_vm12 = vnez %v8725_v47  ;;  %v8727_v23 = vld [vmem:[#allocation39_spill] sm:$0xff]  ;;  %v8733_v35 = vld [vmem:[#allocation40_spill] sm:$0xff] }
 0x198   :  { %2606 = vmatmul.mubr.bf16.gmra.mrb[68].mxu1 %v5657_v58  ;;  %5095 = vmatprep.subr.msk.bf16.mxu0 %vm8722_vm14, %v8571_v2  ;;  %vm8728_vm0 = vnez %v8727_v23  ;;  %v5663_v4 = vld [vmem:[#allocation3 + $0x128] ss:$48 sps:$4 sm:$0xff]   ;;  %v5668_v46 = vld [vmem:[#allocation3 + $0x180] ss:$48 sps:$4 sm:$0xff]   ;;  %vm8734_vm6 = vnez %v8733_v35 }
 0x199   :  { %2613 = vmatprep.mubr.bf16.mxu1 %v5660_v63  ;;  %5138 = vmatpush3.bf16.msk.msra.mxu1 %vm8724_vm15, %v8571_v2  ;;  %v7478_v53 = vadd.f32 %v4806_v44, %v4760_v1  ;;  %v8729_v58 = vld [vmem:[#allocation42_spill] sm:$0xff]  ;;  %v8731_v63 = vld [vmem:[#allocation37_spill] sm:$0xff]  ;;  %v8751_v47 = vld [vmem:[#allocation51_spill] sm:$0xff] }
 0x19a   :  { %2541 = vmatmul.mubr.bf16.gmra.mrb[72].mxu0 %v5662_v8  ;;  %5139 = vmatprep.subr.msk.bf16.mxu1 %vm8726_vm12, %v8571_v2  ;;  %vm8730_vm14 = vnez %v8729_v58  ;;  %vm8732_vm15 = vnez %v8731_v63  ;;  %v5666_v1 = vld [vmem:[#allocation3 + $0x18c] ss:$48 sps:$4 sm:$0xff]   ;;  %v5672_v8 = vld [vmem:[#allocation3 + $0x14] ss:$48 sps:$4 sm:$0xff]   ;;  %v5669_v35 = vld [vmem:[#allocation3 + $0x188] ss:$48 sps:$4 sm:$0xff]  }
 0x19b   :  { %2548 = vmatprep.mubr.bf16.mxu0 %v5664_v11  ;;  %5096 = vmatpush3.bf16.msk.msra.mxu0 %vm8728_vm0, %v8571_v2  ;;  %v8735_v11 = vld [vmem:[#allocation43_spill] sm:$0xff]  ;;  %v8737_v44 = vld [vmem:[#allocation46_spill] sm:$0xff]  ;;  %v8739_v63 = vld [vmem:[#allocation41_spill] sm:$0xff] }
 0x19c   :  { %5097 = vmatprep.subr.msk.bf16.mxu0 %vm8730_vm14, %v8571_v2  ;;  %vm8736_vm12 = vnez %v8735_v11  ;;  %vm8738_vm0 = vnez %v8737_v44  ;;  %v8741_v58 = vld [vmem:[#allocation44_spill] sm:$0xff]  ;;  %v8743_v11 = vld [vmem:[#allocation45_spill] sm:$0xff] }
 0x19d   :  { %5140 = vmatpush3.bf16.msk.msra.mxu1 %vm8732_vm15, %v8571_v2  ;;  %vm8740_vm15 = vnez %v8739_v63  ;;  %vm8742_vm14 = vnez %v8741_v58  ;;  %v5670_v23 = vld [vmem:[#allocation3 + $0x10] ss:$48 sps:$4 sm:$0xff]  }
 0x19e   :  { %5141 = vmatprep.subr.msk.bf16.mxu1 %vm8734_vm6, %v8571_v2  ;;  %v8745_v44 = vld [vmem:[#allocation48_spill] sm:$0xff]  ;;  %v8749_v58 = vld [vmem:[#allocation50_spill] sm:$0xff]  ;;  %vm8759_vm6 = vnez %v8600_v56 }
 0x19f   :  { %5098 = vmatpush3.bf16.msk.msra.mxu0 %vm8736_vm12, %v8571_v2  ;;  %vm8744_vm12 = vnez %v8743_v11  ;;  %v5678_v11 = vld [vmem:[#allocation3 + $0x7c] ss:$48 sps:$4 sm:$0xff]   ;;  %v5680_v63 = vld [vmem:[#allocation3 + $0x70] ss:$48 sps:$4 sm:$0xff]  }
 0x1a0   :  { %2614 = vmatmul.mubr.bf16.gmra.mrb[72].mxu1 %v5663_v4  ;;  %5175 = vmatprep.subr.msk.bf16.mxu0 %vm8738_vm0, %v8571_v2  ;;  %v5675_v4 = vld [vmem:[#allocation3 + $0x1c] ss:$48 sps:$4 sm:$0xff]   ;;  %vm8746_vm0 = vnez %v8745_v44  ;;  %v5682_v44 = vld [vmem:[#allocation3 + $0xd4] ss:$48 sps:$4 sm:$0xff]  }
 0x1a1   :  { %2621 = vmatprep.mubr.bf16.mxu1 %v5666_v1  ;;  %5142 = vmatpush3.bf16.msk.msra.mxu1 %vm8740_vm15, %v8571_v2  ;;  %v5676_v1 = vld [vmem:[#allocation3 + $0x74] ss:$48 sps:$4 sm:$0xff]   ;;  %v8766_v56 = vld [vmem:[#allocation62_spill] sm:$0xff] }
 0x1a2   :  { %2549 = vmatmul.mubr.bf16.gmra.mrb[76].mxu0 %v5668_v46  ;;  %5143 = vmatprep.subr.msk.bf16.mxu1 %vm8742_vm14, %v8571_v2  ;;  %v8747_v46 = vld [vmem:[#allocation47_spill] sm:$0xff]  ;;  %vm8750_vm14 = vnez %v8749_v58 }
 0x1a3   :  { %2662 = vmatprep.mubr.bf16.mxu0 %v5672_v8  ;;  %vm8748_vm15 = vnez %v8747_v46  ;;  %v5673_v8 = vld [vmem:[#allocation3 + $0x18] ss:$48 sps:$4 sm:$0xff]  }
 0x1a5   :  { %5144 = vmatpush3.bf16.msk.msra.mxu1 %vm8744_vm12, %v8571_v2  ;;  %vm8752_vm12 = vnez %v8751_v47 }
 0x1a6   :  { %5221 = vmatprep.subr.msk.bf16.mxu1 %vm8746_vm0, %v8571_v2 }
 0x1a8   :  { %2622 = vmatmul.mubr.bf16.gmra.mrb[76].mxu1 %v5669_v35  ;;  %v8755_v35 = vld [vmem:[#allocation49_spill] sm:$0xff] }
 0x1a9   :  { %2735 = vmatprep.mubr.bf16.mxu1 %v5675_v4  ;;  %v8757_v4 = vld [vmem:[#allocation52_spill] sm:$0xff] }
 0x1aa   :  { %2663 = vmatmul.mubr.bf16.vlgmr.msra.gmra.mrb[80].mxu0 %v5670_v23  ;;  %v8753_v23 = vld [vmem:[#allocation54_spill] sm:$0xff] }
 0x1ab   :  { %5176 = vmatpush3.bf16.msk.msra.mxu0 %vm8748_vm15, %v8571_v2  ;;  %2670 = vmatprep.mubr.bf16.mxu0 %v5676_v1  ;;  %vm8754_vm0 = vnez %v8753_v23  ;;  %vm8756_vm15 = vnez %v8755_v35  ;;  %v5681_v1 = vld [vmem:[#allocation3 + $0x78] ss:$48 sps:$4 sm:$0xff]  }
 0x1ac   :  { %5177 = vmatprep.subr.msk.bf16.mxu0 %vm8750_vm14, %v8571_v2  ;;  %vm8758_vm14 = vnez %v8757_v4  ;;  %v8764_v4 = vld [vmem:[#allocation59_spill] sm:$0xff] }
 0x1af   :  { %5178 = vmatpush3.bf16.msk.msra.mxu0 %vm8752_vm12, %v8571_v2  ;;  %vm8760_vm12 = vnez %v8609_v6  ;;  %v8768_v6 = vld [vmem:[#allocation57_spill] sm:$0xff] }
 0x1b0   :  { %2736 = vmatmul.mubr.bf16.vlgmr.msra.gmra.mrb[80].mxu1 %v5673_v8  ;;  %5179 = vmatprep.subr.msk.bf16.mxu0 %vm8754_vm0, %v8571_v2  ;;  %v8761_v8 = vld [vmem:[#allocation53_spill] sm:$0xff] }
 0x1b1   :  { %5222 = vmatpush3.bf16.msk.msra.mxu1 %vm8756_vm15, %v8571_v2  ;;  %2743 = vmatprep.mubr.bf16.mxu1 %v5678_v11  ;;  %vm8762_vm0 = vnez %v8761_v8  ;;  %v5684_v11 = vld [vmem:[#allocation3 + $0xdc] ss:$48 sps:$4 sm:$0xff]   ;;  %vm8763_vm15 = vnez %v8603_v41  ;;  %v8772_v8 = vld [vmem:[#allocation63_spill] sm:$0xff] }
 0x1b2   :  { %5223 = vmatprep.subr.msk.bf16.mxu1 %vm8758_vm14, %v8571_v2  ;;  %2671 = vmatmul.mubr.bf16.gmra.mrb[84].mxu0 %v5680_v63  ;;  %v5686_v63 = vld [vmem:[#allocation3 + $0xd0] ss:$48 sps:$4 sm:$0xff]   ;;  %vm8765_vm14 = vnez %v8764_v4 }
 0x1b3   :  { %5180 = vmatpush3.bf16.msk.msra.mxu0 %vm8759_vm6, %v8571_v2  ;;  %2678 = vmatprep.mubr.bf16.mxu0 %v5682_v44  ;;  %v5688_v44 = vld [vmem:[#allocation3 + $0x134] ss:$48 sps:$4 sm:$0xff]   ;;  %vm8767_vm6 = vnez %v8766_v56  ;;  %v8770_v41 = vld [vmem:[#allocation60_spill] sm:$0xff]  ;;  %v8774_v4 = vld [vmem:[#allocation66_spill] sm:$0xff] }
 0x1b4   :  { %5181 = vmatprep.subr.msk.bf16.mxu0 %vm8760_vm12, %v8571_v2  ;;  %vm8769_vm12 = vnez %v8768_v6  ;;  %v8776_v56 = vld [vmem:[#allocation61_spill] sm:$0xff]  ;;  %v8780_v6 = vld [vmem:[#allocation67_spill] sm:$0xff] }
 0x1b5   :  { %5224 = vmatpush3.bf16.msk.msra.mxu1 %vm8762_vm0, %v8571_v2  ;;  %vm8773_vm0 = vnez %v8772_v8  ;;  %v8782_v8 = vld [vmem:[#allocation70_spill] sm:$0xff] }
 0x1b6   :  { %5225 = vmatprep.subr.msk.bf16.mxu1 %vm8763_vm15, %v8571_v2  ;;  %vm8771_vm15 = vnez %v8770_v41  ;;  %v5692_v41 = vld [vmem:[#allocation3 + $0x130] ss:$48 sps:$4 sm:$0xff]  }
 0x1b7   :  { %5182 = vmatpush3.bf16.msk.msra.mxu0 %vm8765_vm14, %v8571_v2  ;;  %vm8775_vm14 = vnez %v8774_v4 }
 0x1b8   :  { %2744 = vmatmul.mubr.bf16.gmra.mrb[84].mxu1 %v5681_v1  ;;  %5183 = vmatprep.subr.msk.bf16.mxu0 %vm8767_vm6, %v8571_v2  ;;  %v5687_v1 = vld [vmem:[#allocation3 + $0xd8] ss:$48 sps:$4 sm:$0xff]   ;;  %vm8777_vm6 = vnez %v8776_v56 }
 0x1b9   :  { %5226 = vmatpush3.bf16.msk.msra.mxu1 %vm8769_vm12, %v8571_v2  ;;  %2751 = vmatprep.mubr.bf16.mxu1 %v5684_v11  ;;  %v5690_v11 = vld [vmem:[#allocation3 + $0x13c] ss:$48 sps:$4 sm:$0xff]   ;;  %v8784_v56 = vld [vmem:[#allocation65_spill] sm:$0xff] }
 0x1ba   :  { %2679 = vmatmul.mubr.bf16.gmra.mrb[88].mxu0 %v5686_v63  ;;  %5227 = vmatprep.subr.msk.bf16.mxu1 %vm8771_vm15, %v8571_v2  ;;  %v8778_v63 = vld [vmem:[#allocation64_spill] sm:$0xff]  ;;  %vm8781_vm15 = vnez %v8780_v6  ;;  %v8788_v6 = vld [vmem:[#allocation71_spill] sm:$0xff] }
 0x1bb   :  { %5184 = vmatpush3.bf16.msk.msra.mxu0 %vm8773_vm0, %v8571_v2  ;;  %2686 = vmatprep.mubr.bf16.mxu0 %v5688_v44  ;;  %vm8779_vm12 = vnez %v8778_v63  ;;  %v5694_v44 = vld [vmem:[#allocation3 + $0x194] ss:$48 sps:$4 sm:$0xff]   ;;  %vm8783_vm0 = vnez %v8782_v8  ;;  %v8786_v63 = vld [vmem:[#allocation68_spill] sm:$0xff] }
 0x1bc   :  { %5185 = vmatprep.subr.msk.bf16.mxu0 %vm8775_vm14, %v8571_v2  ;;  %vm8790_vm14 = vnez %v8657_v7  ;;  %v8793_v8 = vld [vmem:[#allocation72_spill] sm:$0xff] }
 0x1bd   :  { %5228 = vmatpush3.bf16.msk.msra.mxu1 %vm8777_vm6, %v8571_v2  ;;  %vm8785_vm6 = vnez %v8784_v56  ;;  %v5696_v56 = vld [vmem:[#allocation3 + $0x19c] ss:$48 sps:$4 sm:$0xff]  }
 0x1be   :  { %5229 = vmatprep.subr.msk.bf16.mxu1 %vm8779_vm12, %v8571_v2  ;;  %vm8787_vm12 = vnez %v8786_v63  ;;  %v5703_v63 = vld [vmem:[#allocation3 + $0x28] ss:$48 sps:$4 sm:$0xff]  }
 0x1bf   :  { %5186 = vmatpush3.bf16.msk.msra.mxu0 %vm8781_vm15, %v8571_v2  ;;  %vm8789_vm15 = vnez %v8788_v6 }
 0x1c0   :  { %2752 = vmatmul.mubr.bf16.gmra.mrb[88].mxu1 %v5687_v1  ;;  %5187 = vmatprep.subr.msk.bf16.mxu0 %vm8783_vm0, %v8571_v2  ;;  %v5693_v1 = vld [vmem:[#allocation3 + $0x138] ss:$48 sps:$4 sm:$0xff]  }
 0x1c1   :  { %2759 = vmatprep.mubr.bf16.mxu1 %v5690_v11  ;;  %5230 = vmatpush3.bf16.msk.msra.mxu1 %vm8785_vm6, %v8571_v2  ;;  %v8791_v11 = vld [vmem:[#allocation69_spill] sm:$0xff]  ;;  %vm8794_vm6 = vnez %v8793_v8 }
 0x1c2   :  { %2687 = vmatmul.mubr.bf16.gmra.mrb[92].mxu0 %v5692_v41  ;;  %5231 = vmatprep.subr.msk.bf16.mxu1 %vm8787_vm12, %v8571_v2  ;;  %vm8792_vm0 = vnez %v8791_v11  ;;  %v5698_v41 = vld [vmem:[#allocation3 + $0x190] ss:$48 sps:$4 sm:$0xff]   ;;  %v5699_v8 = vld [vmem:[#allocation3 + $0x198] ss:$48 sps:$4 sm:$0xff]  }
 0x1c3   :  { %2694 = vmatprep.mubr.bf16.mxu0 %v5694_v44  ;;  %5188 = vmatpush3.bf16.msk.msra.mxu0 %vm8789_vm15, %v8571_v2  ;;  %v5702_v44 = vld [vmem:[#allocation3 + $0x24] ss:$48 sps:$4 sm:$0xff]  }
 0x1c4   :  { %5189 = vmatprep.subr.msk.bf16.mxu0 %vm8790_vm14, %v8571_v2  ;;  %v8795_v11 = vld [vmem:[#allocation73_spill] sm:$0xff] }
 0x1c5   :  { %5232 = vmatpush3.bf16.msk.msra.mxu1 %vm8792_vm0, %v8571_v2  ;;  %vm8796_vm0 = vnez %v8795_v11  ;;  %v5706_v11 = vld [vmem:[#allocation3 + $0x84] ss:$48 sps:$4 sm:$0xff]  }
 0x1c6   :  { %5233 = vmatprep.subr.msk.bf16.mxu1 %vm8794_vm6, %v8571_v2 }
 0x1c7   :  { %5190 = vmatpush3.bf16.msk.msra.mxu0 %vm7270_vm3, %v8571_v2 }
 0x1c8   :  { %2760 = vmatmul.mubr.bf16.gmra.mrb[92].mxu1 %v5693_v1  ;;  %5267 = vmatprep.subr.msk.bf16.mxu0 %vm6037_vm10, %v8571_v2  ;;  %v5705_v1 = vld [vmem:[#allocation3 + $0x2c] ss:$48 sps:$4 sm:$0xff]   ;;  %vm8797_vm10 = vnez %v8431_v42  ;;  %v5716_v42 = vld [vmem:[#allocation3 + $0xe0] ss:$48 sps:$4 sm:$0xff]  }
 0x1c9   :  { %2767 = vmatprep.mubr.bf16.mxu1 %v5696_v56  ;;  %5234 = vmatpush3.bf16.msk.msra.mxu1 %vm8796_vm0, %v8571_v2 }
 0x1ca   :  { %2695 = vmatmul.mubr.bf16.gmra.mrb[96].mxu0 %v5698_v41  ;;  %5235 = vmatprep.subr.msk.bf16.mxu1 %vm7284_vm7, %v8571_v2 }
 0x1cb   :  { %2808 = vmatprep.mubr.bf16.mxu0 %v5702_v44 }
 0x1cd   :  { %5236 = vmatpush3.bf16.msk.msra.mxu1 %vm7294_vm5, %v8571_v2  ;;  %v4823_v59 = vpop.f32.mrb[20].mxu0 }
 0x1ce   :  { %5313 = vmatprep.subr.msk.bf16.mxu1 %vm8668_vm1, %v8571_v2  ;;  %v4824_v56 = vpop.f32.mrb[21].mxu0  ;;  %vm8800_vm1 = vnez %v8429_v39 }
 0x1cf   :  { %v4825_v41 = vadd.f32 %v4824_v56, %v4823_v59  ;;  %v4826_v7 = vpop.f32.mrb[22].mxu0 }
 0x1d0   :  { %2768 = vmatmul.mubr.bf16.gmra.mrb[96].mxu1 %v5699_v8  ;;  %v4827_v13 = vpop.f32.mrb[23].mxu0  ;;  %v5708_v8 = vld [vmem:[#allocation3 + $0x8c] ss:$48 sps:$4 sm:$0xff]  }
 0x1d1   :  { %2881 = vmatprep.mubr.bf16.mxu1 %v5705_v1  ;;  %v1927_v44 = vadd.f32 %v4825_v41, %v7382_v57  ;;  %v4828_v6 = vadd.f32 %v4827_v13, %v4826_v7  ;;  %v5710_v7 = vld [vmem:[#allocation3 + $0x80] ss:$48 sps:$4 sm:$0xff]  }
 0x1d2   :  { %2809 = vmatmul.mubr.bf16.vlgmr.msra.gmra.mrb[100].mxu0 %v5700_v10 }
 0x1d3   :  { %5268 = vmatpush3.bf16.msk.msra.mxu0 %vm6065_vm8, %v8571_v2  ;;  %2816 = vmatprep.mubr.bf16.mxu0 %v5706_v11  ;;  %v4869_v32 = vpop.f32.mrb[20].mxu1  ;;  %v1930_v15 = vadd.f32 %v4828_v6, %v7390_v31  ;;  %vm8798_vm8 = vnez %v8435_v48  ;;  %v5718_v48 = vld [vmem:[#allocation3 + $0x144] ss:$48 sps:$4 sm:$0xff]  }
 0x1d4   :  { %5269 = vmatprep.subr.msk.bf16.mxu0 %vm6091_vm9, %v8571_v2  ;;  %v4870_v59 = vpop.f32.mrb[21].mxu1  ;;  %vm8799_vm9 = vnez %v8425_v33 }
 0x1d5   :  { %v4871_v1 = vadd.f32 %v4870_v59, %v4869_v32  ;;  %v4872_v56 = vpop.f32.mrb[22].mxu1  ;;  %v4829_v57 = vpop.f32.mrb[24].mxu0 }
 0x1d6   :  { %v4873_v13 = vpop.f32.mrb[23].mxu1  ;;  %v4830_v10 = vpop.f32.mrb[25].mxu0 }
 0x1d7   :  { %5270 = vmatpush3.bf16.msk.msra.mxu0 %vm8669_vm11, %v8571_v2  ;;  %v7620_v11 = vadd.f32 %v4871_v1, %v1927_v44  ;;  %v4874_v6 = vadd.f32 %v4873_v13, %v4872_v56  ;;  %v4831_v31 = vadd.f32 %v4830_v10, %v4829_v57  ;;  %v4832_v41 = vpop.f32.mrb[26].mxu0  ;;  %vm8801_vm11 = vnez %v8439_v54 }
 0x1d8   :  { %2882 = vmatmul.mubr.bf16.vlgmr.msra.gmra.mrb[100].mxu1 %v5703_v63  ;;  %5271 = vmatprep.subr.msk.bf16.mxu0 %vm8670_vm13, %v8571_v2  ;;  %v4833_v24 = vpop.f32.mrb[27].mxu0  ;;  %v5711_v63 = vld [vmem:[#allocation3 + $0x88] ss:$48 sps:$4 sm:$0xff]   ;;  %vm8802_vm13 = vnez %v8444_v60 }
 0x1d9   :  { %5314 = vmatpush3.bf16.msk.msra.mxu1 %vm8671_vm2, %v8571_v2  ;;  %2889 = vmatprep.mubr.bf16.mxu1 %v5708_v8  ;;  %v7628_v32 = vadd.f32 %v4874_v6, %v1930_v15  ;;  %v1935_v30 = vadd.f32 %v4831_v31, %v7401_v49  ;;  %v4834_v44 = vadd.f32 %v4833_v24, %v4832_v41  ;;  %v8807_v6 = vld [vmem:[#allocation13_spill] sm:$0xff] }
 0x1da   :  { %5315 = vmatprep.subr.msk.bf16.mxu1 %vm8672_vm4, %v8571_v2  ;;  %2817 = vmatmul.mubr.bf16.gmra.mrb[104].mxu0 %v5710_v7  ;;  %vm8803_vm2 = vnez %v8433_v45  ;;  %vm8804_vm4 = vnez %v8437_v51  ;;  %v5720_v51 = vld [vmem:[#allocation3 + $0x14c] ss:$48 sps:$4 sm:$0xff]  }
 0x1db   :  { %5272 = vmatpush3.bf16.msk.msra.mxu0 %vm8797_vm10, %v8571_v2  ;;  %2824 = vmatprep.mubr.bf16.mxu0 %v5712_v18  ;;  %v4875_v36 = vpop.f32.mrb[24].mxu1  ;;  %v1938_v21 = vadd.f32 %v4834_v44, %v7403_v40  ;;  %vm8805_vm10 = vnez %v8449_v3  ;;  %v5717_v18 = vld [vmem:[#allocation3 + $0xe8] ss:$48 sps:$4 sm:$0xff]  }
 0x1dc   :  { %5273 = vmatprep.subr.msk.bf16.mxu0 %vm8798_vm8, %v8571_v2  ;;  %v4876_v49 = vpop.f32.mrb[25].mxu1  ;;  %vm8806_vm8 = vnez %v8454_v12  ;;  %v8809_v3 = vld [vmem:[#allocation14_spill] sm:$0xff]  ;;  %v5724_v12 = vld [vmem:[#allocation3 + $0x1a4] ss:$48 sps:$4 sm:$0xff]  }
 0x1dd   :  { %5316 = vmatpush3.bf16.msk.msra.mxu1 %vm8799_vm9, %v8571_v2  ;;  %v4877_v15 = vadd.f32 %v4876_v49, %v4875_v36  ;;  %v4878_v59 = vpop.f32.mrb[26].mxu1  ;;  %v4835_v8 = vpop.f32.mrb[28].mxu0  ;;  %vm8808_vm9 = vnez %v8807_v6  ;;  %v8811_v36 = vld [vmem:[#allocation17_spill] sm:$0xff]  ;;  %v8824_v6 = vld [vmem:[#allocation19_spill] sm:$0xff] }
 0x1de   :  { %5317 = vmatprep.subr.msk.bf16.mxu1 %vm8800_vm1, %v8571_v2  ;;  %v4879_v40 = vpop.f32.mrb[27].mxu1  ;;  %v4836_v1 = vpop.f32.mrb[29].mxu0  ;;  %vm8810_vm1 = vnez %v8809_v3 }
 0x1df   :  { %5274 = vmatpush3.bf16.msk.msra.mxu0 %vm8801_vm11, %v8571_v2  ;;  %v7650_v56 = vadd.f32 %v4877_v15, %v1935_v30  ;;  %v4880_v33 = vadd.f32 %v4879_v40, %v4878_v59  ;;  %v4837_v57 = vadd.f32 %v4836_v1, %v4835_v8  ;;  %v4838_v7 = vpop.f32.mrb[30].mxu0  ;;  %v5722_v30 = vld [vmem:[#allocation3 + $0x140] ss:$48 sps:$4 sm:$0xff]   ;;  %vm8812_vm11 = vnez %v8811_v36 }
 0x1e0   :  { %2890 = vmatmul.mubr.bf16.gmra.mrb[104].mxu1 %v5711_v63  ;;  %5275 = vmatprep.subr.msk.bf16.mxu0 %vm8802_vm13, %v8571_v2  ;;  %v4839_v39 = vpop.f32.mrb[31].mxu0  ;;  %v8813_v15 = vld [vmem:[#allocation18_spill] sm:$0xff]  ;;  %v8815_v8 = vld [vmem:[#allocation15_spill] sm:$0xff]  ;;  %v8830_v36 = vld [vmem:[#allocation21_spill] sm:$0xff] }
 0x1e1   :  { %5318 = vmatpush3.bf16.msk.msra.mxu1 %vm8803_vm2, %v8571_v2  ;;  %2897 = vmatprep.mubr.bf16.mxu1 %v5714_v27  ;;  %v7658_v13 = vadd.f32 %v4880_v33, %v1938_v21  ;;  %v1943_v54 = vadd.f32 %v4837_v57, %v7414_v17  ;;  %v4840_v10 = vadd.f32 %v4839_v39, %v4838_v7  ;;  %v8819_v33 = vld [vmem:[#allocation20_spill] sm:$0xff] }
 0x1e2   :  { %2825 = vmatmul.mubr.bf16.gmra.mrb[108].mxu0 %v5716_v42  ;;  %5319 = vmatprep.subr.msk.bf16.mxu1 %vm8804_vm4, %v8571_v2  ;;  %vm8814_vm13 = vnez %v8813_v15  ;;  %vm8816_vm2 = vnez %v8815_v8  ;;  %v5723_v39 = vld [vmem:[#allocation3 + $0x148] ss:$48 sps:$4 sm:$0xff]  }
 0x1e3   :  { %5276 = vmatpush3.bf16.msk.msra.mxu0 %vm8805_vm10, %v8571_v2  ;;  %2832 = vmatprep.mubr.bf16.mxu0 %v5718_v48  ;;  %v4881_v60 = vpop.f32.mrb[28].mxu1  ;;  %v1946_v45 = vadd.f32 %v4840_v10, %v7422_v37  ;;  %v8817_v48 = vld [vmem:[#allocation16_spill] sm:$0xff]  ;;  %vm8820_vm10 = vnez %v8819_v33 }
 0x1e4   :  { %5277 = vmatprep.subr.msk.bf16.mxu0 %vm8806_vm8, %v8571_v2  ;;  %v4882_v17 = vpop.f32.mrb[29].mxu1  ;;  %vm8818_vm4 = vnez %v8817_v48  ;;  %v5726_v10 = vld [vmem:[#allocation3 + $0x1ac] ss:$48 sps:$4 sm:$0xff]   ;;  %v5729_v8 = vld [vmem:[#allocation3 + $0x1a8] ss:$48 sps:$4 sm:$0xff]  }
 0x1e5   :  { %5320 = vmatpush3.bf16.msk.msra.mxu1 %vm8808_vm9, %v8571_v2  ;;  %v4883_v31 = vadd.f32 %v4882_v17, %v4881_v60  ;;  %v4884_v41 = vpop.f32.mrb[30].mxu1  ;;  %v4841_v24 = vpop.f32.mrb[32].mxu0  ;;  %vm8823_vm9 = vnez %v8462_v26  ;;  %v5728_v17 = vld [vmem:[#allocation3 + $0x1a0] ss:$48 sps:$4 sm:$0xff]   ;;  %v5735_v48 = vld [vmem:[#allocation8 + $0xc] ss:$48 sps:$4 sm:$0xff]  }
 0x1e6   :  { %5321 = vmatprep.subr.msk.bf16.mxu1 %vm8810_vm1, %v8571_v2  ;;  %v4885_v37 = vpop.f32.mrb[31].mxu1  ;;  %v4842_v44 = vpop.f32.mrb[33].mxu0  ;;  %vm8825_vm1 = vnez %v8824_v6  ;;  %v5754_v6 = vld [vmem:[#allocation8 + $0x184] ss:$48 sps:$4 sm:$0xff]  }
 0x1e7   :  { %5278 = vmatpush3.bf16.msk.msra.mxu0 %vm8812_vm11, %v8571_v2  ;;  %v7680_v21 = vadd.f32 %v4883_v31, %v1943_v54  ;;  %v4886_v63 = vadd.f32 %v4885_v37, %v4884_v41  ;;  %v4843_v49 = vadd.f32 %v4842_v44, %v4841_v24  ;;  %v4844_v27 = vpop.f32.mrb[34].mxu0  ;;  %v8821_v54 = vld [vmem:[#allocation22_spill] sm:$0xff]  ;;  %v8826_v31 = vld [vmem:[#allocation24_spill] sm:$0xff]  ;;  %v5732_v41 = vld [vmem:[#allocation8 + $0x4] ss:$48 sps:$4 sm:$0xff]  }
 0x1e8   :  { %2898 = vmatmul.mubr.bf16.gmra.mrb[108].mxu1 %v5717_v18  ;;  %5279 = vmatprep.subr.msk.bf16.mxu0 %vm8814_vm13, %v8571_v2  ;;  %v4845_v59 = vpop.f32.mrb[35].mxu0  ;;  %vm8822_vm8 = vnez %v8821_v54  ;;  %vm8827_vm11 = vnez %v8826_v31  ;;  %v8828_v37 = vld [vmem:[#allocation26_spill] sm:$0xff]  ;;  %v5736_v54 = vld [vmem:[#allocation8 + $0x64] ss:$48 sps:$4 sm:$0xff]  }
 0x1e9   :  { %2905 = vmatprep.mubr.bf16.mxu1 %v5720_v51  ;;  %5322 = vmatpush3.bf16.msk.msra.mxu1 %vm8816_vm2, %v8571_v2  ;;  %v7688_v42 = vadd.f32 %v4886_v63, %v1946_v45  ;;  %v1951_v40 = vadd.f32 %v4843_v49, %v7442_v19  ;;  %v4846_v1 = vadd.f32 %v4845_v59, %v4844_v27  ;;  %v8832_v27 = vld [vmem:[#allocation23_spill] sm:$0xff] }
 0x1ea   :  { %2833 = vmatmul.mubr.bf16.gmra.mrb[112].mxu0 %v5722_v30  ;;  %5323 = vmatprep.subr.msk.bf16.mxu1 %vm8818_vm4, %v8571_v2  ;;  %vm8829_vm13 = vnez %v8828_v37  ;;  %vm8831_vm2 = vnez %v8830_v36  ;;  %vm8833_vm4 = vnez %v8832_v27  ;;  %v5758_v31 = vld [vmem:[#allocation8 + $0x180] ss:$48 sps:$4 sm:$0xff]   ;;  %v5759_v36 = vld [vmem:[#allocation8 + $0x188] ss:$48 sps:$4 sm:$0xff]  }
 0x1eb   :  { %2840 = vmatprep.mubr.bf16.mxu0 %v5724_v12  ;;  %5280 = vmatpush3.bf16.msk.msra.mxu0 %vm8820_vm10, %v8571_v2  ;;  %v4887_v57 = vpop.f32.mrb[32].mxu1  ;;  %v1954_v7 = vadd.f32 %v4846_v1, %v7450_v14  ;;  %v8834_v1 = vld [vmem:[#allocation25_spill] sm:$0xff] }
 0x1ec   :  { %5281 = vmatprep.subr.msk.bf16.mxu0 %vm8822_vm8, %v8571_v2  ;;  %v4888_v19 = vpop.f32.mrb[33].mxu1  ;;  %vm8835_vm10 = vnez %v8834_v1  ;;  %v8878_v37 = vld [vmem:[#allocation41_spill] sm:$0xff] }
 0x1ed   :  { %5324 = vmatpush3.bf16.msk.msra.mxu1 %vm8823_vm9, %v8571_v2  ;;  %v4889_v60 = vadd.f32 %v4888_v19, %v4887_v57  ;;  %v4890_v45 = vpop.f32.mrb[34].mxu1  ;;  %v4847_v18 = vpop.f32.mrb[36].mxu0  ;;  %vm8838_vm9 = vnez %v8491_v28  ;;  %v5741_v28 = vld [vmem:[#allocation8 + $0x68] ss:$48 sps:$4 sm:$0xff]   ;;  %v5760_v27 = vld [vmem:[#allocation8 + $0x10] ss:$48 sps:$4 sm:$0xff]  }
 0x1ee   :  { %5325 = vmatprep.subr.msk.bf16.mxu1 %vm8825_vm1, %v8571_v2  ;;  %v4891_v14 = vpop.f32.mrb[35].mxu1  ;;  %v4848_v51 = vpop.f32.mrb[37].mxu0  ;;  %vm8839_vm1 = vnez %v8498_v55  ;;  %v5746_v55 = vld [vmem:[#allocation8 + $0xc0] ss:$48 sps:$4 sm:$0xff]  }
 0x1ef   :  { %5282 = vmatpush3.bf16.msk.msra.mxu0 %vm8827_vm11, %v8571_v2  ;;  %v7710_v24 = vadd.f32 %v4889_v60, %v1951_v40  ;;  %v4892_v26 = vadd.f32 %v4891_v14, %v4890_v45  ;;  %v4849_v3 = vadd.f32 %v4848_v51, %v4847_v18  ;;  %v4850_v30 = vpop.f32.mrb[38].mxu0  ;;  %v5733_v60 = vld [vmem:[#allocation8 + $0x8] ss:$48 sps:$4 sm:$0xff]   ;;  %v5738_v45 = vld [vmem:[#allocation8 + $0x6c] ss:$48 sps:$4 sm:$0xff]   ;;  %vm8840_vm11 = vnez %v8500_v0 }
 0x1f0   :  { %2906 = vmatmul.mubr.bf16.gmra.mrb[112].mxu1 %v5723_v39  ;;  %5359 = vmatprep.subr.msk.bf16.mxu0 %vm8829_vm13, %v8571_v2  ;;  %v4851_v44 = vpop.f32.mrb[39].mxu0  ;;  %v5740_v18 = vld [vmem:[#allocation8 + $0x60] ss:$48 sps:$4 sm:$0xff]   ;;  %vm8841_vm13 = vnez %v8506_v38  ;;  %v5748_v0 = vld [vmem:[#allocation8 + $0x124] ss:$48 sps:$4 sm:$0xff]  }
 0x1f1   :  { %2913 = vmatprep.mubr.bf16.mxu1 %v5726_v10  ;;  %5326 = vmatpush3.bf16.msk.msra.mxu1 %vm8831_vm2, %v8571_v2  ;;  %v7718_v12 = vadd.f32 %v4892_v26, %v1954_v7  ;;  %v1959_v63 = vadd.f32 %v4849_v3, %v7470_v16  ;;  %v4852_v49 = vadd.f32 %v4851_v44, %v4850_v30  ;;  %v5730_v16 = vld [vmem:[#allocation8] ss:$48 sps:$4 sm:$0xff]   ;;  %v5753_v14 = vld [vmem:[#allocation8 + $0x128] ss:$48 sps:$4 sm:$0xff]   ;;  %v5762_v3 = vld [vmem:[#allocation8 + $0x14] ss:$48 sps:$4 sm:$0xff]  }
 0x1f2   :  { %2841 = vmatmul.mubr.bf16.gmra.mrb[116].mxu0 %v5728_v17  ;;  %5327 = vmatprep.subr.msk.bf16.mxu1 %vm8833_vm4, %v8571_v2  ;;  %v8836_v7 = vld [vmem:[#allocation27_spill] sm:$0xff]  ;;  %vm8842_vm2 = vnez %v8496_v43  ;;  %vm8843_vm4 = vnez %v8502_v9  ;;  %v5744_v43 = vld [vmem:[#allocation8 + $0xcc] ss:$48 sps:$4 sm:$0xff]  }
 0x1f3   :  { %3314 = vmatprep.mubr.bf16.mxu0 %v5732_v41  ;;  %v4893_v15 = vpop.f32.mrb[36].mxu1  ;;  %v1962_v59 = vadd.f32 %v4852_v49, %v7478_v53  ;;  %vm8837_vm8 = vnez %v8836_v7  ;;  %v5742_v17 = vld [vmem:[#allocation8 + $0xc4] ss:$48 sps:$4 sm:$0xff]   ;;  %v8850_v9 = vld [vmem:[#allocation28_spill] sm:$0xff]  ;;  %v8868_v51 = vld [vmem:[#allocation42_spill] sm:$0xff] }
 0x1f4   :  { %v4894_v40 = vpop.f32.mrb[37].mxu1  ;;  %v8854_v38 = vld [vmem:[#allocation31_spill] sm:$0xff]  ;;  %v8872_v41 = vld [vmem:[#allocation40_spill] sm:$0xff]  ;;  %v8876_v30 = vld [vmem:[#allocation46_spill] sm:$0xff] }
 0x1f5   :  { %5328 = vmatpush3.bf16.msk.msra.mxu1 %vm8835_vm10, %v8571_v2  ;;  %v4895_v33 = vadd.f32 %v4894_v40, %v4893_v15  ;;  %v4896_v57 = vpop.f32.mrb[38].mxu1  ;;  %vm8844_vm10 = vnez %v8508_v50  ;;  %v5747_v50 = vld [vmem:[#allocation8 + $0xc8] ss:$48 sps:$4 sm:$0xff]   ;;  %v5765_v49 = vld [vmem:[#allocation8 + $0x1c] ss:$48 sps:$4 sm:$0xff]  }
 0x1f6   :  { %5405 = vmatprep.subr.msk.bf16.mxu1 %vm8837_vm8, %v8571_v2  ;;  %v4897_v39 = vpop.f32.mrb[39].mxu1  ;;  %vm8845_vm8 = vnez %v8515_v29  ;;  %v5750_v29 = vld [vmem:[#allocation8 + $0x12c] ss:$48 sps:$4 sm:$0xff]   ;;  %v8874_v26 = vld [vmem:[#allocation43_spill] sm:$0xff] }
 0x1f7   :  { %v7731_v19 = vadd.f32 %v4895_v33, %v1959_v63  ;;  %v4898_v10 = vadd.f32 %v4897_v39, %v4896_v57  ;;  %v8880_v44 = vld [vmem:[#allocation44_spill] sm:$0xff]  ;;  %v8882_v63 = vld [vmem:[#allocation45_spill] sm:$0xff]  ;;  %v8895_v33 = vld [vmem:[#allocation58_spill] sm:$0xff] }
 0x1f8   :  { %2914 = vmatmul.mubr.bf16.gmra.mrb[116].mxu1 %v5729_v8  ;;  %v8884_v15 = vld [vmem:[#allocation48_spill] sm:$0xff] }
 0x1f9   :  { %3387 = vmatprep.mubr.bf16.mxu1 %v5735_v48  ;;  %v7733_v53 = vadd.f32 %v4898_v10, %v1962_v59  ;;  %v5766_v59 = vld [vmem:[#allocation8 + $0x74] ss:$48 sps:$4 sm:$0xff]   ;;  %v5763_v8 = vld [vmem:[#allocation8 + $0x18] ss:$48 sps:$4 sm:$0xff]   ;;  %v5768_v40 = vld [vmem:[#allocation8 + $0x7c] ss:$48 sps:$4 sm:$0xff]  }
 0x1fa   :  { %3315 = vmatmul.mubr.bf16.vlgmr.msra.gmra.mrb[120].mxu0 %v5730_v16  ;;  %v5770_v1 = vld [vmem:[#allocation8 + $0x70] ss:$48 sps:$4 sm:$0xff]   ;;  %v5772_v48 = vld [vmem:[#allocation8 + $0xd4] ss:$48 sps:$4 sm:$0xff]   ;;  %v5774_v57 = vld [vmem:[#allocation8 + $0xdc] ss:$48 sps:$4 sm:$0xff]  }
 0x1fb   :  { %5360 = vmatpush3.bf16.msk.msra.mxu0 %vm8838_vm9, %v8571_v2  ;;  %3322 = vmatprep.mubr.bf16.mxu0 %v5736_v54  ;;  %vm8846_vm9 = vnez %v8504_v25  ;;  %v8852_v25 = vld [vmem:[#allocation29_spill] sm:$0xff]  ;;  %v8899_v7 = vld [vmem:[#allocation56_spill] sm:$0xff] }
 0x1fc   :  { %5361 = vmatprep.subr.msk.bf16.mxu0 %vm8839_vm1, %v8571_v2  ;;  %vm8847_vm1 = vnez %v8510_v62  ;;  %v8856_v62 = vld [vmem:[#allocation34_spill] sm:$0xff] }
 0x1fd   :  { %v5776_v39 = vld [vmem:[#allocation8 + $0xd0] ss:$48 sps:$4 sm:$0xff]  }
 0x1ff   :  { %5362 = vmatpush3.bf16.msk.msra.mxu0 %vm8840_vm11, %v8571_v2  ;;  %vm8848_vm11 = vnez %v8517_v34  ;;  %v5752_v34 = vld [vmem:[#allocation8 + $0x120] ss:$48 sps:$4 sm:$0xff]  }
 0x200   :  { %3388 = vmatmul.mubr.bf16.vlgmr.msra.gmra.mrb[120].mxu1 %v5733_v60  ;;  %5363 = vmatprep.subr.msk.bf16.mxu0 %vm8841_vm13, %v8571_v2  ;;  %vm8849_vm13 = vnez %v8525_v5  ;;  %v8860_v5 = vld [vmem:[#allocation35_spill] sm:$0xff] }
 0x201   :  { %5406 = vmatpush3.bf16.msk.msra.mxu1 %vm8842_vm2, %v8571_v2  ;;  %3395 = vmatprep.mubr.bf16.mxu1 %v5738_v45  ;;  %vm8851_vm2 = vnez %v8850_v9  ;;  %v8901_v60 = vld [vmem:[#allocation59_spill] sm:$0xff] }
 0x202   :  { %5407 = vmatprep.subr.msk.bf16.mxu1 %vm8843_vm4, %v8571_v2  ;;  %3323 = vmatmul.mubr.bf16.gmra.mrb[124].mxu0 %v5740_v18  ;;  %vm8853_vm4 = vnez %v8852_v25  ;;  %v5778_v45 = vld [vmem:[#allocation8 + $0x134] ss:$48 sps:$4 sm:$0xff]  }
 0x203   :  { %5364 = vmatpush3.bf16.msk.msra.mxu0 %vm8844_vm10, %v8571_v2  ;;  %3330 = vmatprep.mubr.bf16.mxu0 %v5742_v17  ;;  %vm8855_vm10 = vnez %v8854_v38  ;;  %v8903_v17 = vld [vmem:[#allocation62_spill] sm:$0xff]  ;;  %v8909_v38 = vld [vmem:[#allocation63_spill] sm:$0xff] }
 0x204   :  { %5365 = vmatprep.subr.msk.bf16.mxu0 %vm8845_vm8, %v8571_v2  ;;  %vm8857_vm8 = vnez %v8856_v62 }
 0x205   :  { %5408 = vmatpush3.bf16.msk.msra.mxu1 %vm8846_vm9, %v8571_v2  ;;  %vm8858_vm9 = vnez %v8715_v61  ;;  %v8864_v61 = vld [vmem:[#allocation36_spill] sm:$0xff] }
 0x206   :  { %5409 = vmatprep.subr.msk.bf16.mxu1 %vm8847_vm1, %v8571_v2  ;;  %vm8859_vm1 = vnez %v8717_v52  ;;  %v8866_v52 = vld [vmem:[#allocation39_spill] sm:$0xff] }
 0x207   :  { %5366 = vmatpush3.bf16.msk.msra.mxu0 %vm8848_vm11, %v8571_v2  ;;  %vm8861_vm11 = vnez %v8860_v5 }
 0x208   :  { %3396 = vmatmul.mubr.bf16.gmra.mrb[124].mxu1 %v5741_v28  ;;  %5367 = vmatprep.subr.msk.bf16.mxu0 %vm8849_vm13, %v8571_v2  ;;  %vm8862_vm13 = vnez %v8721_v20  ;;  %v8870_v20 = vld [vmem:[#allocation37_spill] sm:$0xff] }
 0x209   :  { %5410 = vmatpush3.bf16.msk.msra.mxu1 %vm8851_vm2, %v8571_v2  ;;  %3403 = vmatprep.mubr.bf16.mxu1 %v5744_v43  ;;  %vm8863_vm2 = vnez %v8723_v22  ;;  %v5756_v22 = vld [vmem:[#allocation8 + $0x18c] ss:$48 sps:$4 sm:$0xff]   ;;  %v8905_v43 = vld [vmem:[#allocation57_spill] sm:$0xff] }
 0x20a   :  { %3331 = vmatmul.mubr.bf16.gmra.mrb[128].mxu0 %v5746_v55  ;;  %5411 = vmatprep.subr.msk.bf16.mxu1 %vm8853_vm4, %v8571_v2  ;;  %vm8865_vm4 = vnez %v8864_v61 }
 0x20b   :  { %5368 = vmatpush3.bf16.msk.msra.mxu0 %vm8855_vm10, %v8571_v2  ;;  %3338 = vmatprep.mubr.bf16.mxu0 %v5748_v0  ;;  %vm8867_vm10 = vnez %v8866_v52  ;;  %v8907_v0 = vld [vmem:[#allocation60_spill] sm:$0xff] }
 0x20c   :  { %5369 = vmatprep.subr.msk.bf16.mxu0 %vm8857_vm8, %v8571_v2  ;;  %vm8869_vm8 = vnez %v8868_v51  ;;  %v8914_v52 = vld [vmem:[#allocation64_spill] sm:$0xff] }
 0x20d   :  { %5412 = vmatpush3.bf16.msk.msra.mxu1 %vm8858_vm9, %v8571_v2  ;;  %vm8871_vm9 = vnez %v8870_v20 }
 0x20e   :  { %5413 = vmatprep.subr.msk.bf16.mxu1 %vm8859_vm1, %v8571_v2  ;;  %vm8873_vm1 = vnez %v8872_v41  ;;  %v5784_v41 = vld [vmem:[#allocation8 + $0x194] ss:$48 sps:$4 sm:$0xff]  }
 0x20f   :  { %5370 = vmatpush3.bf16.msk.msra.mxu0 %vm8861_vm11, %v8571_v2  ;;  %vm8875_vm11 = vnez %v8874_v26 }
 0x210   :  { %3404 = vmatmul.mubr.bf16.gmra.mrb[128].mxu1 %v5747_v50  ;;  %5371 = vmatprep.subr.msk.bf16.mxu0 %vm8862_vm13, %v8571_v2  ;;  %vm8877_vm13 = vnez %v8876_v30  ;;  %v5777_v50 = vld [vmem:[#allocation8 + $0xd8] ss:$48 sps:$4 sm:$0xff]  }
 0x211   :  { %3411 = vmatprep.mubr.bf16.mxu1 %v5750_v29  ;;  %5414 = vmatpush3.bf16.msk.msra.mxu1 %vm8863_vm2, %v8571_v2  ;;  %vm8879_vm2 = vnez %v8878_v37 }
 0x212   :  { %3339 = vmatmul.mubr.bf16.gmra.mrb[132].mxu0 %v5752_v34  ;;  %5415 = vmatprep.subr.msk.bf16.mxu1 %vm8865_vm4, %v8571_v2  ;;  %vm8881_vm4 = vnez %v8880_v44  ;;  %v8912_v34 = vld [vmem:[#allocation61_spill] sm:$0xff] }
 0x213   :  { %3346 = vmatprep.mubr.bf16.mxu0 %v5754_v6  ;;  %5372 = vmatpush3.bf16.msk.msra.mxu0 %vm8867_vm10, %v8571_v2  ;;  %vm8883_vm10 = vnez %v8882_v63  ;;  %v5780_v6 = vld [vmem:[#allocation8 + $0x13c] ss:$48 sps:$4 sm:$0xff]  }
 0x214   :  { %5373 = vmatprep.subr.msk.bf16.mxu0 %vm8869_vm8, %v8571_v2  ;;  %vm8885_vm8 = vnez %v8884_v15 }
 0x215   :  { %5416 = vmatpush3.bf16.msk.msra.mxu1 %vm8871_vm9, %v8571_v2  ;;  %vm8886_vm9 = vnez %v8747_v46  ;;  %v8893_v46 = vld [vmem:[#allocation55_spill] sm:$0xff] }
 0x216   :  { %5417 = vmatprep.subr.msk.bf16.mxu1 %vm8873_vm1, %v8571_v2  ;;  %vm8887_vm1 = vnez %v8749_v58  ;;  %v8891_v58 = vld [vmem:[#allocation52_spill] sm:$0xff] }
 0x217   :  { %5374 = vmatpush3.bf16.msk.msra.mxu0 %vm8875_vm11, %v8571_v2  ;;  %vm8888_vm11 = vnez %v8751_v47  ;;  %v5771_v47 = vld [vmem:[#allocation8 + $0x78] ss:$48 sps:$4 sm:$0xff]  }
 0x218   :  { %3412 = vmatmul.mubr.bf16.gmra.mrb[132].mxu1 %v5753_v14  ;;  %5451 = vmatprep.subr.msk.bf16.mxu0 %vm8877_vm13, %v8571_v2  ;;  %vm8889_vm13 = vnez %v8753_v23  ;;  %v8897_v23 = vld [vmem:[#allocation53_spill] sm:$0xff] }
 0x219   :  { %3419 = vmatprep.mubr.bf16.mxu1 %v5756_v22  ;;  %5418 = vmatpush3.bf16.msk.msra.mxu1 %vm8879_vm2, %v8571_v2  ;;  %vm8890_vm2 = vnez %v8755_v35  ;;  %v5782_v14 = vld [vmem:[#allocation8 + $0x130] ss:$48 sps:$4 sm:$0xff]  }
 0x21a   :  { %3347 = vmatmul.mubr.bf16.gmra.mrb[136].mxu0 %v5758_v31  ;;  %5419 = vmatprep.subr.msk.bf16.mxu1 %vm8881_vm4, %v8571_v2  ;;  %vm8892_vm4 = vnez %v8891_v58  ;;  %v8916_v31 = vld [vmem:[#allocation67_spill] sm:$0xff]  ;;  %v8925_v58 = vld [vmem:[#allocation69_spill] sm:$0xff] }
 0x21b   :  { %3460 = vmatprep.mubr.bf16.mxu0 %v5762_v3  ;;  %v8918_v3 = vld [vmem:[#allocation70_spill] sm:$0xff] }
 0x21d   :  { %5420 = vmatpush3.bf16.msk.msra.mxu1 %vm8883_vm10, %v8571_v2  ;;  %vm8894_vm10 = vnez %v8893_v46  ;;  %v5786_v46 = vld [vmem:[#allocation8 + $0x19c] ss:$48 sps:$4 sm:$0xff]  }
 0x21e   :  { %5497 = vmatprep.subr.msk.bf16.mxu1 %vm8885_vm8, %v8571_v2  ;;  %vm8896_vm8 = vnez %v8895_v33  ;;  %v5788_v33 = vld [vmem:[#allocation8 + $0x190] ss:$48 sps:$4 sm:$0xff]  }
 0x220   :  { %3420 = vmatmul.mubr.bf16.gmra.mrb[136].mxu1 %v5759_v36  ;;  %v8920_v36 = vld [vmem:[#allocation65_spill] sm:$0xff] }
 0x221   :  { %3533 = vmatprep.mubr.bf16.mxu1 %v5765_v49 }
 0x222   :  { %3461 = vmatmul.mubr.bf16.vlgmr.msra.gmra.mrb[140].mxu0 %v5760_v27 }
 0x223   :  { %5452 = vmatpush3.bf16.msk.msra.mxu0 %vm8886_vm9, %v8571_v2  ;;  %3468 = vmatprep.mubr.bf16.mxu0 %v5766_v59  ;;  %vm8898_vm9 = vnez %v8897_v23  ;;  %v5783_v59 = vld [vmem:[#allocation8 + $0x138] ss:$48 sps:$4 sm:$0xff]  }
 0x224   :  { %5453 = vmatprep.subr.msk.bf16.mxu0 %vm8887_vm1, %v8571_v2  ;;  %vm8900_vm1 = vnez %v8899_v7 }
 0x227   :  { %5454 = vmatpush3.bf16.msk.msra.mxu0 %vm8888_vm11, %v8571_v2  ;;  %vm8902_vm11 = vnez %v8901_v60 }
 0x228   :  { %3534 = vmatmul.mubr.bf16.vlgmr.msra.gmra.mrb[140].mxu1 %v5763_v8  ;;  %5455 = vmatprep.subr.msk.bf16.mxu0 %vm8889_vm13, %v8571_v2  ;;  %vm8904_vm13 = vnez %v8903_v17 }
 0x229   :  { %5498 = vmatpush3.bf16.msk.msra.mxu1 %vm8890_vm2, %v8571_v2  ;;  %3541 = vmatprep.mubr.bf16.mxu1 %v5768_v40  ;;  %vm8906_vm2 = vnez %v8905_v43 }
 0x22a   :  { %5499 = vmatprep.subr.msk.bf16.mxu1 %vm8892_vm4, %v8571_v2  ;;  %3469 = vmatmul.mubr.bf16.gmra.mrb[144].mxu0 %v5770_v1  ;;  %vm8908_vm4 = vnez %v8907_v0 }
 0x22b   :  { %5456 = vmatpush3.bf16.msk.msra.mxu0 %vm8894_vm10, %v8571_v2  ;;  %3476 = vmatprep.mubr.bf16.mxu0 %v5772_v48  ;;  %vm8910_vm10 = vnez %v8909_v38 }
 0x22c   :  { %5457 = vmatprep.subr.msk.bf16.mxu0 %vm8896_vm8, %v8571_v2  ;;  %vm8911_vm8 = vnez %v8774_v4 }
 0x22d   :  { %5500 = vmatpush3.bf16.msk.msra.mxu1 %vm8898_vm9, %v8571_v2  ;;  %v4915_v35 = vpop.f32.mrb[40].mxu0  ;;  %vm8913_vm9 = vnez %v8912_v34  ;;  %v5790_v34 = vld [vmem:[#allocation8 + $0x20] ss:$48 sps:$4 sm:$0xff]  }
 0x22e   :  { %v4916_v16 = vpop.f32.mrb[41].mxu0  ;;  %5501 = vmatprep.subr.msk.bf16.mxu1 %vm8900_vm1, %v8571_v2  ;;  %vm8915_vm1 = vnez %v8914_v52 }
 0x22f   :  { %v4917_v54 = vadd.f32 %v4916_v16, %v4915_v35  ;;  %v4918_v10 = vpop.f32.mrb[42].mxu0  ;;  %5458 = vmatpush3.bf16.msk.msra.mxu0 %vm8902_vm11, %v8571_v2  ;;  %vm8917_vm11 = vnez %v8916_v31 }
 0x230   :  { %3542 = vmatmul.mubr.bf16.gmra.mrb[144].mxu1 %v5771_v47  ;;  %v4919_v18 = vpop.f32.mrb[43].mxu0  ;;  %5459 = vmatprep.subr.msk.bf16.mxu0 %vm8904_vm13, %v8571_v2  ;;  %vm8919_vm13 = vnez %v8918_v3 }
 0x231   :  { %v2073_v28 = vadd.f32 %v4917_v54, %v7620_v11  ;;  %5502 = vmatpush3.bf16.msk.msra.mxu1 %vm8906_vm2, %v8571_v2  ;;  %v4920_v55 = vadd.f32 %v4919_v18, %v4918_v10  ;;  %3549 = vmatprep.mubr.bf16.mxu1 %v5774_v57  ;;  %vm8921_vm2 = vnez %v8920_v36  ;;  %v5792_v54 = vld [vmem:[#allocation8 + $0x24] ss:$48 sps:$4 sm:$0xff]  }
 0x232   :  { %3477 = vmatmul.mubr.bf16.gmra.mrb[148].mxu0 %v5776_v39  ;;  %5503 = vmatprep.subr.msk.bf16.mxu1 %vm8908_vm4, %v8571_v2  ;;  %v5806_v39 = vld [vmem:[#allocation8 + $0xe0] ss:$48 sps:$4 sm:$0xff]  }
 0x233   :  { %v4961_v9 = vpop.f32.mrb[40].mxu1  ;;  %v2076_v25 = vadd.f32 %v4920_v55, %v7628_v32  ;;  %5460 = vmatpush3.bf16.msk.msra.mxu0 %vm8910_vm10, %v8571_v2  ;;  %3484 = vmatprep.mubr.bf16.mxu0 %v5778_v45 }
 0x234   :  { %v4962_v11 = vpop.f32.mrb[41].mxu1  ;;  %5461 = vmatprep.subr.msk.bf16.mxu0 %vm8911_vm8, %v8571_v2 }
 0x235   :  { %v4963_v62 = vadd.f32 %v4962_v11, %v4961_v9  ;;  %v4964_v29 = vpop.f32.mrb[42].mxu1  ;;  %5504 = vmatpush3.bf16.msk.msra.mxu1 %vm8913_vm9, %v8571_v2  ;;  %v4921_v5 = vpop.f32.mrb[44].mxu0  ;;  %v5789_v9 = vld [vmem:[#allocation8 + $0x198] ss:$48 sps:$4 sm:$0xff]  }
 0x236   :  { %v4965_v32 = vpop.f32.mrb[43].mxu1  ;;  %v4922_v61 = vpop.f32.mrb[45].mxu0  ;;  %5505 = vmatprep.subr.msk.bf16.mxu1 %vm8915_vm1, %v8571_v2 }
 0x237   :  { %v7887_v51 = vadd.f32 %v4963_v62, %v2073_v28  ;;  %v4966_v20 = vadd.f32 %v4965_v32, %v4964_v29  ;;  %v4923_v4 = vadd.f32 %v4922_v61, %v4921_v5  ;;  %v4924_v22 = vpop.f32.mrb[46].mxu0  ;;  %5462 = vmatpush3.bf16.msk.msra.mxu0 %vm8917_vm11, %v8571_v2 }
 0x238   :  { %3550 = vmatmul.mubr.bf16.gmra.mrb[148].mxu1 %v5777_v50  ;;  %v4925_v26 = vpop.f32.mrb[47].mxu0  ;;  %5463 = vmatprep.subr.msk.bf16.mxu0 %vm8919_vm13, %v8571_v2  ;;  %v5795_v50 = vld [vmem:[#allocation8 + $0x2c] ss:$48 sps:$4 sm:$0xff]  }
 0x239   :  { %v7895_v30 = vadd.f32 %v4966_v20, %v2076_v25  ;;  %v2081_v37 = vadd.f32 %v4923_v4, %v7650_v56  ;;  %v4926_v44 = vadd.f32 %v4925_v26, %v4924_v22  ;;  %3557 = vmatprep.mubr.bf16.mxu1 %v5780_v6  ;;  %5506 = vmatpush3.bf16.msk.msra.mxu1 %vm8921_vm2, %v8571_v2 }
 0x23a   :  { %3485 = vmatmul.mubr.bf16.gmra.mrb[152].mxu0 %v5782_v14  ;;  %5507 = vmatprep.subr.msk.bf16.mxu1 %vm8787_vm12, %v8571_v2  ;;  %vm8926_vm12 = vnez %v8925_v58 }
 0x23b   :  { %v4967_v49 = vpop.f32.mrb[44].mxu1  ;;  %v2084_v27 = vadd.f32 %v4926_v44, %v7658_v13  ;;  %3492 = vmatprep.mubr.bf16.mxu0 %v5784_v41  ;;  %5464 = vmatpush3.bf16.msk.msra.mxu0 %vm8789_vm15, %v8571_v2  ;;  %v5793_v41 = vld [vmem:[#allocation8 + $0x28] ss:$48 sps:$4 sm:$0xff]   ;;  %v5798_v44 = vld [vmem:[#allocation8 + $0x8c] ss:$48 sps:$4 sm:$0xff]  }
 0x23c   :  { %v4968_v56 = vpop.f32.mrb[45].mxu1  ;;  %5465 = vmatprep.subr.msk.bf16.mxu0 %vm8790_vm14, %v8571_v2 }
 0x23d   :  { %v4969_v40 = vadd.f32 %v4968_v56, %v4967_v49  ;;  %v4970_v1 = vpop.f32.mrb[46].mxu1  ;;  %v4927_v48 = vpop.f32.mrb[48].mxu0  ;;  %5508 = vmatpush3.bf16.msk.msra.mxu1 %vm8926_vm12, %v8571_v2  ;;  %v5800_v49 = vld [vmem:[#allocation8 + $0x80] ss:$48 sps:$4 sm:$0xff]  }
 0x23e   :  { %v4971_v13 = vpop.f32.mrb[47].mxu1  ;;  %v4928_v47 = vpop.f32.mrb[49].mxu0  ;;  %5509 = vmatprep.subr.msk.bf16.mxu1 %vm8794_vm6, %v8571_v2 }
 0x23f   :  { %v7917_v35 = vadd.f32 %v4969_v40, %v2081_v37  ;;  %v4972_v57 = vadd.f32 %v4971_v13, %v4970_v1  ;;  %v4929_v16 = vadd.f32 %v4928_v47, %v4927_v48  ;;  %v4930_v7 = vpop.f32.mrb[50].mxu0  ;;  %5466 = vmatpush3.bf16.msk.msra.mxu0 %vm7270_vm3, %v8571_v2  ;;  %v5801_v13 = vld [vmem:[#allocation8 + $0x88] ss:$48 sps:$4 sm:$0xff]  }
 0x240   :  { %3558 = vmatmul.mubr.bf16.gmra.mrb[152].mxu1 %v5783_v59  ;;  %v4931_v10 = vpop.f32.mrb[51].mxu0  ;;  %v5802_v59 = vld [vmem:[#allocation8 + $0xe4] ss:$48 sps:$4 sm:$0xff]  }
 0x241   :  { %v7922_v60 = vadd.f32 %v4972_v57, %v2084_v27  ;;  %v2089_v45 = vadd.f32 %v4929_v16, %v7680_v21  ;;  %v4932_v18 = vadd.f32 %v4931_v10, %v4930_v7  ;;  %3565 = vmatprep.mubr.bf16.mxu1 %v5786_v46  ;;  %5510 = vmatpush3.bf16.msk.msra.mxu1 %vm8796_vm0, %v8571_v2  ;;  %v5804_v57 = vld [vmem:[#allocation8 + $0xec] ss:$48 sps:$4 sm:$0xff]  }
 0x242   :  { %3493 = vmatmul.mubr.bf16.gmra.mrb[156].mxu0 %v5788_v33  ;;  %5511 = vmatprep.subr.msk.bf16.mxu1 %vm7284_vm7, %v8571_v2 }
 0x243   :  { %v4973_v43 = vpop.f32.mrb[48].mxu1  ;;  %v2092_v55 = vadd.f32 %v4932_v18, %v7688_v42  ;;  %3606 = vmatprep.mubr.bf16.mxu0 %v5792_v54  ;;  %v5796_v42 = vld [vmem:[#allocation8 + $0x84] ss:$48 sps:$4 sm:$0xff]  }
 0x244   :  { %v4974_v0 = vpop.f32.mrb[49].mxu1  ;;  %v5808_v18 = vld [vmem:[#allocation8 + $0x144] ss:$48 sps:$4 sm:$0xff]  }
 0x245   :  { %v4975_v25 = vadd.f32 %v4974_v0, %v4973_v43  ;;  %v4976_v38 = vpop.f32.mrb[50].mxu1  ;;  %v4933_v21 = vpop.f32.mrb[52].mxu0  ;;  %5512 = vmatpush3.bf16.msk.msra.mxu1 %vm7294_vm5, %v8571_v2 }
 0x246   :  { %v4977_v62 = vpop.f32.mrb[51].mxu1  ;;  %v4934_v29 = vpop.f32.mrb[53].mxu0 }
 0x247   :  { %v7935_v5 = vadd.f32 %v4975_v25, %v2089_v45  ;;  %v4978_v6 = vadd.f32 %v4977_v62, %v4976_v38  ;;  %v4935_v32 = vadd.f32 %v4934_v29, %v4933_v21  ;;  %v4936_v61 = vpop.f32.mrb[54].mxu0  ;;  %v5807_v25 = vld [vmem:[#allocation8 + $0xe8] ss:$48 sps:$4 sm:$0xff]  }
 0x248   :  { %3566 = vmatmul.mubr.bf16.gmra.mrb[156].mxu1 %v5789_v9  ;;  %v4937_v52 = vpop.f32.mrb[55].mxu0 }
 0x249   :  { %v7937_v14 = vadd.f32 %v4978_v6, %v2092_v55  ;;  %v2097_v20 = vadd.f32 %v4935_v32, %v7710_v24  ;;  %v4938_v4 = vadd.f32 %v4937_v52, %v4936_v61  ;;  %3679 = vmatprep.mubr.bf16.mxu1 %v5795_v50  ;;  %v5810_v50 = vld [vmem:[#allocation8 + $0x14c] ss:$48 sps:$4 sm:$0xff]  }
 0x24a   :  { %3607 = vmatmul.mubr.bf16.vlgmr.msra.gmra.mrb[160].mxu0 %v5790_v34  ;;  %v5812_v34 = vld [vmem:[#allocation8 + $0x140] ss:$48 sps:$4 sm:$0xff]  }
 0x24b   :  { %v4979_v2 = vpop.f32.mrb[52].mxu1  ;;  %v2100_v22 = vadd.f32 %v4938_v4, %v7718_v12  ;;  %3614 = vmatprep.mubr.bf16.mxu0 %v5796_v42  ;;  %v5814_v42 = vld [vmem:[#allocation8 + $0x1a4] ss:$48 sps:$4 sm:$0xff]  }
 0x24c   :  { %v4980_v31 = vpop.f32.mrb[53].mxu1 }
 0x24d   :  { %v4981_v26 = vadd.f32 %v4980_v31, %v4979_v2  ;;  %v4982_v3 = vpop.f32.mrb[54].mxu1  ;;  %v4939_v37 = vpop.f32.mrb[56].mxu0 }
 0x24e   :  { %v4983_v36 = vpop.f32.mrb[55].mxu1  ;;  %v4940_v63 = vpop.f32.mrb[57].mxu0 }
 0x24f   :  { %v7941_v27 = vadd.f32 %v4981_v26, %v2097_v20  ;;  %v4984_v15 = vadd.f32 %v4983_v36, %v4982_v3  ;;  %v4941_v24 = vadd.f32 %v4940_v63, %v4939_v37  ;;  %v4942_v56 = vpop.f32.mrb[58].mxu0 }
 0x250   :  { %3680 = vmatmul.mubr.bf16.vlgmr.msra.gmra.mrb[160].mxu1 %v5793_v41  ;;  %v4943_v8 = vpop.f32.mrb[59].mxu0  ;;  %v5813_v41 = vld [vmem:[#allocation8 + $0x148] ss:$48 sps:$4 sm:$0xff]  }
 0x251   :  { %v7943_v40 = vadd.f32 %v4984_v15, %v2100_v22  ;;  %v2105_v12 = vadd.f32 %v4941_v24, %v7731_v19  ;;  %v4944_v1 = vadd.f32 %v4943_v8, %v4942_v56  ;;  %3687 = vmatprep.mubr.bf16.mxu1 %v5798_v44  ;;  %v5816_v44 = vld [vmem:[#allocation8 + $0x1ac] ss:$48 sps:$4 sm:$0xff]  }
 0x252   :  { %3615 = vmatmul.mubr.bf16.gmra.mrb[164].mxu0 %v5800_v49  ;;  %v5818_v49 = vld [vmem:[#allocation8 + $0x1a0] ss:$48 sps:$4 sm:$0xff]  }
 0x253   :  { %v4985_v48 = vpop.f32.mrb[56].mxu1  ;;  %v2108_v58 = vadd.f32 %v4944_v1, %v7733_v53  ;;  %3622 = vmatprep.mubr.bf16.mxu0 %v5802_v59 }
 0x254   :  { %v4986_v46 = vpop.f32.mrb[57].mxu1 }
 0x255   :  { %v4987_v47 = vadd.f32 %v4986_v46, %v4985_v48  ;;  %v4988_v33 = vpop.f32.mrb[58].mxu1  ;;  %v5007_v23 = vpop.f32.mrb[60].mxu0  ;;  %v5819_v46 = vld [vmem:[#allocation8 + $0x1a8] ss:$48 sps:$4 sm:$0xff]  }
 0x256   :  { %v4989_v16 = vpop.f32.mrb[59].mxu1  ;;  %v5008_v7 = vpop.f32.mrb[61].mxu0 }
 0x257   :  { %v7947_v54 = vadd.f32 %v4987_v47, %v2105_v12  ;;  %v4990_v10 = vadd.f32 %v4989_v16, %v4988_v33  ;;  %v5009_v19 = vadd.f32 %v5008_v7, %v5007_v23  ;;  %v5010_v45 = vpop.f32.mrb[62].mxu0 }
 0x258   :  { %3688 = vmatmul.mubr.bf16.gmra.mrb[164].mxu1 %v5801_v13  ;;  %v5011_v17 = vpop.f32.mrb[63].mxu0 }
 0x259   :  { %v7949_v28 = vadd.f32 %v4990_v10, %v2108_v58  ;;  %v2519_v53 = vadd.f32 %v5009_v19, %v7887_v51  ;;  %v5012_v43 = vadd.f32 %v5011_v17, %v5010_v45  ;;  %3695 = vmatprep.mubr.bf16.mxu1 %v5804_v57 }
 0x25a   :  { %3623 = vmatmul.mubr.bf16.gmra.mrb[168].mxu0 %v5806_v39 }
 0x25b   :  { %v5053_v55 = vpop.f32.mrb[60].mxu1  ;;  %v2522_v0 = vadd.f32 %v5012_v43, %v7895_v30  ;;  %3630 = vmatprep.mubr.bf16.mxu0 %v5808_v18 }
 0x25c   :  { %v5054_v9 = vpop.f32.mrb[61].mxu1 }
 0x25d   :  { %v5055_v38 = vadd.f32 %v5054_v9, %v5053_v55  ;;  %v5056_v21 = vpop.f32.mrb[62].mxu1  ;;  %v5013_v11 = vpop.f32.mrb[64].mxu0 }
 0x25e   :  { %v5057_v62 = vpop.f32.mrb[63].mxu1  ;;  %v5014_v29 = vpop.f32.mrb[65].mxu0 }
 0x25f   :  { %v7953_v6 = vadd.f32 %v5055_v38, %v2519_v53  ;;  %v5058_v32 = vadd.f32 %v5057_v62, %v5056_v21  ;;  %v5015_v51 = vadd.f32 %v5014_v29, %v5013_v11  ;;  %v5016_v61 = vpop.f32.mrb[66].mxu0 }
 0x260   :  { %3696 = vmatmul.mubr.bf16.gmra.mrb[168].mxu1 %v5807_v25  ;;  %v5017_v52 = vpop.f32.mrb[67].mxu0 }
 0x261   :  { %v7955_v20 = vadd.f32 %v5058_v32, %v2522_v0  ;;  %v2527_v30 = vadd.f32 %v5015_v51, %v7917_v35  ;;  %v5018_v4 = vadd.f32 %v5017_v52, %v5016_v61  ;;  %3703 = vmatprep.mubr.bf16.mxu1 %v5810_v50 }
 0x262   :  { %3631 = vmatmul.mubr.bf16.gmra.mrb[172].mxu0 %v5812_v34 }
 0x263   :  { %v5059_v2 = vpop.f32.mrb[64].mxu1  ;;  %v2530_v22 = vadd.f32 %v5018_v4, %v7922_v60  ;;  %3638 = vmatprep.mubr.bf16.mxu0 %v5814_v42 }
 0x264   :  { %v5060_v31 = vpop.f32.mrb[65].mxu1 }
 0x265   :  { %v5061_v26 = vadd.f32 %v5060_v31, %v5059_v2  ;;  %v5062_v3 = vpop.f32.mrb[66].mxu1  ;;  %v5019_v37 = vpop.f32.mrb[68].mxu0 }
 0x266   :  { %v5063_v36 = vpop.f32.mrb[67].mxu1  ;;  %v5020_v63 = vpop.f32.mrb[69].mxu0 }
 0x267   :  { %v7959_v15 = vadd.f32 %v5061_v26, %v2527_v30  ;;  %v5064_v24 = vadd.f32 %v5063_v36, %v5062_v3  ;;  %v5021_v35 = vadd.f32 %v5020_v63, %v5019_v37  ;;  %v5022_v56 = vpop.f32.mrb[70].mxu0 }
 0x268   :  { %3704 = vmatmul.mubr.bf16.gmra.mrb[172].mxu1 %v5813_v41  ;;  %v5023_v59 = vpop.f32.mrb[71].mxu0 }
 0x269   :  { %v7961_v8 = vadd.f32 %v5064_v24, %v2530_v22  ;;  %v2535_v60 = vadd.f32 %v5021_v35, %v7935_v5  ;;  %v5024_v12 = vadd.f32 %v5023_v59, %v5022_v56  ;;  %3711 = vmatprep.mubr.bf16.mxu1 %v5816_v44 }
 0x26a   :  { %3639 = vmatmul.mubr.bf16.gmra.mrb[176].mxu0 %v5818_v49 }
 0x26b   :  { %v5065_v1 = vpop.f32.mrb[68].mxu1  ;;  %v2538_v48 = vadd.f32 %v5024_v12, %v7937_v14 }
 0x26c   :  { %v5066_v58 = vpop.f32.mrb[69].mxu1 }
 0x26d   :  { %v5067_v13 = vadd.f32 %v5066_v58, %v5065_v1  ;;  %v5068_v47 = vpop.f32.mrb[70].mxu1  ;;  %v5025_v33 = vpop.f32.mrb[72].mxu0 }
 0x26e   :  { %v5069_v23 = vpop.f32.mrb[71].mxu1  ;;  %v5026_v57 = vpop.f32.mrb[73].mxu0 }
 0x26f   :  { %v7965_v16 = vadd.f32 %v5067_v13, %v2535_v60  ;;  %v5070_v7 = vadd.f32 %v5069_v23, %v5068_v47  ;;  %v5027_v39 = vadd.f32 %v5026_v57, %v5025_v33  ;;  %v5028_v10 = vpop.f32.mrb[74].mxu0 }
 0x270   :  { %3712 = vmatmul.mubr.bf16.gmra.mrb[176].mxu1 %v5819_v46  ;;  %v5029_v5 = vpop.f32.mrb[75].mxu0 }
 0x271   :  { %v7967_v19 = vadd.f32 %v5070_v7, %v2538_v48  ;;  %v2543_v45 = vadd.f32 %v5027_v39, %v7941_v27  ;;  %v5030_v18 = vadd.f32 %v5029_v5, %v5028_v10 }
 0x273   :  { %v5071_v14 = vpop.f32.mrb[72].mxu1  ;;  %v2546_v17 = vadd.f32 %v5030_v18, %v7943_v40 }
 0x274   :  { %v5072_v53 = vpop.f32.mrb[73].mxu1 }
 0x275   :  { %v5073_v43 = vadd.f32 %v5072_v53, %v5071_v14  ;;  %v5074_v55 = vpop.f32.mrb[74].mxu1  ;;  %v5031_v0 = vpop.f32.mrb[76].mxu0 }
 0x276   :  { %v5075_v9 = vpop.f32.mrb[75].mxu1  ;;  %v5032_v25 = vpop.f32.mrb[77].mxu0 }
 0x277   :  { %v7971_v38 = vadd.f32 %v5073_v43, %v2543_v45  ;;  %v5076_v21 = vadd.f32 %v5075_v9, %v5074_v55  ;;  %v5033_v11 = vadd.f32 %v5032_v25, %v5031_v0  ;;  %v5034_v50 = vpop.f32.mrb[78].mxu0 }
 0x278   :  { %v5035_v62 = vpop.f32.mrb[79].mxu0 }
 0x279   :  { %v7973_v29 = vadd.f32 %v5076_v21, %v2546_v17  ;;  %v2551_v27 = vadd.f32 %v5033_v11, %v7947_v54  ;;  %v5036_v34 = vadd.f32 %v5035_v62, %v5034_v50 }
 0x27b   :  { %v5077_v32 = vpop.f32.mrb[76].mxu1  ;;  %v2554_v40 = vadd.f32 %v5036_v34, %v7949_v28 }
 0x27c   :  { %v5078_v51 = vpop.f32.mrb[77].mxu1 }
 0x27d   :  { %v5079_v61 = vadd.f32 %v5078_v51, %v5077_v32  ;;  %v5080_v42 = vpop.f32.mrb[78].mxu1  ;;  %v5099_v52 = vpop.f32.mrb[80].mxu0 }
 0x27e   :  { %v5081_v30 = vpop.f32.mrb[79].mxu1  ;;  %v5100_v4 = vpop.f32.mrb[81].mxu0 }
 0x27f   :  { %v7977_v2 = vadd.f32 %v5079_v61, %v2551_v27  ;;  %v5082_v22 = vadd.f32 %v5081_v30, %v5080_v42  ;;  %v5101_v31 = vadd.f32 %v5100_v4, %v5099_v52  ;;  %v5102_v41 = vpop.f32.mrb[82].mxu0 }
 0x280   :  { %v5103_v26 = vpop.f32.mrb[83].mxu0 }
 0x281   :  { %v7979_v3 = vadd.f32 %v5082_v22, %v2554_v40  ;;  %v2665_v54 = vadd.f32 %v5101_v31, %v7953_v6  ;;  %v5104_v37 = vadd.f32 %v5103_v26, %v5102_v41 }
 0x283   :  { %v5145_v44 = vpop.f32.mrb[80].mxu1  ;;  %v2668_v28 = vadd.f32 %v5104_v37, %v7955_v20 }
 0x284   :  { %v5146_v36 = vpop.f32.mrb[81].mxu1 }
 0x285   :  { %v5147_v63 = vadd.f32 %v5146_v36, %v5145_v44  ;;  %v5148_v49 = vpop.f32.mrb[82].mxu1  ;;  %v5105_v24 = vpop.f32.mrb[84].mxu0 }
 0x286   :  { %v5149_v35 = vpop.f32.mrb[83].mxu1  ;;  %v5106_v56 = vpop.f32.mrb[85].mxu0 }
 0x287   :  { %v7983_v59 = vadd.f32 %v5147_v63, %v2665_v54  ;;  %v5150_v60 = vadd.f32 %v5149_v35, %v5148_v49  ;;  %v5107_v12 = vadd.f32 %v5106_v56, %v5105_v24  ;;  %v5108_v1 = vpop.f32.mrb[86].mxu0 }
 0x288   :  { %v5109_v48 = vpop.f32.mrb[87].mxu0 }
 0x289   :  { %v7985_v58 = vadd.f32 %v5150_v60, %v2668_v28  ;;  %v2673_v6 = vadd.f32 %v5107_v12, %v7959_v15  ;;  %v5110_v46 = vadd.f32 %v5109_v48, %v5108_v1 }
 0x28b   :  { %v5151_v13 = vpop.f32.mrb[84].mxu1  ;;  %v2676_v20 = vadd.f32 %v5110_v46, %v7961_v8 }
 0x28c   :  { %v5152_v47 = vpop.f32.mrb[85].mxu1 }
 0x28d   :  { %v5153_v33 = vadd.f32 %v5152_v47, %v5151_v13  ;;  %v5154_v23 = vpop.f32.mrb[86].mxu1  ;;  %v5111_v57 = vpop.f32.mrb[88].mxu0 }
 0x28e   :  { %v5155_v7 = vpop.f32.mrb[87].mxu1  ;;  %v5112_v39 = vpop.f32.mrb[89].mxu0 }
 0x28f   :  { %v7989_v10 = vadd.f32 %v5153_v33, %v2673_v6  ;;  %v5156_v5 = vadd.f32 %v5155_v7, %v5154_v23  ;;  %v5113_v45 = vadd.f32 %v5112_v39, %v5111_v57  ;;  %v5114_v18 = vpop.f32.mrb[90].mxu0 }
 0x290   :  { %v5115_v14 = vpop.f32.mrb[91].mxu0 }
 0x291   :  { %v7991_v17 = vadd.f32 %v5156_v5, %v2676_v20  ;;  %v2681_v15 = vadd.f32 %v5113_v45, %v7965_v16  ;;  %v5116_v53 = vadd.f32 %v5115_v14, %v5114_v18 }
 0x293   :  { %v5157_v43 = vpop.f32.mrb[88].mxu1  ;;  %v2684_v8 = vadd.f32 %v5116_v53, %v7967_v19 }
 0x294   :  { %v5158_v55 = vpop.f32.mrb[89].mxu1 }
 0x295   :  { %v5159_v0 = vadd.f32 %v5158_v55, %v5157_v43  ;;  %v5160_v9 = vpop.f32.mrb[90].mxu1  ;;  %v5117_v25 = vpop.f32.mrb[92].mxu0 }
 0x296   :  { %v5161_v21 = vpop.f32.mrb[91].mxu1  ;;  %v5118_v11 = vpop.f32.mrb[93].mxu0 }
 0x297   :  { %v7995_v50 = vadd.f32 %v5159_v0, %v2681_v15  ;;  %v5162_v62 = vadd.f32 %v5161_v21, %v5160_v9  ;;  %v5119_v27 = vadd.f32 %v5118_v11, %v5117_v25  ;;  %v5120_v34 = vpop.f32.mrb[94].mxu0 }
 0x298   :  { %v5121_v32 = vpop.f32.mrb[95].mxu0 }
 0x299   :  { %v7997_v40 = vadd.f32 %v5162_v62, %v2684_v8  ;;  %v2689_v16 = vadd.f32 %v5119_v27, %v7971_v38  ;;  %v5122_v51 = vadd.f32 %v5121_v32, %v5120_v34 }
 0x29b   :  { %v5163_v61 = vpop.f32.mrb[92].mxu1  ;;  %v2692_v19 = vadd.f32 %v5122_v51, %v7973_v29 }
 0x29c   :  { %v5164_v42 = vpop.f32.mrb[93].mxu1 }
 0x29d   :  { %v5165_v52 = vadd.f32 %v5164_v42, %v5163_v61  ;;  %v5166_v30 = vpop.f32.mrb[94].mxu1  ;;  %v5123_v4 = vpop.f32.mrb[96].mxu0 }
 0x29e   :  { %v5167_v22 = vpop.f32.mrb[95].mxu1  ;;  %v5124_v31 = vpop.f32.mrb[97].mxu0 }
 0x29f   :  { %v8001_v41 = vadd.f32 %v5165_v52, %v2689_v16  ;;  %v5168_v26 = vadd.f32 %v5167_v22, %v5166_v30  ;;  %v5125_v54 = vadd.f32 %v5124_v31, %v5123_v4  ;;  %v5126_v37 = vpop.f32.mrb[98].mxu0 }
 0x2a0   :  { %v5127_v44 = vpop.f32.mrb[99].mxu0 }
 0x2a1   :  { %v8003_v28 = vadd.f32 %v5168_v26, %v2692_v19  ;;  %v2697_v38 = vadd.f32 %v5125_v54, %v7977_v2  ;;  %v5128_v36 = vadd.f32 %v5127_v44, %v5126_v37 }
 0x2a3   :  { %v5169_v63 = vpop.f32.mrb[96].mxu1  ;;  %v2700_v29 = vadd.f32 %v5128_v36, %v7979_v3 }
 0x2a4   :  { %v5170_v49 = vpop.f32.mrb[97].mxu1 }
 0x2a5   :  { %v5171_v24 = vadd.f32 %v5170_v49, %v5169_v63  ;;  %v5172_v35 = vpop.f32.mrb[98].mxu1  ;;  %v5191_v56 = vpop.f32.mrb[100].mxu0 }
 0x2a6   :  { %v5173_v60 = vpop.f32.mrb[99].mxu1  ;;  %v5192_v12 = vpop.f32.mrb[101].mxu0 }
 0x2a7   :  { %v8007_v1 = vadd.f32 %v5171_v24, %v2697_v38  ;;  %v5174_v48 = vadd.f32 %v5173_v60, %v5172_v35  ;;  %v5193_v6 = vadd.f32 %v5192_v12, %v5191_v56  ;;  %v5194_v46 = vpop.f32.mrb[102].mxu0 }
 0x2a8   :  { %v5195_v13 = vpop.f32.mrb[103].mxu0 }
 0x2a9   :  { %v8009_v20 = vadd.f32 %v5174_v48, %v2700_v29  ;;  %v2811_v2 = vadd.f32 %v5193_v6, %v7983_v59  ;;  %v5196_v47 = vadd.f32 %v5195_v13, %v5194_v46 }
 0x2ab   :  { %v5237_v33 = vpop.f32.mrb[100].mxu1  ;;  %v2814_v3 = vadd.f32 %v5196_v47, %v7985_v58 }
 0x2ac   :  { %v5238_v23 = vpop.f32.mrb[101].mxu1 }
 0x2ad   :  { %v5239_v57 = vadd.f32 %v5238_v23, %v5237_v33  ;;  %v5240_v7 = vpop.f32.mrb[102].mxu1  ;;  %v5197_v39 = vpop.f32.mrb[104].mxu0 }
 0x2ae   :  { %v5241_v5 = vpop.f32.mrb[103].mxu1  ;;  %v5198_v45 = vpop.f32.mrb[105].mxu0 }
 0x2af   :  { %v8013_v18 = vadd.f32 %v5239_v57, %v2811_v2  ;;  %v5242_v14 = vadd.f32 %v5241_v5, %v5240_v7  ;;  %v5199_v15 = vadd.f32 %v5198_v45, %v5197_v39  ;;  %v5200_v53 = vpop.f32.mrb[106].mxu0 }
 0x2b0   :  { %v5201_v43 = vpop.f32.mrb[107].mxu0 }
 0x2b1   :  { %v8015_v8 = vadd.f32 %v5242_v14, %v2814_v3  ;;  %v2819_v59 = vadd.f32 %v5199_v15, %v7989_v10  ;;  %v5202_v55 = vadd.f32 %v5201_v43, %v5200_v53 }
 0x2b3   :  { %v5243_v0 = vpop.f32.mrb[104].mxu1  ;;  %v2822_v58 = vadd.f32 %v5202_v55, %v7991_v17 }
 0x2b4   :  { %v5244_v9 = vpop.f32.mrb[105].mxu1 }
 0x2b5   :  { %v5245_v25 = vadd.f32 %v5244_v9, %v5243_v0  ;;  %v5246_v21 = vpop.f32.mrb[106].mxu1  ;;  %v5203_v11 = vpop.f32.mrb[108].mxu0 }
 0x2b6   :  { %v5247_v62 = vpop.f32.mrb[107].mxu1  ;;  %v5204_v27 = vpop.f32.mrb[109].mxu0 }
 0x2b7   :  { %v8019_v34 = vadd.f32 %v5245_v25, %v2819_v59  ;;  %v5248_v32 = vadd.f32 %v5247_v62, %v5246_v21  ;;  %v5205_v16 = vadd.f32 %v5204_v27, %v5203_v11  ;;  %v5206_v51 = vpop.f32.mrb[110].mxu0 }
 0x2b8   :  { %v5207_v61 = vpop.f32.mrb[111].mxu0 }
 0x2b9   :  { %v8021_v19 = vadd.f32 %v5248_v32, %v2822_v58  ;;  %v2827_v10 = vadd.f32 %v5205_v16, %v7995_v50  ;;  %v5208_v42 = vadd.f32 %v5207_v61, %v5206_v51 }
 0x2bb   :  { %v5249_v52 = vpop.f32.mrb[108].mxu1  ;;  %v2830_v17 = vadd.f32 %v5208_v42, %v7997_v40 }
 0x2bc   :  { %v5250_v30 = vpop.f32.mrb[109].mxu1 }
 0x2bd   :  { %v5251_v4 = vadd.f32 %v5250_v30, %v5249_v52  ;;  %v5252_v22 = vpop.f32.mrb[110].mxu1  ;;  %v5209_v31 = vpop.f32.mrb[112].mxu0 }
 0x2be   :  { %v5253_v26 = vpop.f32.mrb[111].mxu1  ;;  %v5210_v54 = vpop.f32.mrb[113].mxu0 }
 0x2bf   :  { %v8025_v37 = vadd.f32 %v5251_v4, %v2827_v10  ;;  %v5254_v44 = vadd.f32 %v5253_v26, %v5252_v22  ;;  %v5211_v38 = vadd.f32 %v5210_v54, %v5209_v31  ;;  %v5212_v36 = vpop.f32.mrb[114].mxu0 }
 0x2c0   :  { %v5213_v63 = vpop.f32.mrb[115].mxu0 }
 0x2c1   :  { %v8027_v29 = vadd.f32 %v5254_v44, %v2830_v17  ;;  %v2835_v50 = vadd.f32 %v5211_v38, %v8001_v41  ;;  %v5214_v49 = vadd.f32 %v5213_v63, %v5212_v36 }
 0x2c3   :  { %v5255_v24 = vpop.f32.mrb[112].mxu1  ;;  %v2838_v40 = vadd.f32 %v5214_v49, %v8003_v28 }
 0x2c4   :  { %v5256_v35 = vpop.f32.mrb[113].mxu1 }
 0x2c5   :  { %v5257_v56 = vadd.f32 %v5256_v35, %v5255_v24  ;;  %v5258_v60 = vpop.f32.mrb[114].mxu1  ;;  %v5215_v12 = vpop.f32.mrb[116].mxu0 }
 0x2c6   :  { %v5259_v48 = vpop.f32.mrb[115].mxu1  ;;  %v5216_v6 = vpop.f32.mrb[117].mxu0 }
 0x2c7   :  { %v8031_v46 = vadd.f32 %v5257_v56, %v2835_v50  ;;  %v5260_v13 = vadd.f32 %v5259_v48, %v5258_v60  ;;  %v5217_v2 = vadd.f32 %v5216_v6, %v5215_v12  ;;  %v5218_v47 = vpop.f32.mrb[118].mxu0 }
 0x2c8   :  { %v5219_v33 = vpop.f32.mrb[119].mxu0 }
 0x2c9   :  { %v8033_v3 = vadd.f32 %v5260_v13, %v2838_v40  ;;  %v2843_v41 = vadd.f32 %v5217_v2, %v8007_v1  ;;  %v5220_v23 = vadd.f32 %v5219_v33, %v5218_v47 }
 0x2cb   :  { %v5261_v57 = vpop.f32.mrb[116].mxu1  ;;  %v2846_v28 = vadd.f32 %v5220_v23, %v8009_v20 }
 0x2cc   :  { %v5262_v7 = vpop.f32.mrb[117].mxu1 }
 0x2cd   :  { %v5263_v39 = vadd.f32 %v5262_v7, %v5261_v57  ;;  %v5264_v5 = vpop.f32.mrb[118].mxu1  ;;  %v5283_v45 = vpop.f32.mrb[120].mxu0 }
 0x2ce   :  { %v5265_v14 = vpop.f32.mrb[119].mxu1  ;;  %v5284_v15 = vpop.f32.mrb[121].mxu0 }
 0x2cf   :  { %v8037_v53 = vadd.f32 %v5263_v39, %v2843_v41  ;;  %v5266_v43 = vadd.f32 %v5265_v14, %v5264_v5  ;;  %v5285_v59 = vadd.f32 %v5284_v15, %v5283_v45  ;;  %v5286_v55 = vpop.f32.mrb[122].mxu0 }
 0x2d0   :  { %v5287_v0 = vpop.f32.mrb[123].mxu0 }
 0x2d1   :  { %v8039_v58 = vadd.f32 %v5266_v43, %v2846_v28  ;;  %v5288_v9 = vadd.f32 %v5287_v0, %v5286_v55 }
 0x2d3   :  { %v5329_v1 = vpop.f32.mrb[120].mxu1 }
 0x2d4   :  { %v5330_v25 = vpop.f32.mrb[121].mxu1 }
 0x2d5   :  { %v5331_v21 = vadd.f32 %v5330_v25, %v5329_v1  ;;  %v5332_v11 = vpop.f32.mrb[122].mxu1  ;;  %v5289_v20 = vpop.f32.mrb[124].mxu0 }
 0x2d6   :  { %v5333_v62 = vpop.f32.mrb[123].mxu1  ;;  %v5290_v27 = vpop.f32.mrb[125].mxu0 }
 0x2d7   :  { %v3390_v32 = vadd.f32 %v5331_v21, %v5285_v59  ;;  %v5334_v16 = vadd.f32 %v5333_v62, %v5332_v11  ;;  %v5291_v51 = vadd.f32 %v5290_v27, %v5289_v20  ;;  %v5292_v61 = vpop.f32.mrb[126].mxu0 }
 0x2d8   :  { %v5293_v10 = vpop.f32.mrb[127].mxu0 }
 0x2d9   :  { %v3393_v42 = vadd.f32 %v5334_v16, %v5288_v9  ;;  %v5294_v52 = vadd.f32 %v5293_v10, %v5292_v61 }
 0x2db   :  { %v5335_v17 = vpop.f32.mrb[124].mxu1 }
 0x2dc   :  { %v5336_v30 = vpop.f32.mrb[125].mxu1 }
 0x2dd   :  { %v5337_v4 = vadd.f32 %v5336_v30, %v5335_v17  ;;  %v5338_v22 = vpop.f32.mrb[126].mxu1  ;;  %v5295_v31 = vpop.f32.mrb[128].mxu0 }
 0x2de   :  { %v5339_v26 = vpop.f32.mrb[127].mxu1  ;;  %v5296_v54 = vpop.f32.mrb[129].mxu0 }
 0x2df   :  { %v8041_v44 = vadd.f32 %v5337_v4, %v5291_v51  ;;  %v5340_v38 = vadd.f32 %v5339_v26, %v5338_v22  ;;  %v5297_v36 = vadd.f32 %v5296_v54, %v5295_v31  ;;  %v5298_v63 = vpop.f32.mrb[130].mxu0 }
 0x2e0   :  { %v5299_v50 = vpop.f32.mrb[131].mxu0 }
 0x2e1   :  { %v3401_v49 = vadd.f32 %v5340_v38, %v5294_v52  ;;  %v5300_v24 = vadd.f32 %v5299_v50, %v5298_v63 }
 0x2e3   :  { %v5341_v40 = vpop.f32.mrb[128].mxu1 }
 0x2e4   :  { %v5342_v35 = vpop.f32.mrb[129].mxu1 }
 0x2e5   :  { %v5343_v56 = vadd.f32 %v5342_v35, %v5341_v40  ;;  %v5344_v60 = vpop.f32.mrb[130].mxu1  ;;  %v5301_v12 = vpop.f32.mrb[132].mxu0 }
 0x2e6   :  { %v5345_v48 = vpop.f32.mrb[131].mxu1  ;;  %v5302_v6 = vpop.f32.mrb[133].mxu0 }
 0x2e7   :  { %v8043_v13 = vadd.f32 %v5343_v56, %v5297_v36  ;;  %v5346_v2 = vadd.f32 %v5345_v48, %v5344_v60  ;;  %v5303_v47 = vadd.f32 %v5302_v6, %v5301_v12  ;;  %v5304_v33 = vpop.f32.mrb[134].mxu0 }
 0x2e8   :  { %v5305_v41 = vpop.f32.mrb[135].mxu0 }
 0x2e9   :  { %v8045_v23 = vadd.f32 %v5346_v2, %v5300_v24  ;;  %v5306_v57 = vadd.f32 %v5305_v41, %v5304_v33 }
 0x2eb   :  { %v5347_v28 = vpop.f32.mrb[132].mxu1 }
 0x2ec   :  { %v5348_v7 = vpop.f32.mrb[133].mxu1 }
 0x2ed   :  { %v5349_v39 = vadd.f32 %v5348_v7, %v5347_v28  ;;  %v5350_v5 = vpop.f32.mrb[134].mxu1  ;;  %v5307_v45 = vpop.f32.mrb[136].mxu0 }
 0x2ee   :  { %v5351_v14 = vpop.f32.mrb[135].mxu1  ;;  %v5308_v15 = vpop.f32.mrb[137].mxu0 }
 0x2ef   :  { %v8047_v43 = vadd.f32 %v5349_v39, %v5303_v47  ;;  %v5352_v59 = vadd.f32 %v5351_v14, %v5350_v5  ;;  %v5309_v55 = vadd.f32 %v5308_v15, %v5307_v45  ;;  %v5310_v0 = vpop.f32.mrb[138].mxu0 }
 0x2f0   :  { %v5311_v9 = vpop.f32.mrb[139].mxu0 }
 0x2f1   :  { %v8049_v1 = vadd.f32 %v5352_v59, %v5306_v57  ;;  %v5312_v25 = vadd.f32 %v5311_v9, %v5310_v0 }
 0x2f3   :  { %v5353_v21 = vpop.f32.mrb[136].mxu1 }
 0x2f4   :  { %v5354_v11 = vpop.f32.mrb[137].mxu1 }
 0x2f5   :  { %v5355_v20 = vadd.f32 %v5354_v11, %v5353_v21  ;;  %v5356_v62 = vpop.f32.mrb[138].mxu1  ;;  %v5375_v27 = vpop.f32.mrb[140].mxu0 }
 0x2f6   :  { %v5357_v16 = vpop.f32.mrb[139].mxu1  ;;  %v5376_v51 = vpop.f32.mrb[141].mxu0 }
 0x2f7   :  { %v8051_v61 = vadd.f32 %v5355_v20, %v5309_v55  ;;  %v5358_v10 = vadd.f32 %v5357_v16, %v5356_v62  ;;  %v5377_v52 = vadd.f32 %v5376_v51, %v5375_v27  ;;  %v5378_v17 = vpop.f32.mrb[142].mxu0 }
 0x2f8   :  { %v5379_v30 = vpop.f32.mrb[143].mxu0 }
 0x2f9   :  { %v8053_v4 = vadd.f32 %v5358_v10, %v5312_v25  ;;  %v3463_v22 = vadd.f32 %v5377_v52, %v3390_v32  ;;  %v5380_v31 = vadd.f32 %v5379_v30, %v5378_v17 }
 0x2fb   :  { %v5421_v26 = vpop.f32.mrb[140].mxu1  ;;  %v3466_v54 = vadd.f32 %v5380_v31, %v3393_v42 }
 0x2fc   :  { %v5422_v38 = vpop.f32.mrb[141].mxu1 }
 0x2fd   :  { %v5423_v36 = vadd.f32 %v5422_v38, %v5421_v26  ;;  %v5424_v63 = vpop.f32.mrb[142].mxu1  ;;  %v5381_v50 = vpop.f32.mrb[144].mxu0 }
 0x2fe   :  { %v5425_v24 = vpop.f32.mrb[143].mxu1  ;;  %v5382_v40 = vpop.f32.mrb[145].mxu0 }
 0x2ff   :  { %v8055_v35 = vadd.f32 %v5423_v36, %v3463_v22  ;;  %v5426_v56 = vadd.f32 %v5425_v24, %v5424_v63  ;;  %v5383_v60 = vadd.f32 %v5382_v40, %v5381_v50  ;;  %v5384_v12 = vpop.f32.mrb[146].mxu0 }
 0x300   :  { %v5385_v48 = vpop.f32.mrb[147].mxu0 }
 0x301   :  { %v8057_v6 = vadd.f32 %v5426_v56, %v3466_v54  ;;  %v3471_v2 = vadd.f32 %v5383_v60, %v8041_v44  ;;  %v5386_v32 = vadd.f32 %v5385_v48, %v5384_v12 }
 0x303   :  { %v5427_v47 = vpop.f32.mrb[144].mxu1  ;;  %v3474_v33 = vadd.f32 %v5386_v32, %v3401_v49 }
 0x304   :  { %v5428_v42 = vpop.f32.mrb[145].mxu1 }
 0x305   :  { %v5429_v41 = vadd.f32 %v5428_v42, %v5427_v47  ;;  %v5430_v57 = vpop.f32.mrb[146].mxu1  ;;  %v5387_v28 = vpop.f32.mrb[148].mxu0 }
 0x306   :  { %v5431_v7 = vpop.f32.mrb[147].mxu1  ;;  %v5388_v39 = vpop.f32.mrb[149].mxu0 }
 0x307   :  { %v8060_v5 = vadd.f32 %v5429_v41, %v3471_v2  ;;  %v5432_v45 = vadd.f32 %v5431_v7, %v5430_v57  ;;  %v5389_v14 = vadd.f32 %v5388_v39, %v5387_v28  ;;  %v5390_v15 = vpop.f32.mrb[150].mxu0 }
 0x308   :  { %v5391_v59 = vpop.f32.mrb[151].mxu0 }
 0x309   :  { %v8062_v55 = vadd.f32 %v5432_v45, %v3474_v33  ;;  %v3479_v0 = vadd.f32 %v5389_v14, %v8043_v13  ;;  %v5392_v44 = vadd.f32 %v5391_v59, %v5390_v15 }
 0x30b   :  { %v5433_v9 = vpop.f32.mrb[148].mxu1  ;;  %v3482_v49 = vadd.f32 %v5392_v44, %v8045_v23 }
 0x30c   :  { %v5434_v25 = vpop.f32.mrb[149].mxu1 }
 0x30d   :  { %v5435_v21 = vadd.f32 %v5434_v25, %v5433_v9  ;;  %v5436_v11 = vpop.f32.mrb[150].mxu1  ;;  %v5393_v20 = vpop.f32.mrb[152].mxu0 }
 0x30e   :  { %v5437_v62 = vpop.f32.mrb[151].mxu1  ;;  %v5394_v27 = vpop.f32.mrb[153].mxu0 }
 0x30f   :  { %v8066_v16 = vadd.f32 %v5435_v21, %v3479_v0  ;;  %v5438_v51 = vadd.f32 %v5437_v62, %v5436_v11  ;;  %v5395_v10 = vadd.f32 %v5394_v27, %v5393_v20  ;;  %v5396_v52 = vpop.f32.mrb[154].mxu0 }
 0x310   :  { %v5397_v17 = vpop.f32.mrb[155].mxu0 }
 0x311   :  { %v8068_v30 = vadd.f32 %v5438_v51, %v3482_v49  ;;  %v3487_v13 = vadd.f32 %v5395_v10, %v8047_v43  ;;  %v5398_v22 = vadd.f32 %v5397_v17, %v5396_v52 }
 0x313   :  { %v5439_v31 = vpop.f32.mrb[152].mxu1  ;;  %v3490_v23 = vadd.f32 %v5398_v22, %v8049_v1 }
 0x314   :  { %v5440_v26 = vpop.f32.mrb[153].mxu1 }
 0x315   :  { %v5441_v54 = vadd.f32 %v5440_v26, %v5439_v31  ;;  %v5442_v38 = vpop.f32.mrb[154].mxu1  ;;  %v5399_v36 = vpop.f32.mrb[156].mxu0 }
 0x316   :  { %v5443_v63 = vpop.f32.mrb[155].mxu1  ;;  %v5400_v50 = vpop.f32.mrb[157].mxu0 }
 0x317   :  { %v8072_v24 = vadd.f32 %v5441_v54, %v3487_v13  ;;  %v5444_v40 = vadd.f32 %v5443_v63, %v5442_v38  ;;  %v5401_v56 = vadd.f32 %v5400_v50, %v5399_v36  ;;  %v5402_v60 = vpop.f32.mrb[158].mxu0 }
 0x318   :  { %v5403_v12 = vpop.f32.mrb[159].mxu0 }
 0x319   :  { %v8074_v48 = vadd.f32 %v5444_v40, %v3490_v23  ;;  %v3495_v43 = vadd.f32 %v5401_v56, %v8051_v61  ;;  %v5404_v2 = vadd.f32 %v5403_v12, %v5402_v60 }
 0x31b   :  { %v5445_v32 = vpop.f32.mrb[156].mxu1  ;;  %v3498_v1 = vadd.f32 %v5404_v2, %v8053_v4 }
 0x31c   :  { %v5446_v47 = vpop.f32.mrb[157].mxu1 }
 0x31d   :  { %v5447_v33 = vadd.f32 %v5446_v47, %v5445_v32  ;;  %v5448_v42 = vpop.f32.mrb[158].mxu1  ;;  %v5467_v41 = vpop.f32.mrb[160].mxu0 }
 0x31e   :  { %v5449_v57 = vpop.f32.mrb[159].mxu1  ;;  %v5468_v28 = vpop.f32.mrb[161].mxu0 }
 0x31f   :  { %v8078_v7 = vadd.f32 %v5447_v33, %v3495_v43  ;;  %v5450_v39 = vadd.f32 %v5449_v57, %v5448_v42  ;;  %v5469_v45 = vadd.f32 %v5468_v28, %v5467_v41  ;;  %v5470_v14 = vpop.f32.mrb[162].mxu0 }
 0x320   :  { %v5471_v15 = vpop.f32.mrb[163].mxu0 }
 0x321   :  { %v8080_v59 = vadd.f32 %v5450_v39, %v3498_v1  ;;  %v3609_v61 = vadd.f32 %v5469_v45, %v8055_v35  ;;  %v5472_v0 = vadd.f32 %v5471_v15, %v5470_v14 }
 0x323   :  { %v5513_v44 = vpop.f32.mrb[160].mxu1  ;;  %v3612_v4 = vadd.f32 %v5472_v0, %v8057_v6 }
 0x324   :  { %v5514_v9 = vpop.f32.mrb[161].mxu1 }
 0x325   :  { %v5515_v49 = vadd.f32 %v5514_v9, %v5513_v44  ;;  %v5516_v25 = vpop.f32.mrb[162].mxu1  ;;  %v5473_v21 = vpop.f32.mrb[164].mxu0 }
 0x326   :  { %v5517_v11 = vpop.f32.mrb[163].mxu1  ;;  %v5474_v20 = vpop.f32.mrb[165].mxu0 }
 0x327   :  { %v3682_v62 = vadd.f32 %v5515_v49, %v3609_v61  ;;  %v5518_v27 = vadd.f32 %v5517_v11, %v5516_v25  ;;  %v5475_v51 = vadd.f32 %v5474_v20, %v5473_v21  ;;  %v5476_v10 = vpop.f32.mrb[166].mxu0 }
 0x328   :  { %v5477_v52 = vpop.f32.mrb[167].mxu0 }
 0x329   :  { %v3720_v17 = vadd.f32 %v3682_v62, %v8013_v18  ;;  %v3685_v13 = vadd.f32 %v5518_v27, %v3612_v4  ;;  %v3617_v35 = vadd.f32 %v5475_v51, %v8060_v5  ;;  %v5478_v22 = vadd.f32 %v5477_v52, %v5476_v10 }
 0x32b   :  { %v3721_v31 = vadd.f32 %v3685_v13, %v8015_v8  ;;  %v5519_v6 = vpop.f32.mrb[164].mxu1  ;;  %v3620_v23 = vadd.f32 %v5478_v22, %v8062_v55 }
 0x32c   :  { %v5520_v26 = vpop.f32.mrb[165].mxu1 }
 0x32d   :  { %v5521_v54 = vadd.f32 %v5520_v26, %v5519_v6  ;;  %v5522_v38 = vpop.f32.mrb[166].mxu1  ;;  %v5479_v36 = vpop.f32.mrb[168].mxu0 }
 0x32e   :  { %v5523_v63 = vpop.f32.mrb[167].mxu1  ;;  %v5480_v50 = vpop.f32.mrb[169].mxu0 }
 0x32f   :  { %v3690_v40 = vadd.f32 %v5521_v54, %v3617_v35  ;;  %v5524_v56 = vadd.f32 %v5523_v63, %v5522_v38  ;;  %v5481_v60 = vadd.f32 %v5480_v50, %v5479_v36  ;;  %v5482_v12 = vpop.f32.mrb[170].mxu0 }
 0x330   :  { %v5483_v18 = vpop.f32.mrb[171].mxu0 }
 0x331   :  { %v3722_v43 = vadd.f32 %v3690_v40, %v8019_v34  ;;  %v3693_v5 = vadd.f32 %v5524_v56, %v3620_v23  ;;  %v3625_v2 = vadd.f32 %v5481_v60, %v8066_v16  ;;  %v5484_v8 = vadd.f32 %v5483_v18, %v5482_v12 }
 0x333   :  { %v3723_v32 = vadd.f32 %v3693_v5, %v8021_v19  ;;  %v5525_v55 = vpop.f32.mrb[168].mxu1  ;;  %v3628_v1 = vadd.f32 %v5484_v8, %v8068_v30 }
 0x334   :  { %v5526_v47 = vpop.f32.mrb[169].mxu1 }
 0x335   :  { %v5527_v33 = vadd.f32 %v5526_v47, %v5525_v55  ;;  %v5528_v42 = vpop.f32.mrb[170].mxu1  ;;  %v5485_v41 = vpop.f32.mrb[172].mxu0  ;;  %v3746_v55 = vstv %s8117_s0 }
 0x336   :  { %v5529_v57 = vpop.f32.mrb[171].mxu1  ;;  %v5486_v28 = vpop.f32.mrb[173].mxu0 }
 0x337   :  { %v3698_v39 = vadd.f32 %v5527_v33, %v3625_v2  ;;  %v5530_v45 = vadd.f32 %v5529_v57, %v5528_v42  ;;  %v5487_v14 = vadd.f32 %v5486_v28, %v5485_v41  ;;  %v5488_v15 = vpop.f32.mrb[174].mxu0 }
 0x338   :  { %v5489_v34 = vpop.f32.mrb[175].mxu0 }
 0x339   :  { %v3724_v61 = vadd.f32 %v3698_v39, %v8025_v37  ;;  %v3701_v16 = vadd.f32 %v5530_v45, %v3628_v1  ;;  %v3633_v0 = vadd.f32 %v5487_v14, %v8072_v24  ;;  %v5490_v19 = vadd.f32 %v5489_v34, %v5488_v15 }
 0x33b   :  { %v3725_v44 = vadd.f32 %v3701_v16, %v8027_v29  ;;  %v5531_v30 = vpop.f32.mrb[172].mxu1  ;;  %v3636_v4 = vadd.f32 %v5490_v19, %v8074_v48 }
 0x33c   :  { %v5532_v9 = vpop.f32.mrb[173].mxu1 }
 0x33d   :  { %v3730_v49 = vmul.f32 %v3725_v44, %v3720_v17  ;;  %v5533_v25 = vadd.f32 %v5532_v9, %v5531_v30  ;;  %v5534_v21 = vpop.f32.mrb[174].mxu1  ;;  %v5491_v11 = vpop.f32.mrb[176].mxu0 }
 0x33e   :  { %v5535_v20 = vpop.f32.mrb[175].mxu1  ;;  %v5492_v62 = vpop.f32.mrb[177].mxu0 }
 0x33f   :  { %v3706_v27 = vadd.f32 %v5533_v25, %v3633_v0  ;;  %v5536_v51 = vadd.f32 %v5535_v20, %v5534_v21  ;;  %v5493_v10 = vadd.f32 %v5492_v62, %v5491_v11  ;;  %v5494_v37 = vpop.f32.mrb[178].mxu0 }
 0x340   :  { %v5495_v52 = vpop.f32.mrb[179].mxu0 }
 0x341   :  { %v3726_v24 = vadd.f32 %v3706_v27, %v8031_v46  ;;  %v3709_v13 = vadd.f32 %v5536_v51, %v3636_v4  ;;  %v3641_v29 = vadd.f32 %v5493_v10, %v8078_v7  ;;  %v5496_v35 = vadd.f32 %v5495_v52, %v5494_v37 }
 0x343   :  { %v3731_v22 = vmul.f32 %v3726_v24, %v3721_v31  ;;  %v3727_v48 = vadd.f32 %v3709_v13, %v8033_v3  ;;  %v5537_v17 = vpop.f32.mrb[176].mxu1  ;;  %v3644_v6 = vadd.f32 %v5496_v35, %v8080_v59 }
 0x344   :  { %v5538_v23 = vpop.f32.mrb[177].mxu1 }
 0x345   :  { %v3735_v26 = vadd.f32 %v3731_v22, %v3730_v49  ;;  %v3732_v54 = vmul.f32 %v3727_v48, %v3722_v43  ;;  %v5539_v38 = vadd.f32 %v5538_v23, %v5537_v17  ;;  %v5540_v36 = vpop.f32.mrb[178].mxu1 }
 0x346   :  { %v5541_v63 = vpop.f32.mrb[179].mxu1 }
 0x347   :  { %v3736_v50 = vadd.f32 %v3735_v26, %v3732_v54  ;;  %v3714_v40 = vadd.f32 %v5539_v38, %v3641_v29  ;;  %v5542_v56 = vadd.f32 %v5541_v63, %v5540_v36 }
 0x349   :  { %v3728_v46 = vadd.f32 %v3714_v40, %v8037_v53  ;;  %v3717_v60 = vadd.f32 %v5542_v56, %v3644_v6 }
 0x34b   :  { %v3733_v7 = vmul.f32 %v3728_v46, %v3723_v32  ;;  %v3729_v31 = vadd.f32 %v3717_v60, %v8039_v58 }
 0x34d   :  { %v3737_v12 = vadd.f32 %v3736_v50, %v3733_v7  ;;  %v3734_v3 = vmul.f32 %v3729_v31, %v3724_v61 }
 0x34f   :  { %v3738_v18 = vadd.f32 %v3737_v12, %v3734_v3 }
 0x351   :  { %v3739_v5 = vrot.slane %v3738_v18, 4 }
 0x353   :  { %v3740_v59 = vadd.f32 %v3739_v5, %v3738_v18 }
 0x355   :  { %v3741_v2 = vrot.slane %v3740_v59, 2 }
 0x357   :  { %v3742_v8 = vadd.f32 %v3741_v2, %v3740_v59 }
 0x359   :  { %v3743_v43 = vrot.slane %v3742_v8, 1 }
 0x35b   :  { %v3744_v1 = vadd.f32 %v3743_v43, %v3742_v8 }
 0x35d   :  { %v3747_v53 = vadd.f32 %v3746_v55, %v3744_v1 }
 0x35f   :  { %3748 = vst [vmem:[#allocation9] sm:$0x1] %v3747_v53 }
 0x360   :  { %5901 = shalt.err (!%p5898_p0)
}
 0x361   :  { %s5902_s26 = scalar_lea.hbm %s8123_s6, 16 }
 0x362   :  { %p5903_p1 = scmp.ne.s32.totalorder %s8123_s6, %s5902_s26  ;;  %p5906_p2 = scmp.lt.u32.totalorder %s5902_s26, %s8123_s6 }
 0x364   :  { %p5908_p3 = pnand %p5906_p2, %p5903_p1 }
 0x366   :  { %5911 = shalt.err (!%p5908_p3)
}
 0x367   :  { %3758 = dma.vmem_to_hbm [thread:$0]  %s3756_s4, 16, %s8123_s6, [#allocation5]  }
 0x368   :  { %5916 = dma.done.wait [#allocation5], 16  }
 0x369   :  { %5917 = vsyncadd [#allocation5], 4294967280 }
 0x36a   :  { %3762 = vsyncpa [#allocation4], 1 }
 0x36b   :  { %3763 = vsyncpa [#allocation7], 1 }
 0x36c   :  { %3764 = vsyncpa [#allocation5], 1 }

</bundles_post_ra>
